<compile_context>
chip_gen: v6e
topology: v6e:2x2x1
jax: 0.10.0
libtpu: 0.0.40
codegen_flags: <defaults>
</compile_context>

<pallas_src>
import functools

import jax
import jax.numpy as jnp
from jax import lax
from jax.experimental import pallas as pl
from jax.experimental.pallas import tpu as pltpu  # noqa: F401  (see TODOs: explicit MXU driving hooks)


_GATE_PERM = (0, 1, 3, 2)   # PyTorch (i, f, g, o) -> kernel layout (i, f, o, g)
_UNROLL_FULL_MAX = 16       # fully unroll at/below this seq_len; fori_loop above


# --------------------------- kernel ---------------------------
def _decoder_kernel(x_ref, wih1_ref, b1_ref, whh1_ref, wih2_ref, whh2_ref, b2_ref,
                    y_ref, *, seq_len, gh, gf):
    """Fused two-layer LSTM decoder.  gh/gf are 128-aligned padded gate widths."""
    B = x_ref.shape[0]
    f32 = jnp.float32
    bf16 = jnp.bfloat16

    # One-time work, off the recurrent chain:
    #  - project the (constant per step) input through layer-1's input weights at f32,
    #  - hoist the layer-2 bias broadcast (JAX does not CSE broadcast_in_dim in loops).
    gx1 = jnp.dot(x_ref[...], wih1_ref[...], preferred_element_type=f32) + b1_ref[...]
    b2b = jnp.broadcast_to(b2_ref[...], (B, 4 * gf))

    # Recurrent state lives in vregs.  Padded lanes stay zero (zero-padded
    # weight rows/cols + tanh(0)=0), and the wrapper slices [..., :F] anyway.
    h1 = jnp.zeros((B, gh), f32)
    c1 = jnp.zeros((B, gh), f32)
    h2 = jnp.zeros((B, gf), f32)
    c2 = jnp.zeros((B, gf), f32)

    def step(h1, c1, h2, c2):
        # Layer-2 recurrent partial depends only on the *previous* h2: issue it
        # first so half of layer-2's MXU work overlaps layer-1's EUP chain.
        # Weight refs are read in-place (no pre-loop value hoist -> no spills).
        p2 = jnp.dot(h2.astype(bf16), whh2_ref[...], preferred_element_type=f32)

        # ---- LSTM layer 1 ----  (bf16 operands, f32 accumulation: single-pass MXU)
        g1 = gx1 + jnp.dot(h1.astype(bf16), whh1_ref[...], preferred_element_type=f32)
        s1 = jax.nn.sigmoid(g1[:, :3 * gh])            # (i, f, o) in one contiguous slab
        i1, f1, o1 = s1[:, :gh], s1[:, gh:2 * gh], s1[:, 2 * gh:]
        u1 = jnp.tanh(g1[:, 3 * gh:])
        c1 = f1 * c1 + i1 * u1
        h1 = o1 * jnp.tanh(c1)

        # ---- LSTM layer 2 ----
        g2 = jnp.dot(h1.astype(bf16), wih2_ref[...], preferred_element_type=f32) + p2 + b2b
        s2 = jax.nn.sigmoid(g2[:, :3 * gf])
        i2, f2, o2 = s2[:, :gf], s2[:, gf:2 * gf], s2[:, 2 * gf:]
        u2 = jnp.tanh(g2[:, 3 * gf:])
        c2 = f2 * c2 + i2 * u2
        h2 = o2 * jnp.tanh(c2)
        return h1, c1, h2, c2

    if seq_len <= _UNROLL_FULL_MAX:
        # Short sequences: full unroll; collect h2 per step and do ONE batched,
        # lane-dense (gf = multiple of 128) store -> unmasked vst, single DMA.
        outs = []
        for _ in range(seq_len):
            h1, c1, h2, c2 = step(h1, c1, h2, c2)
            outs.append(h2)
        y_ref[...] = jnp.stack(outs, axis=0)
    else:
        # Longer sequences: partially-unrolled fori_loop bounds vreg live ranges
        # and code size; per-step stores remain lane-dense (unmasked).
        def body(t, carry):
            h1, c1, h2, c2 = step(*carry)
            y_ref[t] = h2
            return (h1, c1, h2, c2)

        lax.fori_loop(0, seq_len, body, (h1, c1, h2, c2), unroll=4)


# --------------------------- one-time parameter prep ---------------------------
def _round_up(n, m):
    return ((n + m - 1) // m) * m


def _pad_gates(w, out_dim, gp):
    """(rows, 4*out_dim), PyTorch gate order -> (rows, 4*gp), (i,f,o,g) order,
    each gate placed at a gp-aligned (128-lane-aligned) column block."""
    rows = w.shape[0]
    w4 = w.reshape(rows, 4, out_dim)[:, _GATE_PERM, :].astype(jnp.float32)
    return jnp.pad(w4, ((0, 0), (0, 0), (0, gp - out_dim))).reshape(rows, 4 * gp)


def _pad_rows(w, rows_to):
    return jnp.pad(w, ((0, rows_to - w.shape[0]), (0, 0)))


def prepare_decoder_params(params, mxu_dtype=jnp.bfloat16):
    """Call ONCE per parameter set and cache the result.

    Does all gate reordering / 128-lane padding / row padding / dtype casts so
    that the per-call forward has zero parameter-prep work.  Recurrent weights
    are cast to bf16 (single-pass MXU operands); biases and the input-projection
    weight stay f32 (used once / added in f32).
    """
    wih1, whh1, b1, wih2, whh2, b2 = params
    H = whh1.shape[0]
    F = whh2.shape[0]
    GH = _round_up(H, 128)
    GF = _round_up(F, 128)

    wih1_p = _pad_gates(wih1, H, GH)                                    # (in, 4GH) f32
    b1_p = _pad_gates(b1, H, GH)                                        # (1, 4GH)  f32
    whh1_p = _pad_rows(_pad_gates(whh1, H, GH), GH).astype(mxu_dtype)   # (GH, 4GH) bf16
    wih2_p = _pad_rows(_pad_gates(wih2, F, GF), GH).astype(mxu_dtype)   # (GH, 4GF) bf16
    whh2_p = _pad_rows(_pad_gates(whh2, F, GF), GF).astype(mxu_dtype)   # (GF, 4GF) bf16
    b2_p = _pad_gates(b2, F, GF)                                        # (1, 4GF)  f32

    weights = (wih1_p, b1_p, whh1_p, wih2_p, whh2_p, b2_p)
    weights = tuple(jnp.asarray(w) for w in weights)
    return weights, int(F)


# --------------------------- forward wrapper ---------------------------
@functools.partial(jax.jit, static_argnames=("sequence_length", "num_features"))
def decoder_forward(x, weights, *, sequence_length, num_features):
    """x: (1, B, 2*embedding_dim).  Returns (sequence_length, B, num_features) f32."""
    wih1_p, b1_p, whh1_p, wih2_p, whh2_p, b2_p = weights
    B = x.shape[1]
    in_dim = wih1_p.shape[0]
    GH = whh1_p.shape[0]
    GF = whh2_p.shape[0]

    x2d = x.reshape(B, in_dim).astype(jnp.float32)   # x.view(1, B, -1), squeeze T=1

    kernel = functools.partial(_decoder_kernel, seq_len=int(sequence_length),
                               gh=GH, gf=GF)

    # No grid: one invocation; all operands are whole-array VMEM blocks
    # (total footprint ~0.5 MiB), lane-dense output written back in one DMA.
    y_pad = pl.pallas_call(
        kernel,
        out_shape=jax.ShapeDtypeStruct((sequence_length, B, GF), jnp.float32),
    )(x2d, wih1_p, b1_p, whh1_p, wih2_p, whh2_p, b2_p)

    return y_pad[..., :num_features]


# ---------------- pure-JAX reference (for correctness check) ----------------
def _lstm_ref(xs, w_ih, w_hh, b):
    H = w_hh.shape[0]
    B = xs.shape[1]

    def step(carry, x_t):
        h, c = carry
        g = (jnp.dot(x_t, w_ih, precision=lax.Precision.HIGHEST)
             + jnp.dot(h, w_hh, precision=lax.Precision.HIGHEST) + b)
        i = jax.nn.sigmoid(g[:, :H])
        f = jax.nn.sigmoid(g[:, H:2 * H])
        gg = jnp.tanh(g[:, 2 * H:3 * H])
        o = jax.nn.sigmoid(g[:, 3 * H:])
        c = f * c + i * gg
        h = o * jnp.tanh(c)
        return (h, c), h

    init = (jnp.zeros((B, H), jnp.float32), jnp.zeros((B, H), jnp.float32))
    _, ys = lax.scan(step, init, xs)
    return ys


def decoder_ref(x, params, sequence_length):
    wih1, whh1, b1, wih2, whh2, b2 = params
    B = x.shape[1]
    x2d = x.reshape(B, -1).astype(jnp.float32)
    xs = jnp.broadcast_to(x2d[None], (sequence_length,) + x2d.shape)  # repeat(T,1,1)
    h1 = _lstm_ref(xs, wih1, whh1, b1)
    return _lstm_ref(h1, wih2, whh2, b2)


def make_params(key, embedding_dim, num_features, hidden_dimension):
    """PyTorch-style init U(-1/sqrt(hidden), 1/sqrt(hidden)); weights pre-transposed
    to (in_dim, 4*out_dim), gate order (i, f, g, o); biases combined (b_ih+b_hh)."""
    in1 = embedding_dim * 2
    H, F = hidden_dimension, num_features
    ks = jax.random.split(key, 8)
    k1 = 1.0 / jnp.sqrt(H)
    k2 = 1.0 / jnp.sqrt(F)
    u = lambda k, shape, s: jax.random.uniform(k, shape, jnp.float32, -s, s)
    wih1 = u(ks[0], (in1, 4 * H), k1)
    whh1 = u(ks[1], (H, 4 * H), k1)
    b1 = u(ks[2], (1, 4 * H), k1) + u(ks[3], (1, 4 * H), k1)   # b_ih + b_hh
    wih2 = u(ks[4], (H, 4 * F), k2)
    whh2 = u(ks[5], (F, 4 * F), k2)
    b2 = u(ks[6], (1, 4 * F), k2) + u(ks[7], (1, 4 * F), k2)
    return (wih1, whh1, b1, wih2, whh2, b2)


if __name__ == "__main__":
    embedding_dim = 8
    num_features = 4
    hidden_dimension = 32
    sequence_length = 8
    batch = 2

    key = jax.random.PRNGKey(0)
    kx, kp = jax.random.split(key)
    # Module input: (T=1, batch, embedding_dim*2), as implied by x.view(1, x.shape[1], -1)
    x = jax.random.normal(kx, (1, batch, embedding_dim * 2), jnp.float32)
    params = make_params(kp, embedding_dim, num_features, hidden_dimension)

    # One-time parameter preparation (cache this across forward calls).
    weights, F = prepare_decoder_params(params)

    # Tolerances reflect bf16 MXU operands on the recurrent matmuls vs. an
    # f32 HIGHEST-precision reference (elementwise math is f32 in both).
    RTOL, ATOL = 3e-2, 1e-2

    # Path 1: short sequence -> fully unrolled loop + single batched store.
    y = jax.block_until_ready(
        decoder_forward(x, weights, sequence_length=sequence_length, num_features=F))
    y_ref = jax.block_until_ready(decoder_ref(x, params, sequence_length))
    assert y.shape == (sequence_length, batch, num_features), y.shape
    assert jnp.allclose(y, y_ref, rtol=RTOL, atol=ATOL), (
        float(jnp.max(jnp.abs(y - y_ref))))

    # Path 2: longer sequence -> partially-unrolled fori_loop path.
    long_T = 40
    y2 = jax.block_until_ready(
        decoder_forward(x, weights, sequence_length=long_T, num_features=F))
    y2_ref = jax.block_until_ready(decoder_ref(x, params, long_T))
    assert y2.shape == (long_T, batch, num_features), y2.shape
    assert jnp.allclose(y2, y2_ref, rtol=RTOL, atol=ATOL), (
        float(jnp.max(jnp.abs(y2 - y2_ref))))

    print("KERNEL_OK")
</pallas_src>

<mosaic_0001>
module attributes {stable_mosaic.version = 11 : i64} {
  func.func @_decoder_kernel(%arg0: memref<2x16xf32, #tpu.memory_space<vmem>>, %arg1: memref<16x512xf32, #tpu.memory_space<vmem>>, %arg2: memref<1x512xf32, #tpu.memory_space<vmem>>, %arg3: memref<128x512xbf16, #tpu.memory_space<vmem>>, %arg4: memref<128x512xbf16, #tpu.memory_space<vmem>>, %arg5: memref<128x512xbf16, #tpu.memory_space<vmem>>, %arg6: memref<1x512xf32, #tpu.memory_space<vmem>>, %arg7: memref<8x2x128xf32, #tpu.memory_space<vmem>>) attributes {dimension_semantics = [], scalar_prefetch = 0 : i64, scratch_operands = 0 : i64, tpu.core_type = #tpu.core_type<tc>} {
    %c0 = arith.constant 0 : index
    %c0_0 = arith.constant 0 : index
    %0 = vector.load %arg0[%c0, %c0_0] : memref<2x16xf32, #tpu.memory_space<vmem>>, vector<2x16xf32>
    %c0_1 = arith.constant 0 : index
    %c0_2 = arith.constant 0 : index
    %1 = vector.load %arg1[%c0_1, %c0_2] : memref<16x512xf32, #tpu.memory_space<vmem>>, vector<16x512xf32>
    %cst = arith.constant dense<0.000000e+00> : vector<2x512xf32>
    %2 = tpu.matmul %0, %1, %cst {dimension_numbers = #tpu.dot_dimension_numbers<[1], [0], [0], [1], [0, 0, 1, 1], [], []>} : vector<2x16xf32>, vector<16x512xf32>, vector<2x512xf32> -> vector<2x512xf32>
    %c0_3 = arith.constant 0 : index
    %c0_4 = arith.constant 0 : index
    %3 = vector.load %arg2[%c0_3, %c0_4] : memref<1x512xf32, #tpu.memory_space<vmem>>, vector<1x512xf32>
    %4 = vector.broadcast %3 : vector<1x512xf32> to vector<2x512xf32>
    %5 = arith.addf %2, %4 : vector<2x512xf32>
    %c0_5 = arith.constant 0 : index
    %c0_6 = arith.constant 0 : index
    %6 = vector.load %arg6[%c0_5, %c0_6] : memref<1x512xf32, #tpu.memory_space<vmem>>, vector<1x512xf32>
    %7 = vector.shape_cast %6 : vector<1x512xf32> to vector<1x512xf32>
    %8 = vector.broadcast %7 : vector<1x512xf32> to vector<2x512xf32>
    %cst_7 = arith.constant 0.000000e+00 : f32
    %9 = vector.broadcast %cst_7 : f32 to vector<2x128xf32>
    %cst_8 = arith.constant 0.000000e+00 : f32
    %10 = vector.broadcast %cst_8 : f32 to vector<2x128xf32>
    %cst_9 = arith.constant 0.000000e+00 : f32
    %11 = vector.broadcast %cst_9 : f32 to vector<2x128xf32>
    %cst_10 = arith.constant 0.000000e+00 : f32
    %12 = vector.broadcast %cst_10 : f32 to vector<2x128xf32>
    %13 = arith.truncf %11 : vector<2x128xf32> to vector<2x128xbf16>
    %c0_11 = arith.constant 0 : index
    %c0_12 = arith.constant 0 : index
    %14 = vector.load %arg5[%c0_11, %c0_12] : memref<128x512xbf16, #tpu.memory_space<vmem>>, vector<128x512xbf16>
    %cst_13 = arith.constant dense<0.000000e+00> : vector<2x512xf32>
    %15 = tpu.matmul %13, %14, %cst_13 {dimension_numbers = #tpu.dot_dimension_numbers<[1], [0], [0], [1], [0, 0, 1, 1], [], []>} : vector<2x128xbf16>, vector<128x512xbf16>, vector<2x512xf32> -> vector<2x512xf32>
    %16 = arith.truncf %9 : vector<2x128xf32> to vector<2x128xbf16>
    %c0_14 = arith.constant 0 : index
    %c0_15 = arith.constant 0 : index
    %17 = vector.load %arg3[%c0_14, %c0_15] : memref<128x512xbf16, #tpu.memory_space<vmem>>, vector<128x512xbf16>
    %cst_16 = arith.constant dense<0.000000e+00> : vector<2x512xf32>
    %18 = tpu.matmul %16, %17, %cst_16 {dimension_numbers = #tpu.dot_dimension_numbers<[1], [0], [0], [1], [0, 0, 1, 1], [], []>} : vector<2x128xbf16>, vector<128x512xbf16>, vector<2x512xf32> -> vector<2x512xf32>
    %19 = arith.addf %5, %18 : vector<2x512xf32>
    %20 = vector.extract_strided_slice %19 {offsets = [0, 0], sizes = [2, 384], strides = [1, 1]} : vector<2x512xf32> to vector<2x384xf32>
    %21 = arith.negf %20 : vector<2x384xf32>
    %22 = math.exp %21 : vector<2x384xf32>
    %cst_17 = arith.constant 1.000000e+00 : f32
    %23 = vector.broadcast %cst_17 : f32 to vector<2x384xf32>
    %24 = arith.addf %23, %22 : vector<2x384xf32>
    %25 = arith.divf %23, %24 : vector<2x384xf32>
    %26 = vector.extract_strided_slice %25 {offsets = [0, 0], sizes = [2, 128], strides = [1, 1]} : vector<2x384xf32> to vector<2x128xf32>
    %27 = vector.extract_strided_slice %25 {offsets = [0, 128], sizes = [2, 128], strides = [1, 1]} : vector<2x384xf32> to vector<2x128xf32>
    %28 = vector.extract_strided_slice %25 {offsets = [0, 256], sizes = [2, 128], strides = [1, 1]} : vector<2x384xf32> to vector<2x128xf32>
    %29 = vector.extract_strided_slice %19 {offsets = [0, 384], sizes = [2, 128], strides = [1, 1]} : vector<2x512xf32> to vector<2x128xf32>
    %30 = math.tanh %29 : vector<2x128xf32>
    %31 = arith.mulf %27, %10 : vector<2x128xf32>
    %32 = arith.mulf %26, %30 : vector<2x128xf32>
    %33 = arith.addf %31, %32 : vector<2x128xf32>
    %34 = math.tanh %33 : vector<2x128xf32>
    %35 = arith.mulf %28, %34 : vector<2x128xf32>
    %36 = arith.truncf %35 : vector<2x128xf32> to vector<2x128xbf16>
    %c0_18 = arith.constant 0 : index
    %c0_19 = arith.constant 0 : index
    %37 = vector.load %arg4[%c0_18, %c0_19] : memref<128x512xbf16, #tpu.memory_space<vmem>>, vector<128x512xbf16>
    %cst_20 = arith.constant dense<0.000000e+00> : vector<2x512xf32>
    %38 = tpu.matmul %36, %37, %cst_20 {dimension_numbers = #tpu.dot_dimension_numbers<[1], [0], [0], [1], [0, 0, 1, 1], [], []>} : vector<2x128xbf16>, vector<128x512xbf16>, vector<2x512xf32> -> vector<2x512xf32>
    %39 = arith.addf %38, %15 : vector<2x512xf32>
    %40 = arith.addf %39, %8 : vector<2x512xf32>
    %41 = vector.extract_strided_slice %40 {offsets = [0, 0], sizes = [2, 384], strides = [1, 1]} : vector<2x512xf32> to vector<2x384xf32>
    %42 = arith.negf %41 : vector<2x384xf32>
    %43 = math.exp %42 : vector<2x384xf32>
    %cst_21 = arith.constant 1.000000e+00 : f32
    %44 = vector.broadcast %cst_21 : f32 to vector<2x384xf32>
    %45 = arith.addf %44, %43 : vector<2x384xf32>
    %46 = arith.divf %44, %45 : vector<2x384xf32>
    %47 = vector.extract_strided_slice %46 {offsets = [0, 0], sizes = [2, 128], strides = [1, 1]} : vector<2x384xf32> to vector<2x128xf32>
    %48 = vector.extract_strided_slice %46 {offsets = [0, 128], sizes = [2, 128], strides = [1, 1]} : vector<2x384xf32> to vector<2x128xf32>
    %49 = vector.extract_strided_slice %46 {offsets = [0, 256], sizes = [2, 128], strides = [1, 1]} : vector<2x384xf32> to vector<2x128xf32>
    %50 = vector.extract_strided_slice %40 {offsets = [0, 384], sizes = [2, 128], strides = [1, 1]} : vector<2x512xf32> to vector<2x128xf32>
    %51 = math.tanh %50 : vector<2x128xf32>
    %52 = arith.mulf %48, %12 : vector<2x128xf32>
    %53 = arith.mulf %47, %51 : vector<2x128xf32>
    %54 = arith.addf %52, %53 : vector<2x128xf32>
    %55 = math.tanh %54 : vector<2x128xf32>
    %56 = arith.mulf %49, %55 : vector<2x128xf32>
    %57 = arith.truncf %56 : vector<2x128xf32> to vector<2x128xbf16>
    %c0_22 = arith.constant 0 : index
    %c0_23 = arith.constant 0 : index
    %58 = vector.load %arg5[%c0_22, %c0_23] : memref<128x512xbf16, #tpu.memory_space<vmem>>, vector<128x512xbf16>
    %cst_24 = arith.constant dense<0.000000e+00> : vector<2x512xf32>
    %59 = tpu.matmul %57, %58, %cst_24 {dimension_numbers = #tpu.dot_dimension_numbers<[1], [0], [0], [1], [0, 0, 1, 1], [], []>} : vector<2x128xbf16>, vector<128x512xbf16>, vector<2x512xf32> -> vector<2x512xf32>
    %60 = arith.truncf %35 : vector<2x128xf32> to vector<2x128xbf16>
    %c0_25 = arith.constant 0 : index
    %c0_26 = arith.constant 0 : index
    %61 = vector.load %arg3[%c0_25, %c0_26] : memref<128x512xbf16, #tpu.memory_space<vmem>>, vector<128x512xbf16>
    %cst_27 = arith.constant dense<0.000000e+00> : vector<2x512xf32>
    %62 = tpu.matmul %60, %61, %cst_27 {dimension_numbers = #tpu.dot_dimension_numbers<[1], [0], [0], [1], [0, 0, 1, 1], [], []>} : vector<2x128xbf16>, vector<128x512xbf16>, vector<2x512xf32> -> vector<2x512xf32>
    %63 = arith.addf %5, %62 : vector<2x512xf32>
    %64 = vector.extract_strided_slice %63 {offsets = [0, 0], sizes = [2, 384], strides = [1, 1]} : vector<2x512xf32> to vector<2x384xf32>
    %65 = arith.negf %64 : vector<2x384xf32>
    %66 = math.exp %65 : vector<2x384xf32>
    %cst_28 = arith.constant 1.000000e+00 : f32
    %67 = vector.broadcast %cst_28 : f32 to vector<2x384xf32>
    %68 = arith.addf %67, %66 : vector<2x384xf32>
    %69 = arith.divf %67, %68 : vector<2x384xf32>
    %70 = vector.extract_strided_slice %69 {offsets = [0, 0], sizes = [2, 128], strides = [1, 1]} : vector<2x384xf32> to vector<2x128xf32>
    %71 = vector.extract_strided_slice %69 {offsets = [0, 128], sizes = [2, 128], strides = [1, 1]} : vector<2x384xf32> to vector<2x128xf32>
    %72 = vector.extract_strided_slice %69 {offsets = [0, 256], sizes = [2, 128], strides = [1, 1]} : vector<2x384xf32> to vector<2x128xf32>
    %73 = vector.extract_strided_slice %63 {offsets = [0, 384], sizes = [2, 128], strides = [1, 1]} : vector<2x512xf32> to vector<2x128xf32>
    %74 = math.tanh %73 : vector<2x128xf32>
    %75 = arith.mulf %71, %33 : vector<2x128xf32>
    %76 = arith.mulf %70, %74 : vector<2x128xf32>
    %77 = arith.addf %75, %76 : vector<2x128xf32>
    %78 = math.tanh %77 : vector<2x128xf32>
    %79 = arith.mulf %72, %78 : vector<2x128xf32>
    %80 = arith.truncf %79 : vector<2x128xf32> to vector<2x128xbf16>
    %c0_29 = arith.constant 0 : index
    %c0_30 = arith.constant 0 : index
    %81 = vector.load %arg4[%c0_29, %c0_30] : memref<128x512xbf16, #tpu.memory_space<vmem>>, vector<128x512xbf16>
    %cst_31 = arith.constant dense<0.000000e+00> : vector<2x512xf32>
    %82 = tpu.matmul %80, %81, %cst_31 {dimension_numbers = #tpu.dot_dimension_numbers<[1], [0], [0], [1], [0, 0, 1, 1], [], []>} : vector<2x128xbf16>, vector<128x512xbf16>, vector<2x512xf32> -> vector<2x512xf32>
    %83 = arith.addf %82, %59 : vector<2x512xf32>
    %84 = arith.addf %83, %8 : vector<2x512xf32>
    %85 = vector.extract_strided_slice %84 {offsets = [0, 0], sizes = [2, 384], strides = [1, 1]} : vector<2x512xf32> to vector<2x384xf32>
    %86 = arith.negf %85 : vector<2x384xf32>
    %87 = math.exp %86 : vector<2x384xf32>
    %cst_32 = arith.constant 1.000000e+00 : f32
    %88 = vector.broadcast %cst_32 : f32 to vector<2x384xf32>
    %89 = arith.addf %88, %87 : vector<2x384xf32>
    %90 = arith.divf %88, %89 : vector<2x384xf32>
    %91 = vector.extract_strided_slice %90 {offsets = [0, 0], sizes = [2, 128], strides = [1, 1]} : vector<2x384xf32> to vector<2x128xf32>
    %92 = vector.extract_strided_slice %90 {offsets = [0, 128], sizes = [2, 128], strides = [1, 1]} : vector<2x384xf32> to vector<2x128xf32>
    %93 = vector.extract_strided_slice %90 {offsets = [0, 256], sizes = [2, 128], strides = [1, 1]} : vector<2x384xf32> to vector<2x128xf32>
    %94 = vector.extract_strided_slice %84 {offsets = [0, 384], sizes = [2, 128], strides = [1, 1]} : vector<2x512xf32> to vector<2x128xf32>
    %95 = math.tanh %94 : vector<2x128xf32>
    %96 = arith.mulf %92, %54 : vector<2x128xf32>
    %97 = arith.mulf %91, %95 : vector<2x128xf32>
    %98 = arith.addf %96, %97 : vector<2x128xf32>
    %99 = math.tanh %98 : vector<2x128xf32>
    %100 = arith.mulf %93, %99 : vector<2x128xf32>
    %101 = arith.truncf %100 : vector<2x128xf32> to vector<2x128xbf16>
    %c0_33 = arith.constant 0 : index
    %c0_34 = arith.constant 0 : index
    %102 = vector.load %arg5[%c0_33, %c0_34] : memref<128x512xbf16, #tpu.memory_space<vmem>>, vector<128x512xbf16>
    %cst_35 = arith.constant dense<0.000000e+00> : vector<2x512xf32>
    %103 = tpu.matmul %101, %102, %cst_35 {dimension_numbers = #tpu.dot_dimension_numbers<[1], [0], [0], [1], [0, 0, 1, 1], [], []>} : vector<2x128xbf16>, vector<128x512xbf16>, vector<2x512xf32> -> vector<2x512xf32>
    %104 = arith.truncf %79 : vector<2x128xf32> to vector<2x128xbf16>
    %c0_36 = arith.constant 0 : index
    %c0_37 = arith.constant 0 : index
    %105 = vector.load %arg3[%c0_36, %c0_37] : memref<128x512xbf16, #tpu.memory_space<vmem>>, vector<128x512xbf16>
    %cst_38 = arith.constant dense<0.000000e+00> : vector<2x512xf32>
    %106 = tpu.matmul %104, %105, %cst_38 {dimension_numbers = #tpu.dot_dimension_numbers<[1], [0], [0], [1], [0, 0, 1, 1], [], []>} : vector<2x128xbf16>, vector<128x512xbf16>, vector<2x512xf32> -> vector<2x512xf32>
    %107 = arith.addf %5, %106 : vector<2x512xf32>
    %108 = vector.extract_strided_slice %107 {offsets = [0, 0], sizes = [2, 384], strides = [1, 1]} : vector<2x512xf32> to vector<2x384xf32>
    %109 = arith.negf %108 : vector<2x384xf32>
    %110 = math.exp %109 : vector<2x384xf32>
    %cst_39 = arith.constant 1.000000e+00 : f32
    %111 = vector.broadcast %cst_39 : f32 to vector<2x384xf32>
    %112 = arith.addf %111, %110 : vector<2x384xf32>
    %113 = arith.divf %111, %112 : vector<2x384xf32>
    %114 = vector.extract_strided_slice %113 {offsets = [0, 0], sizes = [2, 128], strides = [1, 1]} : vector<2x384xf32> to vector<2x128xf32>
    %115 = vector.extract_strided_slice %113 {offsets = [0, 128], sizes = [2, 128], strides = [1, 1]} : vector<2x384xf32> to vector<2x128xf32>
    %116 = vector.extract_strided_slice %113 {offsets = [0, 256], sizes = [2, 128], strides = [1, 1]} : vector<2x384xf32> to vector<2x128xf32>
    %117 = vector.extract_strided_slice %107 {offsets = [0, 384], sizes = [2, 128], strides = [1, 1]} : vector<2x512xf32> to vector<2x128xf32>
    %118 = math.tanh %117 : vector<2x128xf32>
    %119 = arith.mulf %115, %77 : vector<2x128xf32>
    %120 = arith.mulf %114, %118 : vector<2x128xf32>
    %121 = arith.addf %119, %120 : vector<2x128xf32>
    %122 = math.tanh %121 : vector<2x128xf32>
    %123 = arith.mulf %116, %122 : vector<2x128xf32>
    %124 = arith.truncf %123 : vector<2x128xf32> to vector<2x128xbf16>
    %c0_40 = arith.constant 0 : index
    %c0_41 = arith.constant 0 : index
    %125 = vector.load %arg4[%c0_40, %c0_41] : memref<128x512xbf16, #tpu.memory_space<vmem>>, vector<128x512xbf16>
    %cst_42 = arith.constant dense<0.000000e+00> : vector<2x512xf32>
    %126 = tpu.matmul %124, %125, %cst_42 {dimension_numbers = #tpu.dot_dimension_numbers<[1], [0], [0], [1], [0, 0, 1, 1], [], []>} : vector<2x128xbf16>, vector<128x512xbf16>, vector<2x512xf32> -> vector<2x512xf32>
    %127 = arith.addf %126, %103 : vector<2x512xf32>
    %128 = arith.addf %127, %8 : vector<2x512xf32>
    %129 = vector.extract_strided_slice %128 {offsets = [0, 0], sizes = [2, 384], strides = [1, 1]} : vector<2x512xf32> to vector<2x384xf32>
    %130 = arith.negf %129 : vector<2x384xf32>
    %131 = math.exp %130 : vector<2x384xf32>
    %cst_43 = arith.constant 1.000000e+00 : f32
    %132 = vector.broadcast %cst_43 : f32 to vector<2x384xf32>
    %133 = arith.addf %132, %131 : vector<2x384xf32>
    %134 = arith.divf %132, %133 : vector<2x384xf32>
    %135 = vector.extract_strided_slice %134 {offsets = [0, 0], sizes = [2, 128], strides = [1, 1]} : vector<2x384xf32> to vector<2x128xf32>
    %136 = vector.extract_strided_slice %134 {offsets = [0, 128], sizes = [2, 128], strides = [1, 1]} : vector<2x384xf32> to vector<2x128xf32>
    %137 = vector.extract_strided_slice %134 {offsets = [0, 256], sizes = [2, 128], strides = [1, 1]} : vector<2x384xf32> to vector<2x128xf32>
    %138 = vector.extract_strided_slice %128 {offsets = [0, 384], sizes = [2, 128], strides = [1, 1]} : vector<2x512xf32> to vector<2x128xf32>
    %139 = math.tanh %138 : vector<2x128xf32>
    %140 = arith.mulf %136, %98 : vector<2x128xf32>
    %141 = arith.mulf %135, %139 : vector<2x128xf32>
    %142 = arith.addf %140, %141 : vector<2x128xf32>
    %143 = math.tanh %142 : vector<2x128xf32>
    %144 = arith.mulf %137, %143 : vector<2x128xf32>
    %145 = arith.truncf %144 : vector<2x128xf32> to vector<2x128xbf16>
    %c0_44 = arith.constant 0 : index
    %c0_45 = arith.constant 0 : index
    %146 = vector.load %arg5[%c0_44, %c0_45] : memref<128x512xbf16, #tpu.memory_space<vmem>>, vector<128x512xbf16>
    %cst_46 = arith.constant dense<0.000000e+00> : vector<2x512xf32>
    %147 = tpu.matmul %145, %146, %cst_46 {dimension_numbers = #tpu.dot_dimension_numbers<[1], [0], [0], [1], [0, 0, 1, 1], [], []>} : vector<2x128xbf16>, vector<128x512xbf16>, vector<2x512xf32> -> vector<2x512xf32>
    %148 = arith.truncf %123 : vector<2x128xf32> to vector<2x128xbf16>
    %c0_47 = arith.constant 0 : index
    %c0_48 = arith.constant 0 : index
    %149 = vector.load %arg3[%c0_47, %c0_48] : memref<128x512xbf16, #tpu.memory_space<vmem>>, vector<128x512xbf16>
    %cst_49 = arith.constant dense<0.000000e+00> : vector<2x512xf32>
    %150 = tpu.matmul %148, %149, %cst_49 {dimension_numbers = #tpu.dot_dimension_numbers<[1], [0], [0], [1], [0, 0, 1, 1], [], []>} : vector<2x128xbf16>, vector<128x512xbf16>, vector<2x512xf32> -> vector<2x512xf32>
    %151 = arith.addf %5, %150 : vector<2x512xf32>
    %152 = vector.extract_strided_slice %151 {offsets = [0, 0], sizes = [2, 384], strides = [1, 1]} : vector<2x512xf32> to vector<2x384xf32>
    %153 = arith.negf %152 : vector<2x384xf32>
    %154 = math.exp %153 : vector<2x384xf32>
    %cst_50 = arith.constant 1.000000e+00 : f32
    %155 = vector.broadcast %cst_50 : f32 to vector<2x384xf32>
    %156 = arith.addf %155, %154 : vector<2x384xf32>
    %157 = arith.divf %155, %156 : vector<2x384xf32>
    %158 = vector.extract_strided_slice %157 {offsets = [0, 0], sizes = [2, 128], strides = [1, 1]} : vector<2x384xf32> to vector<2x128xf32>
    %159 = vector.extract_strided_slice %157 {offsets = [0, 128], sizes = [2, 128], strides = [1, 1]} : vector<2x384xf32> to vector<2x128xf32>
    %160 = vector.extract_strided_slice %157 {offsets = [0, 256], sizes = [2, 128], strides = [1, 1]} : vector<2x384xf32> to vector<2x128xf32>
    %161 = vector.extract_strided_slice %151 {offsets = [0, 384], sizes = [2, 128], strides = [1, 1]} : vector<2x512xf32> to vector<2x128xf32>
    %162 = math.tanh %161 : vector<2x128xf32>
    %163 = arith.mulf %159, %121 : vector<2x128xf32>
    %164 = arith.mulf %158, %162 : vector<2x128xf32>
    %165 = arith.addf %163, %164 : vector<2x128xf32>
    %166 = math.tanh %165 : vector<2x128xf32>
    %167 = arith.mulf %160, %166 : vector<2x128xf32>
    %168 = arith.truncf %167 : vector<2x128xf32> to vector<2x128xbf16>
    %c0_51 = arith.constant 0 : index
    %c0_52 = arith.constant 0 : index
    %169 = vector.load %arg4[%c0_51, %c0_52] : memref<128x512xbf16, #tpu.memory_space<vmem>>, vector<128x512xbf16>
    %cst_53 = arith.constant dense<0.000000e+00> : vector<2x512xf32>
    %170 = tpu.matmul %168, %169, %cst_53 {dimension_numbers = #tpu.dot_dimension_numbers<[1], [0], [0], [1], [0, 0, 1, 1], [], []>} : vector<2x128xbf16>, vector<128x512xbf16>, vector<2x512xf32> -> vector<2x512xf32>
    %171 = arith.addf %170, %147 : vector<2x512xf32>
    %172 = arith.addf %171, %8 : vector<2x512xf32>
    %173 = vector.extract_strided_slice %172 {offsets = [0, 0], sizes = [2, 384], strides = [1, 1]} : vector<2x512xf32> to vector<2x384xf32>
    %174 = arith.negf %173 : vector<2x384xf32>
    %175 = math.exp %174 : vector<2x384xf32>
    %cst_54 = arith.constant 1.000000e+00 : f32
    %176 = vector.broadcast %cst_54 : f32 to vector<2x384xf32>
    %177 = arith.addf %176, %175 : vector<2x384xf32>
    %178 = arith.divf %176, %177 : vector<2x384xf32>
    %179 = vector.extract_strided_slice %178 {offsets = [0, 0], sizes = [2, 128], strides = [1, 1]} : vector<2x384xf32> to vector<2x128xf32>
    %180 = vector.extract_strided_slice %178 {offsets = [0, 128], sizes = [2, 128], strides = [1, 1]} : vector<2x384xf32> to vector<2x128xf32>
    %181 = vector.extract_strided_slice %178 {offsets = [0, 256], sizes = [2, 128], strides = [1, 1]} : vector<2x384xf32> to vector<2x128xf32>
    %182 = vector.extract_strided_slice %172 {offsets = [0, 384], sizes = [2, 128], strides = [1, 1]} : vector<2x512xf32> to vector<2x128xf32>
    %183 = math.tanh %182 : vector<2x128xf32>
    %184 = arith.mulf %180, %142 : vector<2x128xf32>
    %185 = arith.mulf %179, %183 : vector<2x128xf32>
    %186 = arith.addf %184, %185 : vector<2x128xf32>
    %187 = math.tanh %186 : vector<2x128xf32>
    %188 = arith.mulf %181, %187 : vector<2x128xf32>
    %189 = arith.truncf %188 : vector<2x128xf32> to vector<2x128xbf16>
    %c0_55 = arith.constant 0 : index
    %c0_56 = arith.constant 0 : index
    %190 = vector.load %arg5[%c0_55, %c0_56] : memref<128x512xbf16, #tpu.memory_space<vmem>>, vector<128x512xbf16>
    %cst_57 = arith.constant dense<0.000000e+00> : vector<2x512xf32>
    %191 = tpu.matmul %189, %190, %cst_57 {dimension_numbers = #tpu.dot_dimension_numbers<[1], [0], [0], [1], [0, 0, 1, 1], [], []>} : vector<2x128xbf16>, vector<128x512xbf16>, vector<2x512xf32> -> vector<2x512xf32>
    %192 = arith.truncf %167 : vector<2x128xf32> to vector<2x128xbf16>
    %c0_58 = arith.constant 0 : index
    %c0_59 = arith.constant 0 : index
    %193 = vector.load %arg3[%c0_58, %c0_59] : memref<128x512xbf16, #tpu.memory_space<vmem>>, vector<128x512xbf16>
    %cst_60 = arith.constant dense<0.000000e+00> : vector<2x512xf32>
    %194 = tpu.matmul %192, %193, %cst_60 {dimension_numbers = #tpu.dot_dimension_numbers<[1], [0], [0], [1], [0, 0, 1, 1], [], []>} : vector<2x128xbf16>, vector<128x512xbf16>, vector<2x512xf32> -> vector<2x512xf32>
    %195 = arith.addf %5, %194 : vector<2x512xf32>
    %196 = vector.extract_strided_slice %195 {offsets = [0, 0], sizes = [2, 384], strides = [1, 1]} : vector<2x512xf32> to vector<2x384xf32>
    %197 = arith.negf %196 : vector<2x384xf32>
    %198 = math.exp %197 : vector<2x384xf32>
    %cst_61 = arith.constant 1.000000e+00 : f32
    %199 = vector.broadcast %cst_61 : f32 to vector<2x384xf32>
    %200 = arith.addf %199, %198 : vector<2x384xf32>
    %201 = arith.divf %199, %200 : vector<2x384xf32>
    %202 = vector.extract_strided_slice %201 {offsets = [0, 0], sizes = [2, 128], strides = [1, 1]} : vector<2x384xf32> to vector<2x128xf32>
    %203 = vector.extract_strided_slice %201 {offsets = [0, 128], sizes = [2, 128], strides = [1, 1]} : vector<2x384xf32> to vector<2x128xf32>
    %204 = vector.extract_strided_slice %201 {offsets = [0, 256], sizes = [2, 128], strides = [1, 1]} : vector<2x384xf32> to vector<2x128xf32>
    %205 = vector.extract_strided_slice %195 {offsets = [0, 384], sizes = [2, 128], strides = [1, 1]} : vector<2x512xf32> to vector<2x128xf32>
    %206 = math.tanh %205 : vector<2x128xf32>
    %207 = arith.mulf %203, %165 : vector<2x128xf32>
    %208 = arith.mulf %202, %206 : vector<2x128xf32>
    %209 = arith.addf %207, %208 : vector<2x128xf32>
    %210 = math.tanh %209 : vector<2x128xf32>
    %211 = arith.mulf %204, %210 : vector<2x128xf32>
    %212 = arith.truncf %211 : vector<2x128xf32> to vector<2x128xbf16>
    %c0_62 = arith.constant 0 : index
    %c0_63 = arith.constant 0 : index
    %213 = vector.load %arg4[%c0_62, %c0_63] : memref<128x512xbf16, #tpu.memory_space<vmem>>, vector<128x512xbf16>
    %cst_64 = arith.constant dense<0.000000e+00> : vector<2x512xf32>
    %214 = tpu.matmul %212, %213, %cst_64 {dimension_numbers = #tpu.dot_dimension_numbers<[1], [0], [0], [1], [0, 0, 1, 1], [], []>} : vector<2x128xbf16>, vector<128x512xbf16>, vector<2x512xf32> -> vector<2x512xf32>
    %215 = arith.addf %214, %191 : vector<2x512xf32>
    %216 = arith.addf %215, %8 : vector<2x512xf32>
    %217 = vector.extract_strided_slice %216 {offsets = [0, 0], sizes = [2, 384], strides = [1, 1]} : vector<2x512xf32> to vector<2x384xf32>
    %218 = arith.negf %217 : vector<2x384xf32>
    %219 = math.exp %218 : vector<2x384xf32>
    %cst_65 = arith.constant 1.000000e+00 : f32
    %220 = vector.broadcast %cst_65 : f32 to vector<2x384xf32>
    %221 = arith.addf %220, %219 : vector<2x384xf32>
    %222 = arith.divf %220, %221 : vector<2x384xf32>
    %223 = vector.extract_strided_slice %222 {offsets = [0, 0], sizes = [2, 128], strides = [1, 1]} : vector<2x384xf32> to vector<2x128xf32>
    %224 = vector.extract_strided_slice %222 {offsets = [0, 128], sizes = [2, 128], strides = [1, 1]} : vector<2x384xf32> to vector<2x128xf32>
    %225 = vector.extract_strided_slice %222 {offsets = [0, 256], sizes = [2, 128], strides = [1, 1]} : vector<2x384xf32> to vector<2x128xf32>
    %226 = vector.extract_strided_slice %216 {offsets = [0, 384], sizes = [2, 128], strides = [1, 1]} : vector<2x512xf32> to vector<2x128xf32>
    %227 = math.tanh %226 : vector<2x128xf32>
    %228 = arith.mulf %224, %186 : vector<2x128xf32>
    %229 = arith.mulf %223, %227 : vector<2x128xf32>
    %230 = arith.addf %228, %229 : vector<2x128xf32>
    %231 = math.tanh %230 : vector<2x128xf32>
    %232 = arith.mulf %225, %231 : vector<2x128xf32>
    %233 = arith.truncf %232 : vector<2x128xf32> to vector<2x128xbf16>
    %c0_66 = arith.constant 0 : index
    %c0_67 = arith.constant 0 : index
    %234 = vector.load %arg5[%c0_66, %c0_67] : memref<128x512xbf16, #tpu.memory_space<vmem>>, vector<128x512xbf16>
    %cst_68 = arith.constant dense<0.000000e+00> : vector<2x512xf32>
    %235 = tpu.matmul %233, %234, %cst_68 {dimension_numbers = #tpu.dot_dimension_numbers<[1], [0], [0], [1], [0, 0, 1, 1], [], []>} : vector<2x128xbf16>, vector<128x512xbf16>, vector<2x512xf32> -> vector<2x512xf32>
    %236 = arith.truncf %211 : vector<2x128xf32> to vector<2x128xbf16>
    %c0_69 = arith.constant 0 : index
    %c0_70 = arith.constant 0 : index
    %237 = vector.load %arg3[%c0_69, %c0_70] : memref<128x512xbf16, #tpu.memory_space<vmem>>, vector<128x512xbf16>
    %cst_71 = arith.constant dense<0.000000e+00> : vector<2x512xf32>
    %238 = tpu.matmul %236, %237, %cst_71 {dimension_numbers = #tpu.dot_dimension_numbers<[1], [0], [0], [1], [0, 0, 1, 1], [], []>} : vector<2x128xbf16>, vector<128x512xbf16>, vector<2x512xf32> -> vector<2x512xf32>
    %239 = arith.addf %5, %238 : vector<2x512xf32>
    %240 = vector.extract_strided_slice %239 {offsets = [0, 0], sizes = [2, 384], strides = [1, 1]} : vector<2x512xf32> to vector<2x384xf32>
    %241 = arith.negf %240 : vector<2x384xf32>
    %242 = math.exp %241 : vector<2x384xf32>
    %cst_72 = arith.constant 1.000000e+00 : f32
    %243 = vector.broadcast %cst_72 : f32 to vector<2x384xf32>
    %244 = arith.addf %243, %242 : vector<2x384xf32>
    %245 = arith.divf %243, %244 : vector<2x384xf32>
    %246 = vector.extract_strided_slice %245 {offsets = [0, 0], sizes = [2, 128], strides = [1, 1]} : vector<2x384xf32> to vector<2x128xf32>
    %247 = vector.extract_strided_slice %245 {offsets = [0, 128], sizes = [2, 128], strides = [1, 1]} : vector<2x384xf32> to vector<2x128xf32>
    %248 = vector.extract_strided_slice %245 {offsets = [0, 256], sizes = [2, 128], strides = [1, 1]} : vector<2x384xf32> to vector<2x128xf32>
    %249 = vector.extract_strided_slice %239 {offsets = [0, 384], sizes = [2, 128], strides = [1, 1]} : vector<2x512xf32> to vector<2x128xf32>
    %250 = math.tanh %249 : vector<2x128xf32>
    %251 = arith.mulf %247, %209 : vector<2x128xf32>
    %252 = arith.mulf %246, %250 : vector<2x128xf32>
    %253 = arith.addf %251, %252 : vector<2x128xf32>
    %254 = math.tanh %253 : vector<2x128xf32>
    %255 = arith.mulf %248, %254 : vector<2x128xf32>
    %256 = arith.truncf %255 : vector<2x128xf32> to vector<2x128xbf16>
    %c0_73 = arith.constant 0 : index
    %c0_74 = arith.constant 0 : index
    %257 = vector.load %arg4[%c0_73, %c0_74] : memref<128x512xbf16, #tpu.memory_space<vmem>>, vector<128x512xbf16>
    %cst_75 = arith.constant dense<0.000000e+00> : vector<2x512xf32>
    %258 = tpu.matmul %256, %257, %cst_75 {dimension_numbers = #tpu.dot_dimension_numbers<[1], [0], [0], [1], [0, 0, 1, 1], [], []>} : vector<2x128xbf16>, vector<128x512xbf16>, vector<2x512xf32> -> vector<2x512xf32>
    %259 = arith.addf %258, %235 : vector<2x512xf32>
    %260 = arith.addf %259, %8 : vector<2x512xf32>
    %261 = vector.extract_strided_slice %260 {offsets = [0, 0], sizes = [2, 384], strides = [1, 1]} : vector<2x512xf32> to vector<2x384xf32>
    %262 = arith.negf %261 : vector<2x384xf32>
    %263 = math.exp %262 : vector<2x384xf32>
    %cst_76 = arith.constant 1.000000e+00 : f32
    %264 = vector.broadcast %cst_76 : f32 to vector<2x384xf32>
    %265 = arith.addf %264, %263 : vector<2x384xf32>
    %266 = arith.divf %264, %265 : vector<2x384xf32>
    %267 = vector.extract_strided_slice %266 {offsets = [0, 0], sizes = [2, 128], strides = [1, 1]} : vector<2x384xf32> to vector<2x128xf32>
    %268 = vector.extract_strided_slice %266 {offsets = [0, 128], sizes = [2, 128], strides = [1, 1]} : vector<2x384xf32> to vector<2x128xf32>
    %269 = vector.extract_strided_slice %266 {offsets = [0, 256], sizes = [2, 128], strides = [1, 1]} : vector<2x384xf32> to vector<2x128xf32>
    %270 = vector.extract_strided_slice %260 {offsets = [0, 384], sizes = [2, 128], strides = [1, 1]} : vector<2x512xf32> to vector<2x128xf32>
    %271 = math.tanh %270 : vector<2x128xf32>
    %272 = arith.mulf %268, %230 : vector<2x128xf32>
    %273 = arith.mulf %267, %271 : vector<2x128xf32>
    %274 = arith.addf %272, %273 : vector<2x128xf32>
    %275 = math.tanh %274 : vector<2x128xf32>
    %276 = arith.mulf %269, %275 : vector<2x128xf32>
    %277 = arith.truncf %276 : vector<2x128xf32> to vector<2x128xbf16>
    %c0_77 = arith.constant 0 : index
    %c0_78 = arith.constant 0 : index
    %278 = vector.load %arg5[%c0_77, %c0_78] : memref<128x512xbf16, #tpu.memory_space<vmem>>, vector<128x512xbf16>
    %cst_79 = arith.constant dense<0.000000e+00> : vector<2x512xf32>
    %279 = tpu.matmul %277, %278, %cst_79 {dimension_numbers = #tpu.dot_dimension_numbers<[1], [0], [0], [1], [0, 0, 1, 1], [], []>} : vector<2x128xbf16>, vector<128x512xbf16>, vector<2x512xf32> -> vector<2x512xf32>
    %280 = arith.truncf %255 : vector<2x128xf32> to vector<2x128xbf16>
    %c0_80 = arith.constant 0 : index
    %c0_81 = arith.constant 0 : index
    %281 = vector.load %arg3[%c0_80, %c0_81] : memref<128x512xbf16, #tpu.memory_space<vmem>>, vector<128x512xbf16>
    %cst_82 = arith.constant dense<0.000000e+00> : vector<2x512xf32>
    %282 = tpu.matmul %280, %281, %cst_82 {dimension_numbers = #tpu.dot_dimension_numbers<[1], [0], [0], [1], [0, 0, 1, 1], [], []>} : vector<2x128xbf16>, vector<128x512xbf16>, vector<2x512xf32> -> vector<2x512xf32>
    %283 = arith.addf %5, %282 : vector<2x512xf32>
    %284 = vector.extract_strided_slice %283 {offsets = [0, 0], sizes = [2, 384], strides = [1, 1]} : vector<2x512xf32> to vector<2x384xf32>
    %285 = arith.negf %284 : vector<2x384xf32>
    %286 = math.exp %285 : vector<2x384xf32>
    %cst_83 = arith.constant 1.000000e+00 : f32
    %287 = vector.broadcast %cst_83 : f32 to vector<2x384xf32>
    %288 = arith.addf %287, %286 : vector<2x384xf32>
    %289 = arith.divf %287, %288 : vector<2x384xf32>
    %290 = vector.extract_strided_slice %289 {offsets = [0, 0], sizes = [2, 128], strides = [1, 1]} : vector<2x384xf32> to vector<2x128xf32>
    %291 = vector.extract_strided_slice %289 {offsets = [0, 128], sizes = [2, 128], strides = [1, 1]} : vector<2x384xf32> to vector<2x128xf32>
    %292 = vector.extract_strided_slice %289 {offsets = [0, 256], sizes = [2, 128], strides = [1, 1]} : vector<2x384xf32> to vector<2x128xf32>
    %293 = vector.extract_strided_slice %283 {offsets = [0, 384], sizes = [2, 128], strides = [1, 1]} : vector<2x512xf32> to vector<2x128xf32>
    %294 = math.tanh %293 : vector<2x128xf32>
    %295 = arith.mulf %291, %253 : vector<2x128xf32>
    %296 = arith.mulf %290, %294 : vector<2x128xf32>
    %297 = arith.addf %295, %296 : vector<2x128xf32>
    %298 = math.tanh %297 : vector<2x128xf32>
    %299 = arith.mulf %292, %298 : vector<2x128xf32>
    %300 = arith.truncf %299 : vector<2x128xf32> to vector<2x128xbf16>
    %c0_84 = arith.constant 0 : index
    %c0_85 = arith.constant 0 : index
    %301 = vector.load %arg4[%c0_84, %c0_85] : memref<128x512xbf16, #tpu.memory_space<vmem>>, vector<128x512xbf16>
    %cst_86 = arith.constant dense<0.000000e+00> : vector<2x512xf32>
    %302 = tpu.matmul %300, %301, %cst_86 {dimension_numbers = #tpu.dot_dimension_numbers<[1], [0], [0], [1], [0, 0, 1, 1], [], []>} : vector<2x128xbf16>, vector<128x512xbf16>, vector<2x512xf32> -> vector<2x512xf32>
    %303 = arith.addf %302, %279 : vector<2x512xf32>
    %304 = arith.addf %303, %8 : vector<2x512xf32>
    %305 = vector.extract_strided_slice %304 {offsets = [0, 0], sizes = [2, 384], strides = [1, 1]} : vector<2x512xf32> to vector<2x384xf32>
    %306 = arith.negf %305 : vector<2x384xf32>
    %307 = math.exp %306 : vector<2x384xf32>
    %cst_87 = arith.constant 1.000000e+00 : f32
    %308 = vector.broadcast %cst_87 : f32 to vector<2x384xf32>
    %309 = arith.addf %308, %307 : vector<2x384xf32>
    %310 = arith.divf %308, %309 : vector<2x384xf32>
    %311 = vector.extract_strided_slice %310 {offsets = [0, 0], sizes = [2, 128], strides = [1, 1]} : vector<2x384xf32> to vector<2x128xf32>
    %312 = vector.extract_strided_slice %310 {offsets = [0, 128], sizes = [2, 128], strides = [1, 1]} : vector<2x384xf32> to vector<2x128xf32>
    %313 = vector.extract_strided_slice %310 {offsets = [0, 256], sizes = [2, 128], strides = [1, 1]} : vector<2x384xf32> to vector<2x128xf32>
    %314 = vector.extract_strided_slice %304 {offsets = [0, 384], sizes = [2, 128], strides = [1, 1]} : vector<2x512xf32> to vector<2x128xf32>
    %315 = math.tanh %314 : vector<2x128xf32>
    %316 = arith.mulf %312, %274 : vector<2x128xf32>
    %317 = arith.mulf %311, %315 : vector<2x128xf32>
    %318 = arith.addf %316, %317 : vector<2x128xf32>
    %319 = math.tanh %318 : vector<2x128xf32>
    %320 = arith.mulf %313, %319 : vector<2x128xf32>
    %321 = arith.truncf %320 : vector<2x128xf32> to vector<2x128xbf16>
    %c0_88 = arith.constant 0 : index
    %c0_89 = arith.constant 0 : index
    %322 = vector.load %arg5[%c0_88, %c0_89] : memref<128x512xbf16, #tpu.memory_space<vmem>>, vector<128x512xbf16>
    %cst_90 = arith.constant dense<0.000000e+00> : vector<2x512xf32>
    %323 = tpu.matmul %321, %322, %cst_90 {dimension_numbers = #tpu.dot_dimension_numbers<[1], [0], [0], [1], [0, 0, 1, 1], [], []>} : vector<2x128xbf16>, vector<128x512xbf16>, vector<2x512xf32> -> vector<2x512xf32>
    %324 = arith.truncf %299 : vector<2x128xf32> to vector<2x128xbf16>
    %c0_91 = arith.constant 0 : index
    %c0_92 = arith.constant 0 : index
    %325 = vector.load %arg3[%c0_91, %c0_92] : memref<128x512xbf16, #tpu.memory_space<vmem>>, vector<128x512xbf16>
    %cst_93 = arith.constant dense<0.000000e+00> : vector<2x512xf32>
    %326 = tpu.matmul %324, %325, %cst_93 {dimension_numbers = #tpu.dot_dimension_numbers<[1], [0], [0], [1], [0, 0, 1, 1], [], []>} : vector<2x128xbf16>, vector<128x512xbf16>, vector<2x512xf32> -> vector<2x512xf32>
    %327 = arith.addf %5, %326 : vector<2x512xf32>
    %328 = vector.extract_strided_slice %327 {offsets = [0, 0], sizes = [2, 384], strides = [1, 1]} : vector<2x512xf32> to vector<2x384xf32>
    %329 = arith.negf %328 : vector<2x384xf32>
    %330 = math.exp %329 : vector<2x384xf32>
    %cst_94 = arith.constant 1.000000e+00 : f32
    %331 = vector.broadcast %cst_94 : f32 to vector<2x384xf32>
    %332 = arith.addf %331, %330 : vector<2x384xf32>
    %333 = arith.divf %331, %332 : vector<2x384xf32>
    %334 = vector.extract_strided_slice %333 {offsets = [0, 0], sizes = [2, 128], strides = [1, 1]} : vector<2x384xf32> to vector<2x128xf32>
    %335 = vector.extract_strided_slice %333 {offsets = [0, 128], sizes = [2, 128], strides = [1, 1]} : vector<2x384xf32> to vector<2x128xf32>
    %336 = vector.extract_strided_slice %333 {offsets = [0, 256], sizes = [2, 128], strides = [1, 1]} : vector<2x384xf32> to vector<2x128xf32>
    %337 = vector.extract_strided_slice %327 {offsets = [0, 384], sizes = [2, 128], strides = [1, 1]} : vector<2x512xf32> to vector<2x128xf32>
    %338 = math.tanh %337 : vector<2x128xf32>
    %339 = arith.mulf %335, %297 : vector<2x128xf32>
    %340 = arith.mulf %334, %338 : vector<2x128xf32>
    %341 = arith.addf %339, %340 : vector<2x128xf32>
    %342 = math.tanh %341 : vector<2x128xf32>
    %343 = arith.mulf %336, %342 : vector<2x128xf32>
    %344 = arith.truncf %343 : vector<2x128xf32> to vector<2x128xbf16>
    %c0_95 = arith.constant 0 : index
    %c0_96 = arith.constant 0 : index
    %345 = vector.load %arg4[%c0_95, %c0_96] : memref<128x512xbf16, #tpu.memory_space<vmem>>, vector<128x512xbf16>
    %cst_97 = arith.constant dense<0.000000e+00> : vector<2x512xf32>
    %346 = tpu.matmul %344, %345, %cst_97 {dimension_numbers = #tpu.dot_dimension_numbers<[1], [0], [0], [1], [0, 0, 1, 1], [], []>} : vector<2x128xbf16>, vector<128x512xbf16>, vector<2x512xf32> -> vector<2x512xf32>
    %347 = arith.addf %346, %323 : vector<2x512xf32>
    %348 = arith.addf %347, %8 : vector<2x512xf32>
    %349 = vector.extract_strided_slice %348 {offsets = [0, 0], sizes = [2, 384], strides = [1, 1]} : vector<2x512xf32> to vector<2x384xf32>
    %350 = arith.negf %349 : vector<2x384xf32>
    %351 = math.exp %350 : vector<2x384xf32>
    %cst_98 = arith.constant 1.000000e+00 : f32
    %352 = vector.broadcast %cst_98 : f32 to vector<2x384xf32>
    %353 = arith.addf %352, %351 : vector<2x384xf32>
    %354 = arith.divf %352, %353 : vector<2x384xf32>
    %355 = vector.extract_strided_slice %354 {offsets = [0, 0], sizes = [2, 128], strides = [1, 1]} : vector<2x384xf32> to vector<2x128xf32>
    %356 = vector.extract_strided_slice %354 {offsets = [0, 128], sizes = [2, 128], strides = [1, 1]} : vector<2x384xf32> to vector<2x128xf32>
    %357 = vector.extract_strided_slice %354 {offsets = [0, 256], sizes = [2, 128], strides = [1, 1]} : vector<2x384xf32> to vector<2x128xf32>
    %358 = vector.extract_strided_slice %348 {offsets = [0, 384], sizes = [2, 128], strides = [1, 1]} : vector<2x512xf32> to vector<2x128xf32>
    %359 = math.tanh %358 : vector<2x128xf32>
    %360 = arith.mulf %356, %318 : vector<2x128xf32>
    %361 = arith.mulf %355, %359 : vector<2x128xf32>
    %362 = arith.addf %360, %361 : vector<2x128xf32>
    %363 = math.tanh %362 : vector<2x128xf32>
    %364 = arith.mulf %357, %363 : vector<2x128xf32>
    %365 = vector.shape_cast %56 : vector<2x128xf32> to vector<1x2x128xf32>
    %366 = vector.shape_cast %100 : vector<2x128xf32> to vector<1x2x128xf32>
    %367 = vector.shape_cast %144 : vector<2x128xf32> to vector<1x2x128xf32>
    %368 = vector.shape_cast %188 : vector<2x128xf32> to vector<1x2x128xf32>
    %369 = vector.shape_cast %232 : vector<2x128xf32> to vector<1x2x128xf32>
    %370 = vector.shape_cast %276 : vector<2x128xf32> to vector<1x2x128xf32>
    %371 = vector.shape_cast %320 : vector<2x128xf32> to vector<1x2x128xf32>
    %372 = vector.shape_cast %364 : vector<2x128xf32> to vector<1x2x128xf32>
    %373 = tpu.concatenate %365, %366, %367, %368, %369, %370, %371, %372 in 0 : vector<1x2x128xf32>, vector<1x2x128xf32>, vector<1x2x128xf32>, vector<1x2x128xf32>, vector<1x2x128xf32>, vector<1x2x128xf32>, vector<1x2x128xf32>, vector<1x2x128xf32> -> vector<8x2x128xf32>
    %c0_99 = arith.constant 0 : index
    %c0_100 = arith.constant 0 : index
    %c0_101 = arith.constant 0 : index
    %374 = vector.load %arg7[%c0_99, %c0_100, %c0_101] : memref<8x2x128xf32, #tpu.memory_space<vmem>>, vector<8x2x128xf32>
    tpu.vector_store %arg7[%c0_99, %c0_100, %c0_101], %373 {strides = array<i32>} : memref<8x2x128xf32, #tpu.memory_space<vmem>>, vector<8x2x128xf32>,
    return
  }
}

</mosaic_0001>

<bundles_post_ra>
// kernel: decoder_forward.1
= control target key start
LH: loop header
LB: loop body
LE: loop exit
PB: predicated region body
PF: predicated region fallthrough
CT: control target
= control target key end

     0   :  { %12 = vsyncpa [#allocation3], 0  ;;  %s5960_s0 = inlined_call_operand.hbm [shape: f32[2,16], index: 0, kind: input, shape index: {}]   ;;  %s5961_s1 = inlined_call_operand.hbm [shape: f32[16,512], index: 1, kind: input, shape index: {}]   ;;  %s5962_s2 = inlined_call_operand.vmem [shape: f32[1,512], index: 2, kind: input, shape index: {}]   ;;  %s5963_s3 = inlined_call_operand.hbm [shape: bf16[128,512], index: 3, kind: input, shape index: {}]   ;;  %s5964_s4 = inlined_call_operand.hbm [shape: bf16[128,512], index: 4, kind: input, shape index: {}]   ;;  %s5965_s5 = inlined_call_operand.hbm [shape: bf16[128,512], index: 5, kind: input, shape index: {}]   ;;  %s5966_s6 = inlined_call_operand.vmem [shape: f32[1,512], index: 6, kind: input, shape index: {}]   ;;  %s5967_s7 = inlined_call_operand.vmem [shape: f32[8,2,128], index: 7, kind: output, shape index: {}]  }
   0x1   :  { %13 = vsyncpa [#allocation5], 0 }
   0x2   :  { %14 = vsyncpa [#allocation8], 0  ;;  %s4169_s24 = smov [#allocation4]  }
   0x3   :  { %s30_s25 = sshll.u32 %s4169_s24, 4  ;;  %s31_s25 = int_to_ptr.vmem [resolvable:$true] %s30_s25 }
   0x4   :  { %s4071_s26 = scalar_lea.vmem %s31_s25, 1024  ;;  %p4076_p1 = scmp.lt.s32.totalorder %s31_s25, %s31_s25 }
   0x5   :  { %p4072_p0 = scmp.ne.s32.totalorder %s31_s25, %s4071_s26  ;;  %p4077_p2 = scmp.lt.s32.totalorder %s4071_s26, %s4071_s26 }
   0x7   :  { %p4078_p3 = por %p4077_p2, %p4076_p1 }
   0x9   :  { %p4079_p4 = pnand %p4078_p3, %p4072_p0 }
   0xb   :  { %4082 = shalt.err (!%p4079_p4)
}
   0xc   :  { %s4170_s27 = smov 512   ;;  %s4171_s28 = smov 32  }
   0xd   :  { %36 = dma.hbm_to_vmem [thread:$0]  %s5961_s1, 1024, %s31_s25, [#allocation5], %s4170_s27, %s4170_s27, %s4171_s28  }
   0xe   :  { %s4172_s8 = smov [#allocation7]   ;;  %s4173_s10 = smov [#allocation2]  }
   0xf   :  { %s56_s9 = sshll.u32 %s4172_s8, 4  ;;  %s21_s11 = sshll.u32 %s4173_s10, 4  ;;  %s57_s9 = int_to_ptr.vmem [resolvable:$true] %s56_s9  ;;  %s22_s11 = int_to_ptr.vmem [resolvable:$true] %s21_s11 }
  0x10   :  { %s4091_s12 = scalar_lea.vmem %s57_s9, 4096  ;;  %p4096_p6 = scmp.lt.s32.totalorder %s57_s9, %s57_s9 }
  0x11   :  { %p4092_p5 = scmp.ne.s32.totalorder %s57_s9, %s4091_s12  ;;  %p4097_p7 = scmp.lt.s32.totalorder %s4091_s12, %s4091_s12 }
  0x13   :  { %p4098_p8 = por %p4097_p7, %p4096_p6 }
  0x15   :  { %p4099_p9 = pnand %p4098_p8, %p4092_p5 }
  0x17   :  { %4102 = shalt.err (!%p4099_p9)
}
  0x18   :  { %s4174_s13 = smov 256   ;;  %s4175_s14 = smov 16  }
  0x19   :  { %62 = dma.hbm_to_vmem [thread:$0]  %s5964_s4, 4096, %s57_s9, [#allocation8], %s4174_s13, %s4174_s13, %s4175_s14  }
  0x1a   :  { %s4111_s1 = scalar_lea.vmem %s22_s11, 32  ;;  %p4116_p11 = scmp.lt.s32.totalorder %s22_s11, %s22_s11 }
  0x1b   :  { %p4112_p10 = scmp.ne.s32.totalorder %s22_s11, %s4111_s1  ;;  %p4117_p12 = scmp.lt.s32.totalorder %s4111_s1, %s4111_s1 }
  0x1d   :  { %p4118_p13 = por %p4117_p12, %p4116_p11 }
  0x1f   :  { %p4119_p0 = pnand %p4118_p13, %p4112_p10 }
  0x21   :  { %4122 = shalt.err (!%p4119_p0)
}
  0x22   :  { %24 = dma.hbm_to_vmem [thread:$0]  %s5960_s0, 32, %s22_s11, [#allocation3]  }
  0x23   :  { %s4176_s19 = smov [#allocation6]   ;;  %s4177_s21 = smov [#allocation9]  }
  0x24   :  { %s44_s20 = sshll.u32 %s4176_s19, 4  ;;  %s68_s22 = sshll.u32 %s4177_s21, 4  ;;  %s45_s20 = int_to_ptr.vmem [resolvable:$true] %s44_s20  ;;  %s69_s22 = int_to_ptr.vmem [resolvable:$true] %s68_s22 }
  0x25   :  { %s4131_s23 = scalar_lea.vmem %s45_s20, 4096  ;;  %p4136_p2 = scmp.lt.s32.totalorder %s45_s20, %s45_s20 }
  0x26   :  { %p4132_p1 = scmp.ne.s32.totalorder %s45_s20, %s4131_s23  ;;  %p4137_p3 = scmp.lt.s32.totalorder %s4131_s23, %s4131_s23 }
  0x28   :  { %p4138_p4 = por %p4137_p3, %p4136_p2 }
  0x2a   :  { %p4139_p5 = pnand %p4138_p4, %p4132_p1 }
  0x2c   :  { %4142 = shalt.err (!%p4139_p5)
}
  0x2d   :  { %50 = dma.hbm_to_vmem [thread:$0]  %s5963_s3, 4096, %s45_s20, [#allocation5], %s4174_s13, %s4174_s13, %s4175_s14  }
  0x2e   :  { %s4151_s0 = scalar_lea.vmem %s69_s22, 4096  ;;  %p4156_p7 = scmp.lt.s32.totalorder %s69_s22, %s69_s22 }
  0x2f   :  { %p4152_p6 = scmp.ne.s32.totalorder %s69_s22, %s4151_s0  ;;  %p4157_p8 = scmp.lt.s32.totalorder %s4151_s0, %s4151_s0 }
  0x31   :  { %p4158_p9 = por %p4157_p8, %p4156_p7 }
  0x33   :  { %p4159_p10 = pnand %p4158_p9, %p4152_p6 }
  0x35   :  { %4162 = shalt.err (!%p4159_p10)
}
  0x36   :  { %74 = dma.hbm_to_vmem [thread:$0]  %s5965_s5, 4096, %s69_s22, [#allocation8], %s4174_s13, %s4174_s13, %s4175_s14  }
  0x37   :  { %4163 = dma.done.wait [#allocation3], 32  }
  0x38   :  { %4164 = vsyncadd [#allocation3], 4294967264 }
  0x39   :  { %4165 = dma.done.wait [#allocation5], 5120  }
  0x3a   :  { %4166 = vsyncadd [#allocation5], 4294962176 }
  0x3b   :  { %4167 = dma.done.wait [#allocation8], 8192  }
  0x3c   :  { %4168 = vsyncadd [#allocation8], 4294959104  ;;  %v4178_v0 = vmov 0.0   ;;  %v99_v1 = vld [vmem:[#allocation4 + $0x28] sm:$0xff]  ;;  %v101_v2 = vld [vmem:[#allocation4 + $0x38] sm:$0xff]  ;;  %vm124_vm0 = vcmask 130048  }
  0x3d   :  { %192 = vmatprep.mubr.f32.mxu0 %v4178_v0  ;;  %263 = vmatprep.mubr.f32.mxu1 %v4178_v0  ;;  %v98_v3 = vld [vmem:[#allocation4 + $0x20] sm:$0xff]  ;;  %v100_v4 = vld [vmem:[#allocation4 + $0x30] sm:$0xff]  ;;  %v95_v5 = vld [vmem:[#allocation4 + $0x8] sm:$0xff]  ;;  %v5968_v18 = vmov 0  }
  0x3e   :  { %156 = vmatprep.subr.mxu0 %v99_v1  ;;  %227 = vmatprep.subr.mxu1 %v101_v2  ;;  %v97_v6 = vld [vmem:[#allocation4 + $0x18] sm:$0xff]  ;;  %v94_v7 = vld [vmem:[#allocation4] sm:$0xff]  ;;  %v96_v8 = vld [vmem:[#allocation4 + $0x10] sm:$0xff] }
  0x3f   :  { %157 = vmatpush1.msra.mxu0 %v98_v3  ;;  %228 = vmatpush1.msra.mxu1 %v100_v4  ;;  %v93_v9 = vld [vmem:[#allocation2] sm:$0x3]  ;;  %v4244_v10 = vld [vmem:[#allocation9 + $0xe4] ss:$16 sps:$4 sm:$0xff]   ;;  %v4249_v12 = vld [vmem:[#allocation9 + $0xe0] ss:$16 sps:$4 sm:$0xff]  }
  0x40   :  { %158 = vmatprep.subr.mxu0 %v95_v5  ;;  %229 = vmatprep.subr.mxu1 %v97_v6  ;;  %v4246_v11 = vld [vmem:[#allocation9 + $0xec] ss:$16 sps:$4 sm:$0xff]   ;;  %v4251_v13 = vld [vmem:[#allocation9 + $0xe8] ss:$16 sps:$4 sm:$0xff]   ;;  %v4254_v14 = vld [vmem:[#allocation9 + $0xc4] ss:$16 sps:$4 sm:$0xff]  }
  0x41   :  { %159 = vmatpush1.msra.mxu0 %v94_v7  ;;  %230 = vmatpush1.msra.mxu1 %v96_v8  ;;  %v4258_v15 = vld [vmem:[#allocation9 + $0xcc] ss:$16 sps:$4 sm:$0xff]   ;;  %v4260_v16 = vld [vmem:[#allocation9 + $0xc0] ss:$16 sps:$4 sm:$0xff]   ;;  %v4263_v17 = vld [vmem:[#allocation9 + $0xc8] ss:$16 sps:$4 sm:$0xff]  }
  0x42   :  { %3314 = vmatmul.mubr.msk.f32.vlgmr.msra.gmra.mxu0 %vm124_vm0, %v93_v9  ;;  %484 = vmatprep.subr.bf16.mxu0 %v4244_v10  ;;  %v4267_v19 = vld [vmem:[#allocation9 + $0xa4] ss:$16 sps:$4 sm:$0xff]   ;;  %v4270_v20 = vld [vmem:[#allocation9 + $0xac] ss:$16 sps:$4 sm:$0xff]   ;;  %v4272_v21 = vld [vmem:[#allocation9 + $0xa0] ss:$16 sps:$4 sm:$0xff]  }
  0x43   :  { %525 = vmatprep.subr.bf16.mxu1 %v4246_v11  ;;  %3315 = vmatmul.mubr.msk.f32.vlgmr.msra.gmra.mxu1 %vm124_vm0, %v93_v9  ;;  %v4274_v22 = vld [vmem:[#allocation9 + $0xa8] ss:$16 sps:$4 sm:$0xff]   ;;  %v4278_v23 = vld [vmem:[#allocation9 + $0x84] ss:$16 sps:$4 sm:$0xff]   ;;  %v4282_v24 = vld [vmem:[#allocation9 + $0x8c] ss:$16 sps:$4 sm:$0xff]  }
  0x44   :  { %485 = vmatpush1.bf16.msra.mxu0 %v4249_v12  ;;  %526 = vmatpush1.bf16.msra.mxu1 %v4251_v13  ;;  %v4284_v25 = vld [vmem:[#allocation9 + $0x80] ss:$16 sps:$4 sm:$0xff]   ;;  %v4288_v26 = vld [vmem:[#allocation9 + $0x88] ss:$16 sps:$4 sm:$0xff]   ;;  %v4290_v27 = vld [vmem:[#allocation9 + $0x64] ss:$16 sps:$4 sm:$0xff]  }
  0x45   :  { %486 = vmatprep.subr.bf16.mxu0 %v4254_v14  ;;  %516 = vmatprep.mubr.bf16.mxu0 %v5968_v18  ;;  %v4294_v28 = vld [vmem:[#allocation9 + $0x6c] ss:$16 sps:$4 sm:$0xff]   ;;  %v4296_v29 = vld [vmem:[#allocation9 + $0x60] ss:$16 sps:$4 sm:$0xff]   ;;  %v4298_v30 = vld [vmem:[#allocation9 + $0x68] ss:$16 sps:$4 sm:$0xff]  }
  0x46   :  { %527 = vmatprep.subr.bf16.mxu1 %v4258_v15  ;;  %557 = vmatprep.mubr.bf16.mxu1 %v5968_v18  ;;  %v4302_v31 = vld [vmem:[#allocation9 + $0x44] ss:$16 sps:$4 sm:$0xff]   ;;  %v4306_v32 = vld [vmem:[#allocation9 + $0x4c] ss:$16 sps:$4 sm:$0xff]   ;;  %v4308_v33 = vld [vmem:[#allocation9 + $0x40] ss:$16 sps:$4 sm:$0xff]  }
  0x47   :  { %v4312_v34 = vld [vmem:[#allocation9 + $0x48] ss:$16 sps:$4 sm:$0xff]   ;;  %v4314_v35 = vld [vmem:[#allocation9 + $0x24] ss:$16 sps:$4 sm:$0xff]   ;;  %v4318_v36 = vld [vmem:[#allocation9 + $0x2c] ss:$16 sps:$4 sm:$0xff]  }
  0x48   :  { %487 = vmatpush1.bf16.msra.mxu0 %v4260_v16  ;;  %528 = vmatpush1.bf16.msra.mxu1 %v4263_v17  ;;  %v4320_v37 = vld [vmem:[#allocation9 + $0x20] ss:$16 sps:$4 sm:$0xff]   ;;  %v4322_v38 = vld [vmem:[#allocation9 + $0x28] ss:$16 sps:$4 sm:$0xff]   ;;  %v4326_v39 = vld [vmem:[#allocation9 + $0x4] ss:$16 sps:$4 sm:$0xff]  }
  0x49   :  { %488 = vmatprep.subr.bf16.mxu0 %v4267_v19  ;;  %529 = vmatprep.subr.bf16.mxu1 %v4270_v20  ;;  %v4330_v40 = vld [vmem:[#allocation9 + $0xc] ss:$16 sps:$4 sm:$0xff]   ;;  %v4332_v41 = vld [vmem:[#allocation9] ss:$16 sps:$4 sm:$0xff]   ;;  %v4336_v42 = vld [vmem:[#allocation9 + $0x8] ss:$16 sps:$4 sm:$0xff]  }
  0x4a   :  { %v4338_v43 = vld [vmem:[#allocation6 + $0xe4] ss:$16 sps:$4 sm:$0xff]   ;;  %v4342_v44 = vld [vmem:[#allocation6 + $0xec] ss:$16 sps:$4 sm:$0xff]   ;;  %v4344_v45 = vld [vmem:[#allocation6 + $0xe0] ss:$16 sps:$4 sm:$0xff]  }
  0x4b   :  { %v4346_v46 = vld [vmem:[#allocation6 + $0xe8] ss:$16 sps:$4 sm:$0xff]   ;;  %v4350_v47 = vld [vmem:[#allocation6 + $0xc4] ss:$16 sps:$4 sm:$0xff]   ;;  %v4354_v48 = vld [vmem:[#allocation6 + $0xcc] ss:$16 sps:$4 sm:$0xff]  }
  0x4c   :  { %489 = vmatpush1.bf16.msra.mxu0 %v4272_v21  ;;  %530 = vmatpush1.bf16.msra.mxu1 %v4274_v22  ;;  %v4358_v49 = vld [vmem:[#allocation6 + $0xc0] ss:$16 sps:$4 sm:$0xff]   ;;  %v4362_v50 = vld [vmem:[#allocation6 + $0xc8] ss:$16 sps:$4 sm:$0xff]   ;;  %v4364_v51 = vld [vmem:[#allocation6 + $0xa4] ss:$16 sps:$4 sm:$0xff]  }
  0x4d   :  { %490 = vmatprep.subr.bf16.mxu0 %v4278_v23  ;;  %531 = vmatprep.subr.bf16.mxu1 %v4282_v24  ;;  %6335 = vst [vmem:[#allocation13_spill] sm:$0xff] %v4362_v50  ;;  %6336 = vst [vmem:[#allocation14_spill] sm:$0xff] %v4364_v51  ;;  %v4368_v52 = vld [vmem:[#allocation6 + $0xac] ss:$16 sps:$4 sm:$0xff]   ;;  %v4372_v53 = vld [vmem:[#allocation6 + $0xa0] ss:$16 sps:$4 sm:$0xff]  }
  0x4e   :  { %6337 = vst [vmem:[#allocation15_spill] sm:$0xff] %v4368_v52  ;;  %6338 = vst [vmem:[#allocation16_spill] sm:$0xff] %v4372_v53  ;;  %v4374_v54 = vld [vmem:[#allocation6 + $0xa8] ss:$16 sps:$4 sm:$0xff]   ;;  %v4378_v55 = vld [vmem:[#allocation6 + $0x84] ss:$16 sps:$4 sm:$0xff]  }
  0x4f   :  { %6339 = vst [vmem:[#allocation17_spill] sm:$0xff] %v4374_v54  ;;  %6340 = vst [vmem:[#allocation18_spill] sm:$0xff] %v4378_v55  ;;  %v4382_v56 = vld [vmem:[#allocation6 + $0x8c] ss:$16 sps:$4 sm:$0xff]   ;;  %v4384_v57 = vld [vmem:[#allocation6 + $0x80] ss:$16 sps:$4 sm:$0xff]  }
  0x50   :  { %491 = vmatpush1.bf16.msra.mxu0 %v4284_v25  ;;  %532 = vmatpush1.bf16.msra.mxu1 %v4288_v26  ;;  %6341 = vst [vmem:[#allocation19_spill] sm:$0xff] %v4382_v56  ;;  %6342 = vst [vmem:[#allocation20_spill] sm:$0xff] %v4384_v57  ;;  %v4386_v58 = vld [vmem:[#allocation6 + $0x88] ss:$16 sps:$4 sm:$0xff]   ;;  %v4388_v59 = vld [vmem:[#allocation6 + $0x64] ss:$16 sps:$4 sm:$0xff]  }
  0x51   :  { %492 = vmatprep.subr.bf16.mxu0 %v4290_v27  ;;  %533 = vmatprep.subr.bf16.mxu1 %v4294_v28  ;;  %6343 = vst [vmem:[#allocation21_spill] sm:$0xff] %v4386_v58  ;;  %6344 = vst [vmem:[#allocation22_spill] sm:$0xff] %v4388_v59  ;;  %v4390_v60 = vld [vmem:[#allocation6 + $0x6c] ss:$16 sps:$4 sm:$0xff]   ;;  %v4396_v61 = vld [vmem:[#allocation6 + $0x60] ss:$16 sps:$4 sm:$0xff]  }
  0x52   :  { %6345 = vst [vmem:[#allocation23_spill] sm:$0xff] %v4390_v60  ;;  %6346 = vst [vmem:[#allocation24_spill] sm:$0xff] %v4396_v61  ;;  %v4398_v62 = vld [vmem:[#allocation6 + $0x68] ss:$16 sps:$4 sm:$0xff]   ;;  %v4400_v63 = vld [vmem:[#allocation6 + $0x44] ss:$16 sps:$4 sm:$0xff]  }
  0x53   :  { %6347 = vst [vmem:[#allocation25_spill] sm:$0xff] %v4398_v62  ;;  %6348 = vst [vmem:[#allocation26_spill] sm:$0xff] %v4400_v63  ;;  %v4402_v0 = vld [vmem:[#allocation6 + $0x4c] ss:$16 sps:$4 sm:$0xff]   ;;  %v4408_v1 = vld [vmem:[#allocation6 + $0x40] ss:$16 sps:$4 sm:$0xff]  }
  0x54   :  { %493 = vmatpush1.bf16.msra.mxu0 %v4296_v29  ;;  %534 = vmatpush1.bf16.msra.mxu1 %v4298_v30  ;;  %6349 = vst [vmem:[#allocation27_spill] sm:$0xff] %v4402_v0  ;;  %6350 = vst [vmem:[#allocation28_spill] sm:$0xff] %v4408_v1  ;;  %v4410_v2 = vld [vmem:[#allocation6 + $0x48] ss:$16 sps:$4 sm:$0xff]   ;;  %v4412_v3 = vld [vmem:[#allocation6 + $0x24] ss:$16 sps:$4 sm:$0xff]  }
  0x55   :  { %494 = vmatprep.subr.bf16.mxu0 %v4302_v31  ;;  %535 = vmatprep.subr.bf16.mxu1 %v4306_v32  ;;  %6351 = vst [vmem:[#allocation29_spill] sm:$0xff] %v4410_v2  ;;  %6352 = vst [vmem:[#allocation30_spill] sm:$0xff] %v4412_v3  ;;  %v4418_v4 = vld [vmem:[#allocation6 + $0x2c] ss:$16 sps:$4 sm:$0xff]   ;;  %v4422_v5 = vld [vmem:[#allocation6 + $0x20] ss:$16 sps:$4 sm:$0xff]  }
  0x56   :  { %6353 = vst [vmem:[#allocation31_spill] sm:$0xff] %v4418_v4  ;;  %6354 = vst [vmem:[#allocation32_spill] sm:$0xff] %v4422_v5  ;;  %v4424_v6 = vld [vmem:[#allocation6 + $0x28] ss:$16 sps:$4 sm:$0xff]   ;;  %v4428_v7 = vld [vmem:[#allocation6 + $0x4] ss:$16 sps:$4 sm:$0xff]  }
  0x57   :  { %6355 = vst [vmem:[#allocation33_spill] sm:$0xff] %v4424_v6  ;;  %6356 = vst [vmem:[#allocation34_spill] sm:$0xff] %v4428_v7  ;;  %v4430_v8 = vld [vmem:[#allocation6 + $0xc] ss:$16 sps:$4 sm:$0xff]   ;;  %v4434_v9 = vld [vmem:[#allocation6] ss:$16 sps:$4 sm:$0xff]  }
  0x58   :  { %495 = vmatpush1.bf16.msra.mxu0 %v4308_v33  ;;  %536 = vmatpush1.bf16.msra.mxu1 %v4312_v34  ;;  %6357 = vst [vmem:[#allocation35_spill] sm:$0xff] %v4430_v8  ;;  %6358 = vst [vmem:[#allocation36_spill] sm:$0xff] %v4434_v9 }
  0x59   :  { %496 = vmatprep.subr.bf16.mxu0 %v4314_v35  ;;  %537 = vmatprep.subr.bf16.mxu1 %v4318_v36 }
  0x5c   :  { %497 = vmatpush1.bf16.msra.mxu0 %v4320_v37  ;;  %538 = vmatpush1.bf16.msra.mxu1 %v4322_v38 }
  0x5d   :  { %498 = vmatprep.subr.bf16.mxu0 %v4326_v39  ;;  %539 = vmatprep.subr.bf16.mxu1 %v4330_v40 }
  0x60   :  { %499 = vmatpush1.bf16.msra.mxu0 %v4332_v41  ;;  %540 = vmatpush1.bf16.msra.mxu1 %v4336_v42 }
  0x61   :  { %758 = vmatprep.subr.bf16.mxu0 %v4338_v43  ;;  %799 = vmatprep.subr.bf16.mxu1 %v4342_v44 }
  0x63   :  { %517 = vmatmul.mubr.bf16.vlgmr.msra.gmra.mxu0 %v5968_v18  ;;  %558 = vmatmul.mubr.bf16.vlgmr.msra.gmra.mxu1 %v5968_v18 }
  0x64   :  { %759 = vmatpush1.bf16.msra.mxu0 %v4344_v45  ;;  %800 = vmatpush1.bf16.msra.mxu1 %v4346_v46 }
  0x65   :  { %760 = vmatprep.subr.bf16.mxu0 %v4350_v47  ;;  %801 = vmatprep.subr.bf16.mxu1 %v4354_v48 }
  0x66   :  { %790 = vmatprep.mubr.bf16.mxu0 %v5968_v18  ;;  %831 = vmatprep.mubr.bf16.mxu1 %v5968_v18  ;;  %v4436_v18 = vld [vmem:[#allocation6 + $0x8] ss:$16 sps:$4 sm:$0xff]  }
  0x67   :  { %6359 = vst [vmem:[#allocation37_spill] sm:$0xff] %v4436_v18 }
  0x68   :  { %761 = vmatpush1.bf16.msra.mxu0 %v4358_v49  ;;  %802 = vmatpush1.bf16.msra.mxu1 %v4362_v50 }
  0x69   :  { %762 = vmatprep.subr.bf16.mxu0 %v4364_v51  ;;  %803 = vmatprep.subr.bf16.mxu1 %v4368_v52 }
  0x6c   :  { %763 = vmatpush1.bf16.msra.mxu0 %v4372_v53  ;;  %804 = vmatpush1.bf16.msra.mxu1 %v4374_v54 }
  0x6d   :  { %764 = vmatprep.subr.bf16.mxu0 %v4378_v55  ;;  %805 = vmatprep.subr.bf16.mxu1 %v4382_v56 }
  0x70   :  { %765 = vmatpush1.bf16.msra.mxu0 %v4384_v57  ;;  %806 = vmatpush1.bf16.msra.mxu1 %v4386_v58 }
  0x71   :  { %766 = vmatprep.subr.bf16.mxu0 %v4388_v59  ;;  %807 = vmatprep.subr.bf16.mxu1 %v4390_v60  ;;  %v102_v60 = vld [vmem:[%s5962_s2] sm:$0xf] }
  0x74   :  { %767 = vmatpush1.bf16.msra.mxu0 %v4396_v61  ;;  %808 = vmatpush1.bf16.msra.mxu1 %v4398_v62  ;;  %v104_v61 = vlaneseq }
  0x75   :  { %768 = vmatprep.subr.bf16.mxu0 %v4400_v63  ;;  %809 = vmatprep.subr.bf16.mxu1 %v4402_v0  ;;  %v4506_v0 = vld [vmem:[#allocation7 + $0x4c] ss:$16 sps:$4 sm:$0xff]  }
  0x76   :  { %6382 = vst [vmem:[#allocation59_spill] sm:$0xff] %v4506_v0 }
  0x78   :  { %769 = vmatpush1.bf16.msra.mxu0 %v4408_v1  ;;  %810 = vmatpush1.bf16.msra.mxu1 %v4410_v2  ;;  %v4464_v2 = vld [vmem:[#allocation7 + $0xc8] ss:$16 sps:$4 sm:$0xff]   ;;  %v4490_v1 = vld [vmem:[#allocation7 + $0x64] ss:$16 sps:$4 sm:$0xff]  }
  0x79   :  { %770 = vmatprep.subr.bf16.mxu0 %v4412_v3  ;;  %811 = vmatprep.subr.bf16.mxu1 %v4418_v4  ;;  %v6360_v4 = vmov 0   ;;  %v4450_v3 = vld [vmem:[#allocation7 + $0xe0] ss:$16 sps:$4 sm:$0xff]   ;;  %6368 = vst [vmem:[#allocation45_spill] sm:$0xff] %v4464_v2  ;;  %6377 = vst [vmem:[#allocation54_spill] sm:$0xff] %v4490_v1 }
  0x7a   :  { %6363 = vst [vmem:[#allocation40_spill] sm:$0xff] %v4450_v3 }
  0x7c   :  { %771 = vmatpush1.bf16.msra.mxu0 %v4422_v5  ;;  %812 = vmatpush1.bf16.msra.mxu1 %v4424_v6  ;;  %v4446_v6 = vld [vmem:[#allocation7 + $0xe4] ss:$16 sps:$4 sm:$0xff]   ;;  %v4448_v5 = vld [vmem:[#allocation7 + $0xec] ss:$16 sps:$4 sm:$0xff]  }
  0x7d   :  { %772 = vmatprep.subr.bf16.mxu0 %v4428_v7  ;;  %813 = vmatprep.subr.bf16.mxu1 %v4430_v8  ;;  %6361 = vst [vmem:[#allocation38_spill] sm:$0xff] %v4446_v6  ;;  %6362 = vst [vmem:[#allocation39_spill] sm:$0xff] %v4448_v5  ;;  %v4452_v7 = vld [vmem:[#allocation7 + $0xe8] ss:$16 sps:$4 sm:$0xff]   ;;  %v4462_v8 = vld [vmem:[#allocation7 + $0xc0] ss:$16 sps:$4 sm:$0xff]  }
  0x7e   :  { %6364 = vst [vmem:[#allocation41_spill] sm:$0xff] %v4452_v7  ;;  %6367 = vst [vmem:[#allocation44_spill] sm:$0xff] %v4462_v8 }
  0x80   :  { %773 = vmatpush1.bf16.msra.mxu0 %v4434_v9  ;;  %814 = vmatpush1.bf16.msra.mxu1 %v4436_v18  ;;  %v4458_v18 = vld [vmem:[#allocation7 + $0xc4] ss:$16 sps:$4 sm:$0xff]   ;;  %v4460_v9 = vld [vmem:[#allocation7 + $0xcc] ss:$16 sps:$4 sm:$0xff]  }
  0x81   :  { %1061 = vmatprep.subr.bf16.mxu0 %v4446_v6  ;;  %1102 = vmatprep.subr.bf16.mxu1 %v4448_v5  ;;  %6365 = vst [vmem:[#allocation42_spill] sm:$0xff] %v4458_v18  ;;  %6366 = vst [vmem:[#allocation43_spill] sm:$0xff] %v4460_v9  ;;  %v4470_v5 = vld [vmem:[#allocation7 + $0xa4] ss:$16 sps:$4 sm:$0xff]   ;;  %v4476_v6 = vld [vmem:[#allocation7 + $0xa8] ss:$16 sps:$4 sm:$0xff]  }
  0x82   :  { %6369 = vst [vmem:[#allocation46_spill] sm:$0xff] %v4470_v5  ;;  %6372 = vst [vmem:[#allocation49_spill] sm:$0xff] %v4476_v6 }
  0x83   :  { %791 = vmatmul.mubr.bf16.vlgmr.msra.gmra.mxu0 %v6360_v4  ;;  %832 = vmatmul.mubr.bf16.vlgmr.msra.gmra.mxu1 %v6360_v4 }
  0x84   :  { %1093 = vmatprep.mubr.bf16.mxu0 %v6360_v4  ;;  %1134 = vmatprep.mubr.bf16.mxu1 %v6360_v4 }
  0x85   :  { %1062 = vmatpush1.bf16.msra.mxu0 %v4450_v3  ;;  %1103 = vmatpush1.bf16.msra.mxu1 %v4452_v7  ;;  %v4472_v3 = vld [vmem:[#allocation7 + $0xac] ss:$16 sps:$4 sm:$0xff]   ;;  %v4474_v7 = vld [vmem:[#allocation7 + $0xa0] ss:$16 sps:$4 sm:$0xff]  }
  0x86   :  { %1063 = vmatprep.subr.bf16.mxu0 %v4458_v18  ;;  %1104 = vmatprep.subr.bf16.mxu1 %v4460_v9  ;;  %6370 = vst [vmem:[#allocation47_spill] sm:$0xff] %v4472_v3  ;;  %6371 = vst [vmem:[#allocation48_spill] sm:$0xff] %v4474_v7  ;;  %v4482_v9 = vld [vmem:[#allocation7 + $0x84] ss:$16 sps:$4 sm:$0xff]   ;;  %v4488_v18 = vld [vmem:[#allocation7 + $0x88] ss:$16 sps:$4 sm:$0xff]  }
  0x87   :  { %6373 = vst [vmem:[#allocation50_spill] sm:$0xff] %v4482_v9  ;;  %6376 = vst [vmem:[#allocation53_spill] sm:$0xff] %v4488_v18 }
  0x89   :  { %1064 = vmatpush1.bf16.msra.mxu0 %v4462_v8  ;;  %1105 = vmatpush1.bf16.msra.mxu1 %v4464_v2  ;;  %v4484_v8 = vld [vmem:[#allocation7 + $0x8c] ss:$16 sps:$4 sm:$0xff]   ;;  %v4486_v2 = vld [vmem:[#allocation7 + $0x80] ss:$16 sps:$4 sm:$0xff]  }
  0x8a   :  { %1065 = vmatprep.subr.bf16.mxu0 %v4470_v5  ;;  %1106 = vmatprep.subr.bf16.mxu1 %v4472_v3  ;;  %6374 = vst [vmem:[#allocation51_spill] sm:$0xff] %v4484_v8  ;;  %6375 = vst [vmem:[#allocation52_spill] sm:$0xff] %v4486_v2  ;;  %v4494_v5 = vld [vmem:[#allocation7 + $0x6c] ss:$16 sps:$4 sm:$0xff]   ;;  %v4504_v3 = vld [vmem:[#allocation7 + $0x44] ss:$16 sps:$4 sm:$0xff]  }
  0x8b   :  { %6378 = vst [vmem:[#allocation55_spill] sm:$0xff] %v4494_v5  ;;  %6381 = vst [vmem:[#allocation58_spill] sm:$0xff] %v4504_v3 }
  0x8d   :  { %1066 = vmatpush1.bf16.msra.mxu0 %v4474_v7  ;;  %1107 = vmatpush1.bf16.msra.mxu1 %v4476_v6  ;;  %v4498_v6 = vld [vmem:[#allocation7 + $0x60] ss:$16 sps:$4 sm:$0xff]   ;;  %v4500_v7 = vld [vmem:[#allocation7 + $0x68] ss:$16 sps:$4 sm:$0xff]  }
  0x8e   :  { %1067 = vmatprep.subr.bf16.mxu0 %v4482_v9  ;;  %1108 = vmatprep.subr.bf16.mxu1 %v4484_v8  ;;  %6379 = vst [vmem:[#allocation56_spill] sm:$0xff] %v4498_v6  ;;  %6380 = vst [vmem:[#allocation57_spill] sm:$0xff] %v4500_v7  ;;  %v4510_v8 = vld [vmem:[#allocation7 + $0x40] ss:$16 sps:$4 sm:$0xff]  }
  0x8f   :  { %6383 = vst [vmem:[#allocation60_spill] sm:$0xff] %v4510_v8 }
  0x91   :  { %1068 = vmatpush1.bf16.msra.mxu0 %v4486_v2  ;;  %1109 = vmatpush1.bf16.msra.mxu1 %v4488_v18  ;;  %v4512_v2 = vld [vmem:[#allocation7 + $0x48] ss:$16 sps:$4 sm:$0xff]   ;;  %v4516_v18 = vld [vmem:[#allocation7 + $0x24] ss:$16 sps:$4 sm:$0xff]  }
  0x92   :  { %1069 = vmatprep.subr.bf16.mxu0 %v4490_v1  ;;  %1110 = vmatprep.subr.bf16.mxu1 %v4494_v5  ;;  %6384 = vst [vmem:[#allocation61_spill] sm:$0xff] %v4512_v2  ;;  %6385 = vst [vmem:[#allocation62_spill] sm:$0xff] %v4516_v18  ;;  %v4518_v1 = vld [vmem:[#allocation7 + $0x2c] ss:$16 sps:$4 sm:$0xff]   ;;  %v4522_v5 = vld [vmem:[#allocation7 + $0x20] ss:$16 sps:$4 sm:$0xff]  }
  0x93   :  { %6386 = vst [vmem:[#allocation63_spill] sm:$0xff] %v4518_v1  ;;  %6387 = vst [vmem:[#allocation64_spill] sm:$0xff] %v4522_v5 }
  0x95   :  { %1070 = vmatpush1.bf16.msra.mxu0 %v4498_v6  ;;  %1111 = vmatpush1.bf16.msra.mxu1 %v4500_v7  ;;  %v4524_v6 = vld [vmem:[#allocation7 + $0x28] ss:$16 sps:$4 sm:$0xff]   ;;  %v4528_v7 = vld [vmem:[#allocation7 + $0x4] ss:$16 sps:$4 sm:$0xff]  }
  0x96   :  { %1071 = vmatprep.subr.bf16.mxu0 %v4504_v3  ;;  %1112 = vmatprep.subr.bf16.mxu1 %v4506_v0  ;;  %6388 = vst [vmem:[#allocation65_spill] sm:$0xff] %v4524_v6  ;;  %6389 = vst [vmem:[#allocation66_spill] sm:$0xff] %v4528_v7  ;;  %v4530_v3 = vld [vmem:[#allocation7 + $0xc] ss:$16 sps:$4 sm:$0xff]   ;;  %v4534_v0 = vld [vmem:[#allocation7] ss:$16 sps:$4 sm:$0xff]  }
  0x97   :  { %6390 = vst [vmem:[#allocation67_spill] sm:$0xff] %v4530_v3  ;;  %6391 = vst [vmem:[#allocation68_spill] sm:$0xff] %v4534_v0 }
  0x99   :  { %1072 = vmatpush1.bf16.msra.mxu0 %v4510_v8  ;;  %1113 = vmatpush1.bf16.msra.mxu1 %v4512_v2  ;;  %v4536_v8 = vld [vmem:[#allocation7 + $0x8] ss:$16 sps:$4 sm:$0xff]  }
  0x9a   :  { %1073 = vmatprep.subr.bf16.mxu0 %v4516_v18  ;;  %1114 = vmatprep.subr.bf16.mxu1 %v4518_v1  ;;  %6392 = vst [vmem:[#allocation69_spill] sm:$0xff] %v4536_v8 }
  0x9d   :  { %1074 = vmatpush1.bf16.msra.mxu0 %v4522_v5  ;;  %1115 = vmatpush1.bf16.msra.mxu1 %v4524_v6 }
  0x9e   :  { %1075 = vmatprep.subr.bf16.mxu0 %v4528_v7  ;;  %1116 = vmatprep.subr.bf16.mxu1 %v4530_v3 }
  0xa1   :  { %1076 = vmatpush1.bf16.msra.mxu0 %v4534_v0  ;;  %1117 = vmatpush1.bf16.msra.mxu1 %v4536_v8 }
  0xa2   :  { %1172 = vmatprep.subr.bf16.mxu0 %v4244_v10  ;;  %1213 = vmatprep.subr.bf16.mxu1 %v4246_v11  ;;  %v4552_v10 = vshrl.u32 %v104_v61, 7 }
  0xa4   :  { %v6077_v11 = vsub.s32 0, %v4552_v10  ;;  %v6079_v59 = vsub.s32 1, %v4552_v10  ;;  %v6080_v56 = vsub.s32 2, %v4552_v10 }
  0xa6   :  { %v107_v58 = vrot.slane %v102_v60, %v6077_v11 }
 0x102   :  { %v194_v1 = vpop.f32.mrf.mxu0 }
 0x103   :  { %v265_v5 = vpop.f32.mrf.mxu1 }
 0x104   :  { %v196_v18 = vpop.f32.mrf.mxu0 }
 0x105   :  { %v267_v6 = vpop.f32.mrf.mxu1 }
 0x123   :  { %v4544_v2 = vpop.f32.mrf.mxu0  ;;  %v4546_v9 = vpop.f32.mrf.mxu1 }
 0x125   :  { %v4548_v63 = vpop.f32.mrf.mxu0  ;;  %v4550_v7 = vpop.f32.mrf.mxu1 }
 0x127   :  { %v522_v3 = vpop.f32.mrf.mxu0  ;;  %v563_v0 = vpop.f32.mrf.mxu1 }
 0x128   :  { %v111_v3 = vrot.slane %v102_v60, %v6079_v59  ;;  %v4563_v0 = vadd.f32 %v194_v1, %v107_v58  ;;  %v115_v58 = vrot.slane %v102_v60, %v6080_v56 }
 0x129   :  { %v523_v62 = vpop.f32.mrf.mxu0  ;;  %v564_v8 = vpop.f32.mrf.mxu1 }
 0x12a   :  { %v4565_v61 = vadd.f32 %v196_v18, %v111_v3  ;;  %v6081_v18 = vsub.s32 3, %v4552_v10  ;;  %v4573_v3 = vadd.f32 %v265_v5, %v115_v58 }
 0x143   :  { %v792_v62 = vpop.f32.mrf.mxu0  ;;  %v833_v8 = vpop.f32.mrf.mxu1 }
 0x144   :  { %v840_v57 = vadd.f32 %v792_v62, %v4563_v0  ;;  %v119_v62 = vrot.slane %v102_v60, %v6081_v18 }
 0x145   :  { %v794_v55 = vpop.f32.mrf.mxu0  ;;  %v835_v54 = vpop.f32.mrf.mxu1 }
 0x146   :  { %v3380_v53 = vmul.f32 -1.442695, %v840_v57  ;;  %v841_v52 = vadd.f32 %v794_v55, %v4565_v61  ;;  %v842_v57 = vadd.f32 %v833_v8, %v4573_v3  ;;  %v4578_v55 = vadd.f32 %v267_v6, %v119_v62 }
 0x147   :  { %v796_v51 = vpop.f32.mrf.mxu0  ;;  %v837_v11 = vpop.f32.mrf.mxu1 }
 0x148   :  { %3615 = vpow2.f32 %v3380_v53  ;;  %v3381_v50 = vmul.f32 -1.442695, %v841_v52  ;;  %v3382_v51 = vmul.f32 -1.442695, %v842_v57  ;;  %v843_v52 = vadd.f32 %v835_v54, %v4578_v55 }
 0x149   :  { %v797_v1 = vpop.f32.mrf.mxu0  ;;  %v838_v59 = vpop.f32.mrf.mxu1 }
 0x14a   :  { %3617 = vpow2.f32 %v3381_v50 }
 0x14b   :  { %3619 = vpow2.f32 %v3382_v51 }
 0x155   :  { %v3616_v53 = vpop.eup %3615 }
 0x156   :  { %v853_v11 = vadd.f32 1.0, %v3616_v53 }
 0x157   :  { %v3618_v56 = vpop.eup %3617 }
 0x158   :  { %3621 = vrcp.f32 %v853_v11  ;;  %v854_v50 = vadd.f32 1.0, %v3618_v56  ;;  %v3620_v59 = vpop.eup %3619 }
 0x159   :  { %3623 = vtanh.f32 %v843_v52  ;;  %v855_v60 = vadd.f32 1.0, %v3620_v59 }
 0x15a   :  { %3625 = vrcp.f32 %v854_v50 }
 0x15b   :  { %3627 = vrcp.f32 %v855_v60 }
 0x165   :  { %v3622_v5 = vpop.eup %3621 }
 0x166   :  { %v3624_v58 = vpop.eup %3623 }
 0x167   :  { %v3626_v1 = vpop.eup %3625  ;;  %v864_v8 = vmul.f32 %v3624_v58, %v3622_v5 }
 0x168   :  { %v863_v18 = vmul.f32 0.0, %v3626_v1  ;;  %v3628_v54 = vpop.eup %3627 }
 0x16a   :  { %v4581_v6 = vadd.f32 %v864_v8, %v863_v18 }
 0x16c   :  { %3629 = vtanh.f32 %v4581_v6 }
 0x179   :  { %v3630_v62 = vpop.eup %3629 }
 0x17a   :  { %v867_v57 = vmul.f32 %v3630_v62, %v3628_v54  ;;  %v6397_v62 = vld [vmem:[#allocation13_spill] sm:$0xff] }
 0x17c   :  { %v4584_v51 = vpack.c.bf16 %v867_v57, %v867_v57  ;;  %v6398_v57 = vld [vmem:[#allocation14_spill] sm:$0xff] }
 0x17e   :  { %1094 = vmatmul.mubr.bf16.vlgmr.msra.gmra.mxu0 %v4584_v51  ;;  %1135 = vmatmul.mubr.bf16.vlgmr.msra.gmra.mxu1 %v4584_v51 }
 0x17f   :  { %1173 = vmatpush1.bf16.msra.mxu0 %v4249_v12  ;;  %1214 = vmatpush1.bf16.msra.mxu1 %v4251_v13  ;;  %v270_v12 = vld [vmem:[%s5966_s6] sm:$0xf]  ;;  %v6393_v13 = vsub.s32 0, %v4552_v10 }
 0x180   :  { %1174 = vmatprep.subr.bf16.mxu0 %v4254_v14  ;;  %1215 = vmatprep.subr.bf16.mxu1 %v4258_v15 }
 0x181   :  { %1204 = vmatprep.mubr.bf16.mxu0 %v6360_v4  ;;  %1245 = vmatprep.mubr.bf16.mxu1 %v6360_v4  ;;  %v4627_v14 = vrot.slane %v270_v12, %v6393_v13  ;;  %v6400_v13 = vld [vmem:[#allocation16_spill] sm:$0xff] }
 0x183   :  { %1175 = vmatpush1.bf16.msra.mxu0 %v4260_v16  ;;  %1216 = vmatpush1.bf16.msra.mxu1 %v4263_v17  ;;  %v6394_v17 = vsub.s32 1, %v4552_v10 }
 0x184   :  { %1176 = vmatprep.subr.bf16.mxu0 %v4267_v19  ;;  %1217 = vmatprep.subr.bf16.mxu1 %v4270_v20 }
 0x185   :  { %v4631_v19 = vrot.slane %v270_v12, %v6394_v17  ;;  %v6408_v17 = vld [vmem:[#allocation24_spill] sm:$0xff] }
 0x187   :  { %1177 = vmatpush1.bf16.msra.mxu0 %v4272_v21  ;;  %1218 = vmatpush1.bf16.msra.mxu1 %v4274_v22 }
 0x188   :  { %1178 = vmatprep.subr.bf16.mxu0 %v4278_v23  ;;  %1219 = vmatprep.subr.bf16.mxu1 %v4282_v24 }
 0x18b   :  { %1179 = vmatpush1.bf16.msra.mxu0 %v4284_v25  ;;  %1220 = vmatpush1.bf16.msra.mxu1 %v4288_v26 }
 0x18c   :  { %1180 = vmatprep.subr.bf16.mxu0 %v4290_v27  ;;  %1221 = vmatprep.subr.bf16.mxu1 %v4294_v28 }
 0x18f   :  { %1181 = vmatpush1.bf16.msra.mxu0 %v4296_v29  ;;  %1222 = vmatpush1.bf16.msra.mxu1 %v4298_v30 }
 0x190   :  { %1182 = vmatprep.subr.bf16.mxu0 %v4302_v31  ;;  %1223 = vmatprep.subr.bf16.mxu1 %v4306_v32  ;;  %v6395_v32 = vsub.s32 2, %v4552_v10 }
 0x193   :  { %1183 = vmatpush1.bf16.msra.mxu0 %v4308_v33  ;;  %1224 = vmatpush1.bf16.msra.mxu1 %v4312_v34  ;;  %v4639_v33 = vrot.slane %v270_v12, %v6395_v32  ;;  %v6421_v32 = vld [vmem:[#allocation37_spill] sm:$0xff] }
 0x194   :  { %1184 = vmatprep.subr.bf16.mxu0 %v4314_v35  ;;  %1225 = vmatprep.subr.bf16.mxu1 %v4318_v36  ;;  %v6396_v36 = vsub.s32 3, %v4552_v10 }
 0x197   :  { %1185 = vmatpush1.bf16.msra.mxu0 %v4320_v37  ;;  %1226 = vmatpush1.bf16.msra.mxu1 %v4322_v38  ;;  %v4645_v37 = vrot.slane %v270_v12, %v6396_v36  ;;  %v6399_v12 = vld [vmem:[#allocation15_spill] sm:$0xff]  ;;  %v6424_v36 = vld [vmem:[#allocation40_spill] sm:$0xff] }
 0x198   :  { %1186 = vmatprep.subr.bf16.mxu0 %v4326_v39  ;;  %1227 = vmatprep.subr.bf16.mxu1 %v4330_v40 }
 0x19b   :  { %1187 = vmatpush1.bf16.msra.mxu0 %v4332_v41  ;;  %1228 = vmatpush1.bf16.msra.mxu1 %v4336_v42 }
 0x19c   :  { %1254 = vmatprep.subr.bf16.mxu0 %v4338_v43  ;;  %1295 = vmatprep.subr.bf16.mxu1 %v4342_v44 }
 0x23e   :  { %v1095_v15 = vpop.f32.mrf.mxu0  ;;  %v1136_v16 = vpop.f32.mrf.mxu1 }
 0x23f   :  { %v1096_v20 = vadd.f32 %v1095_v15, %v4544_v2  ;;  %v1137_v34 = vadd.f32 %v1136_v16, %v4546_v9  ;;  %v6405_v15 = vld [vmem:[#allocation21_spill] sm:$0xff]  ;;  %v6406_v16 = vld [vmem:[#allocation22_spill] sm:$0xff] }
 0x240   :  { %v1097_v21 = vpop.f32.mrf.mxu0  ;;  %v1138_v22 = vpop.f32.mrf.mxu1 }
 0x241   :  { %v1143_v23 = vadd.f32 %v1096_v20, %v4627_v14  ;;  %v1098_v24 = vadd.f32 %v1097_v21, %v4548_v63  ;;  %v1145_v35 = vadd.f32 %v1137_v34, %v4639_v33  ;;  %v1139_v38 = vadd.f32 %v1138_v22, %v4550_v7  ;;  %v6409_v20 = vld [vmem:[#allocation25_spill] sm:$0xff]  ;;  %v6410_v21 = vld [vmem:[#allocation26_spill] sm:$0xff]  ;;  %v6411_v22 = vld [vmem:[#allocation27_spill] sm:$0xff] }
 0x242   :  { %v1099_v25 = vpop.f32.mrf.mxu0  ;;  %v1140_v26 = vpop.f32.mrf.mxu1  ;;  %v6422_v34 = vld [vmem:[#allocation38_spill] sm:$0xff] }
 0x243   :  { %v3415_v27 = vmul.f32 -1.442695, %v1143_v23  ;;  %v1144_v28 = vadd.f32 %v1098_v24, %v4631_v19  ;;  %v3417_v56 = vmul.f32 -1.442695, %v1145_v35  ;;  %v1146_v2 = vadd.f32 %v1139_v38, %v4645_v37  ;;  %v6412_v23 = vld [vmem:[#allocation28_spill] sm:$0xff]  ;;  %v6413_v24 = vld [vmem:[#allocation29_spill] sm:$0xff] }
 0x244   :  { %v1100_v29 = vpop.f32.mrf.mxu0  ;;  %v1141_v30 = vpop.f32.mrf.mxu1  ;;  %v6414_v25 = vld [vmem:[#allocation30_spill] sm:$0xff]  ;;  %v6415_v26 = vld [vmem:[#allocation31_spill] sm:$0xff]  ;;  %v6425_v38 = vld [vmem:[#allocation41_spill] sm:$0xff] }
 0x245   :  { %3631 = vpow2.f32 %v3415_v27  ;;  %v3416_v31 = vmul.f32 -1.442695, %v1144_v28  ;;  %v6416_v27 = vld [vmem:[#allocation32_spill] sm:$0xff]  ;;  %v6417_v28 = vld [vmem:[#allocation33_spill] sm:$0xff]  ;;  %v6418_v29 = vld [vmem:[#allocation34_spill] sm:$0xff] }
 0x246   :  { %v6419_v30 = vld [vmem:[#allocation35_spill] sm:$0xff] }
 0x247   :  { %3633 = vpow2.f32 %v3416_v31  ;;  %v6420_v31 = vld [vmem:[#allocation36_spill] sm:$0xff]  ;;  %v6423_v35 = vld [vmem:[#allocation39_spill] sm:$0xff] }
 0x248   :  { %3635 = vpow2.f32 %v3417_v56  ;;  %v6426_v56 = vld [vmem:[#allocation42_spill] sm:$0xff] }
 0x252   :  { %v3632_v63 = vpop.eup %3631 }
 0x253   :  { %v1156_v18 = vadd.f32 1.0, %v3632_v63  ;;  %v6427_v63 = vld [vmem:[#allocation43_spill] sm:$0xff] }
 0x254   :  { %v3634_v53 = vpop.eup %3633 }
 0x255   :  { %3637 = vrcp.f32 %v1156_v18  ;;  %v1157_v52 = vadd.f32 1.0, %v3634_v53  ;;  %v3636_v9 = vpop.eup %3635  ;;  %v6429_v18 = vld [vmem:[#allocation45_spill] sm:$0xff]  ;;  %v6430_v53 = vld [vmem:[#allocation46_spill] sm:$0xff] }
 0x256   :  { %3639 = vtanh.f32 %v1146_v2  ;;  %v1158_v10 = vadd.f32 1.0, %v3636_v9  ;;  %v6428_v2 = vld [vmem:[#allocation44_spill] sm:$0xff]  ;;  %v6433_v9 = vld [vmem:[#allocation49_spill] sm:$0xff] }
 0x257   :  { %3641 = vrcp.f32 %v1157_v52  ;;  %v6431_v52 = vld [vmem:[#allocation47_spill] sm:$0xff] }
 0x258   :  { %3643 = vrcp.f32 %v1158_v10  ;;  %v6437_v10 = vld [vmem:[#allocation53_spill] sm:$0xff] }
 0x262   :  { %v3638_v11 = vpop.eup %3637 }
 0x263   :  { %v3640_v50 = vpop.eup %3639 }
 0x264   :  { %v3642_v59 = vpop.eup %3641  ;;  %v1167_v58 = vmul.f32 %v3640_v50, %v3638_v11  ;;  %v6434_v11 = vld [vmem:[#allocation50_spill] sm:$0xff]  ;;  %v6435_v50 = vld [vmem:[#allocation51_spill] sm:$0xff] }
 0x265   :  { %v1166_v5 = vmul.f32 0.0, %v3642_v59  ;;  %v3644_v7 = vpop.eup %3643  ;;  %v6436_v59 = vld [vmem:[#allocation52_spill] sm:$0xff] }
 0x267   :  { %v4649_v1 = vadd.f32 %v1167_v58, %v1166_v5  ;;  %v6438_v5 = vld [vmem:[#allocation54_spill] sm:$0xff]  ;;  %v6439_v58 = vld [vmem:[#allocation55_spill] sm:$0xff] }
 0x269   :  { %3645 = vtanh.f32 %v4649_v1 }
 0x276   :  { %v3646_v60 = vpop.eup %3645 }
 0x277   :  { %v1170_v8 = vmul.f32 %v3646_v60, %v3644_v7  ;;  %v6440_v7 = vld [vmem:[#allocation56_spill] sm:$0xff]  ;;  %v6441_v60 = vld [vmem:[#allocation57_spill] sm:$0xff] }
 0x279   :  { %v1171_v54 = vpack.c.bf16 %v1170_v8, %v1170_v8  ;;  %3299 = vst [vmem:[%s5967_s7] sm:$0x3] %v1170_v8  ;;  %v6442_v8 = vld [vmem:[#allocation58_spill] sm:$0xff] }
 0x27b   :  { %1205 = vmatmul.mubr.bf16.vlgmr.msra.gmra.mxu0 %v1171_v54  ;;  %1246 = vmatmul.mubr.bf16.vlgmr.msra.gmra.mxu1 %v1171_v54  ;;  %v6443_v54 = vld [vmem:[#allocation59_spill] sm:$0xff] }
 0x27c   :  { %1255 = vmatpush1.bf16.msra.mxu0 %v4344_v45  ;;  %1296 = vmatpush1.bf16.msra.mxu1 %v4346_v46  ;;  %v6401_v45 = vld [vmem:[#allocation17_spill] sm:$0xff]  ;;  %v6402_v46 = vld [vmem:[#allocation18_spill] sm:$0xff] }
 0x27d   :  { %1256 = vmatprep.subr.bf16.mxu0 %v4350_v47  ;;  %1297 = vmatprep.subr.bf16.mxu1 %v4354_v48  ;;  %v6403_v47 = vld [vmem:[#allocation19_spill] sm:$0xff]  ;;  %v6404_v48 = vld [vmem:[#allocation20_spill] sm:$0xff] }
 0x27e   :  { %1286 = vmatprep.mubr.bf16.mxu0 %v6360_v4  ;;  %1327 = vmatprep.mubr.bf16.mxu1 %v6360_v4 }
 0x280   :  { %1257 = vmatpush1.bf16.msra.mxu0 %v4358_v49  ;;  %1298 = vmatpush1.bf16.msra.mxu1 %v6397_v62  ;;  %v6407_v49 = vld [vmem:[#allocation23_spill] sm:$0xff]  ;;  %v6444_v62 = vld [vmem:[#allocation60_spill] sm:$0xff] }
 0x281   :  { %1258 = vmatprep.subr.bf16.mxu0 %v6398_v57  ;;  %1299 = vmatprep.subr.bf16.mxu1 %v6399_v12  ;;  %v6445_v57 = vld [vmem:[#allocation61_spill] sm:$0xff]  ;;  %v6446_v12 = vld [vmem:[#allocation62_spill] sm:$0xff] }
 0x284   :  { %1259 = vmatpush1.bf16.msra.mxu0 %v6400_v13  ;;  %1300 = vmatpush1.bf16.msra.mxu1 %v6401_v45  ;;  %v6447_v13 = vld [vmem:[#allocation63_spill] sm:$0xff]  ;;  %v6448_v45 = vld [vmem:[#allocation64_spill] sm:$0xff] }
 0x285   :  { %1260 = vmatprep.subr.bf16.mxu0 %v6402_v46  ;;  %1301 = vmatprep.subr.bf16.mxu1 %v6403_v47  ;;  %v6449_v46 = vld [vmem:[#allocation65_spill] sm:$0xff] }
 0x288   :  { %1261 = vmatpush1.bf16.msra.mxu0 %v6404_v48  ;;  %1302 = vmatpush1.bf16.msra.mxu1 %v6405_v15 }
 0x289   :  { %1262 = vmatprep.subr.bf16.mxu0 %v6406_v16  ;;  %1303 = vmatprep.subr.bf16.mxu1 %v6407_v49 }
 0x28c   :  { %1263 = vmatpush1.bf16.msra.mxu0 %v6408_v17  ;;  %1304 = vmatpush1.bf16.msra.mxu1 %v6409_v20 }
 0x28d   :  { %1264 = vmatprep.subr.bf16.mxu0 %v6410_v21  ;;  %1305 = vmatprep.subr.bf16.mxu1 %v6411_v22 }
 0x290   :  { %1265 = vmatpush1.bf16.msra.mxu0 %v6412_v23  ;;  %1306 = vmatpush1.bf16.msra.mxu1 %v6413_v24 }
 0x291   :  { %1266 = vmatprep.subr.bf16.mxu0 %v6414_v25  ;;  %1307 = vmatprep.subr.bf16.mxu1 %v6415_v26 }
 0x294   :  { %1267 = vmatpush1.bf16.msra.mxu0 %v6416_v27  ;;  %1308 = vmatpush1.bf16.msra.mxu1 %v6417_v28 }
 0x295   :  { %1268 = vmatprep.subr.bf16.mxu0 %v6418_v29  ;;  %1309 = vmatprep.subr.bf16.mxu1 %v6419_v30 }
 0x298   :  { %1269 = vmatpush1.bf16.msra.mxu0 %v6420_v31  ;;  %1310 = vmatpush1.bf16.msra.mxu1 %v6421_v32 }
 0x299   :  { %1365 = vmatprep.subr.bf16.mxu0 %v6422_v34  ;;  %1406 = vmatprep.subr.bf16.mxu1 %v6423_v35 }
 0x29b   :  { %1287 = vmatmul.mubr.bf16.vlgmr.msra.gmra.mxu0 %v4584_v51  ;;  %1328 = vmatmul.mubr.bf16.vlgmr.msra.gmra.mxu1 %v4584_v51  ;;  %v6432_v51 = vld [vmem:[#allocation48_spill] sm:$0xff] }
 0x29c   :  { %1366 = vmatpush1.bf16.msra.mxu0 %v6424_v36  ;;  %1407 = vmatpush1.bf16.msra.mxu1 %v6425_v38 }
 0x29d   :  { %1367 = vmatprep.subr.bf16.mxu0 %v6426_v56  ;;  %1408 = vmatprep.subr.bf16.mxu1 %v6427_v63 }
 0x29e   :  { %1397 = vmatprep.mubr.bf16.mxu0 %v6360_v4  ;;  %1438 = vmatprep.mubr.bf16.mxu1 %v6360_v4 }
 0x2a0   :  { %1368 = vmatpush1.bf16.msra.mxu0 %v6428_v2  ;;  %1409 = vmatpush1.bf16.msra.mxu1 %v6429_v18 }
 0x2a1   :  { %1369 = vmatprep.subr.bf16.mxu0 %v6430_v53  ;;  %1410 = vmatprep.subr.bf16.mxu1 %v6431_v52 }
 0x2a4   :  { %1370 = vmatpush1.bf16.msra.mxu0 %v6432_v51  ;;  %1411 = vmatpush1.bf16.msra.mxu1 %v6433_v9 }
 0x2a5   :  { %1371 = vmatprep.subr.bf16.mxu0 %v6434_v11  ;;  %1412 = vmatprep.subr.bf16.mxu1 %v6435_v50 }
 0x2a8   :  { %1372 = vmatpush1.bf16.msra.mxu0 %v6436_v59  ;;  %1413 = vmatpush1.bf16.msra.mxu1 %v6437_v10 }
 0x2a9   :  { %1373 = vmatprep.subr.bf16.mxu0 %v6438_v5  ;;  %1414 = vmatprep.subr.bf16.mxu1 %v6439_v58  ;;  %v6450_v58 = vld [vmem:[#allocation66_spill] sm:$0xff] }
 0x2ac   :  { %1374 = vmatpush1.bf16.msra.mxu0 %v6440_v7  ;;  %1415 = vmatpush1.bf16.msra.mxu1 %v6441_v60  ;;  %v6451_v7 = vld [vmem:[#allocation67_spill] sm:$0xff]  ;;  %v6452_v60 = vld [vmem:[#allocation68_spill] sm:$0xff] }
 0x2ad   :  { %1375 = vmatprep.subr.bf16.mxu0 %v6442_v8  ;;  %1416 = vmatprep.subr.bf16.mxu1 %v6443_v54  ;;  %v6453_v8 = vld [vmem:[#allocation69_spill] sm:$0xff] }
 0x2ae   :  { %v4723_v54 = vld [vmem:[#allocation9 + $0xe4] ss:$16 sps:$4 sm:$0xff]  }
 0x2af   :  { %6454 = vst [vmem:[#allocation13_spill] sm:$0xff] %v4723_v54 }
 0x2b0   :  { %1376 = vmatpush1.bf16.msra.mxu0 %v6444_v62  ;;  %1417 = vmatpush1.bf16.msra.mxu1 %v6445_v57  ;;  %v4726_v57 = vld [vmem:[#allocation9 + $0xec] ss:$16 sps:$4 sm:$0xff]  }
 0x2b1   :  { %1377 = vmatprep.subr.bf16.mxu0 %v6446_v12  ;;  %1418 = vmatprep.subr.bf16.mxu1 %v6447_v13  ;;  %6455 = vst [vmem:[#allocation14_spill] sm:$0xff] %v4726_v57 }
 0x2b4   :  { %1378 = vmatpush1.bf16.msra.mxu0 %v6448_v45  ;;  %1419 = vmatpush1.bf16.msra.mxu1 %v6449_v46 }
 0x2b5   :  { %1379 = vmatprep.subr.bf16.mxu0 %v6450_v58  ;;  %1420 = vmatprep.subr.bf16.mxu1 %v6451_v7 }
 0x2b8   :  { %1380 = vmatpush1.bf16.msra.mxu0 %v6452_v60  ;;  %1421 = vmatpush1.bf16.msra.mxu1 %v6453_v8 }
 0x2b9   :  { %1476 = vmatprep.subr.bf16.mxu0 %v4723_v54  ;;  %1517 = vmatprep.subr.bf16.mxu1 %v4726_v57 }
 0x33b   :  { %v4729_v13 = vpop.f32.mrf.mxu0  ;;  %v4731_v45 = vpop.f32.mrf.mxu1 }
 0x33d   :  { %v4733_v46 = vpop.f32.mrf.mxu0  ;;  %v4735_v58 = vpop.f32.mrf.mxu1 }
 0x33f   :  { %v1210_v7 = vpop.f32.mrf.mxu0  ;;  %v1251_v60 = vpop.f32.mrf.mxu1 }
 0x341   :  { %v1211_v12 = vpop.f32.mrf.mxu0  ;;  %v1252_v8 = vpop.f32.mrf.mxu1 }
 0x35b   :  { %v1288_v62 = vpop.f32.mrf.mxu0  ;;  %v1329_v5 = vpop.f32.mrf.mxu1 }
 0x35c   :  { %v1336_v54 = vadd.f32 %v1288_v62, %v4563_v0  ;;  %v1338_v7 = vadd.f32 %v1329_v5, %v4573_v3 }
 0x35d   :  { %v1290_v10 = vpop.f32.mrf.mxu0  ;;  %v1331_v59 = vpop.f32.mrf.mxu1 }
 0x35e   :  { %v3418_v50 = vmul.f32 -1.442695, %v1336_v54  ;;  %v1337_v57 = vadd.f32 %v1290_v10, %v4565_v61  ;;  %v3420_v60 = vmul.f32 -1.442695, %v1338_v7  ;;  %v1339_v12 = vadd.f32 %v1331_v59, %v4578_v55 }
 0x35f   :  { %v1292_v11 = vpop.f32.mrf.mxu0  ;;  %v1333_v9 = vpop.f32.mrf.mxu1 }
 0x360   :  { %3647 = vpow2.f32 %v3418_v50  ;;  %v3419_v51 = vmul.f32 -1.442695, %v1337_v57 }
 0x361   :  { %v1293_v52 = vpop.f32.mrf.mxu0  ;;  %v1334_v53 = vpop.f32.mrf.mxu1 }
 0x362   :  { %3649 = vpow2.f32 %v3419_v51 }
 0x363   :  { %3651 = vpow2.f32 %v3420_v60  ;;  %v4749_v60 = vld [vmem:[#allocation9 + $0xe0] ss:$16 sps:$4 sm:$0xff]  }
 0x36d   :  { %v3648_v8 = vpop.eup %3647 }
 0x36e   :  { %v1349_v18 = vadd.f32 1.0, %v3648_v8  ;;  %v4755_v8 = vld [vmem:[#allocation9 + $0xc4] ss:$16 sps:$4 sm:$0xff]  }
 0x36f   :  { %v3650_v62 = vpop.eup %3649 }
 0x370   :  { %3653 = vrcp.f32 %v1349_v18  ;;  %v1350_v54 = vadd.f32 1.0, %v3650_v62  ;;  %v3652_v11 = vpop.eup %3651  ;;  %v4763_v62 = vld [vmem:[#allocation9 + $0xc0] ss:$16 sps:$4 sm:$0xff]  }
 0x371   :  { %3655 = vtanh.f32 %v1339_v12  ;;  %v1351_v52 = vadd.f32 1.0, %v3652_v11  ;;  %v4758_v12 = vld [vmem:[#allocation9 + $0xcc] ss:$16 sps:$4 sm:$0xff]   ;;  %v4769_v11 = vld [vmem:[#allocation9 + $0xa4] ss:$16 sps:$4 sm:$0xff]  }
 0x372   :  { %3657 = vrcp.f32 %v1350_v54  ;;  %v4766_v54 = vld [vmem:[#allocation9 + $0xc8] ss:$16 sps:$4 sm:$0xff]   ;;  %6456 = vst [vmem:[#allocation15_spill] sm:$0xff] %v4769_v11 }
 0x373   :  { %3659 = vrcp.f32 %v1351_v52  ;;  %v4781_v52 = vld [vmem:[#allocation9 + $0x84] ss:$16 sps:$4 sm:$0xff]  }
 0x374   :  { %6460 = vst [vmem:[#allocation19_spill] sm:$0xff] %v4781_v52 }
 0x37d   :  { %v3654_v9 = vpop.eup %3653 }
 0x37e   :  { %v3656_v50 = vpop.eup %3655 }
 0x37f   :  { %v3658_v10 = vpop.eup %3657  ;;  %v1360_v51 = vmul.f32 %v3656_v50, %v3654_v9  ;;  %v4772_v9 = vld [vmem:[#allocation9 + $0xac] ss:$16 sps:$4 sm:$0xff]   ;;  %v4775_v50 = vld [vmem:[#allocation9 + $0xa0] ss:$16 sps:$4 sm:$0xff]  }
 0x380   :  { %v1359_v53 = vmul.f32 %v3658_v10, %v4581_v6  ;;  %v3660_v59 = vpop.eup %3659  ;;  %v4752_v6 = vld [vmem:[#allocation9 + $0xe8] ss:$16 sps:$4 sm:$0xff]   ;;  %6457 = vst [vmem:[#allocation16_spill] sm:$0xff] %v4772_v9  ;;  %6458 = vst [vmem:[#allocation17_spill] sm:$0xff] %v4775_v50 }
 0x381   :  { %v4778_v10 = vld [vmem:[#allocation9 + $0xa8] ss:$16 sps:$4 sm:$0xff]  }
 0x382   :  { %v4742_v5 = vadd.f32 %v1360_v51, %v1359_v53  ;;  %6459 = vst [vmem:[#allocation18_spill] sm:$0xff] %v4778_v10  ;;  %v4784_v53 = vld [vmem:[#allocation9 + $0x8c] ss:$16 sps:$4 sm:$0xff]   ;;  %v4787_v51 = vld [vmem:[#allocation9 + $0x80] ss:$16 sps:$4 sm:$0xff]  }
 0x383   :  { %6461 = vst [vmem:[#allocation20_spill] sm:$0xff] %v4784_v53  ;;  %6462 = vst [vmem:[#allocation21_spill] sm:$0xff] %v4787_v51 }
 0x384   :  { %3661 = vtanh.f32 %v4742_v5 }
 0x391   :  { %v3662_v57 = vpop.eup %3661 }
 0x392   :  { %v1363_v7 = vmul.f32 %v3662_v57, %v3660_v59  ;;  %v4790_v59 = vld [vmem:[#allocation9 + $0x88] ss:$16 sps:$4 sm:$0xff]   ;;  %v4793_v57 = vld [vmem:[#allocation9 + $0x64] ss:$16 sps:$4 sm:$0xff]  }
 0x393   :  { %6463 = vst [vmem:[#allocation22_spill] sm:$0xff] %v4790_v59  ;;  %6464 = vst [vmem:[#allocation23_spill] sm:$0xff] %v4793_v57 }
 0x394   :  { %v4745_v18 = vpack.c.bf16 %v1363_v7, %v1363_v7  ;;  %v4796_v7 = vld [vmem:[#allocation9 + $0x6c] ss:$16 sps:$4 sm:$0xff]  }
 0x395   :  { %6465 = vst [vmem:[#allocation24_spill] sm:$0xff] %v4796_v7 }
 0x396   :  { %1398 = vmatmul.mubr.bf16.vlgmr.msra.gmra.mxu0 %v4745_v18  ;;  %1439 = vmatmul.mubr.bf16.vlgmr.msra.gmra.mxu1 %v4745_v18 }
 0x397   :  { %1477 = vmatpush1.bf16.msra.mxu0 %v4749_v60  ;;  %1518 = vmatpush1.bf16.msra.mxu1 %v4752_v6 }
 0x398   :  { %1478 = vmatprep.subr.bf16.mxu0 %v4755_v8  ;;  %1519 = vmatprep.subr.bf16.mxu1 %v4758_v12 }
 0x399   :  { %1508 = vmatprep.mubr.bf16.mxu0 %v6360_v4  ;;  %1549 = vmatprep.mubr.bf16.mxu1 %v6360_v4 }
 0x39b   :  { %1479 = vmatpush1.bf16.msra.mxu0 %v4763_v62  ;;  %1520 = vmatpush1.bf16.msra.mxu1 %v4766_v54 }
 0x39c   :  { %1480 = vmatprep.subr.bf16.mxu0 %v4769_v11  ;;  %1521 = vmatprep.subr.bf16.mxu1 %v4772_v9 }
 0x39f   :  { %1481 = vmatpush1.bf16.msra.mxu0 %v4775_v50  ;;  %1522 = vmatpush1.bf16.msra.mxu1 %v4778_v10 }
 0x3a0   :  { %1482 = vmatprep.subr.bf16.mxu0 %v4781_v52  ;;  %1523 = vmatprep.subr.bf16.mxu1 %v4784_v53  ;;  %v4799_v52 = vld [vmem:[#allocation9 + $0x60] ss:$16 sps:$4 sm:$0xff]   ;;  %v4802_v53 = vld [vmem:[#allocation9 + $0x68] ss:$16 sps:$4 sm:$0xff]  }
 0x3a1   :  { %6466 = vst [vmem:[#allocation25_spill] sm:$0xff] %v4799_v52  ;;  %6467 = vst [vmem:[#allocation26_spill] sm:$0xff] %v4802_v53 }
 0x3a3   :  { %1483 = vmatpush1.bf16.msra.mxu0 %v4787_v51  ;;  %1524 = vmatpush1.bf16.msra.mxu1 %v4790_v59  ;;  %v4805_v51 = vld [vmem:[#allocation9 + $0x44] ss:$16 sps:$4 sm:$0xff]   ;;  %v4808_v59 = vld [vmem:[#allocation9 + $0x4c] ss:$16 sps:$4 sm:$0xff]  }
 0x3a4   :  { %1484 = vmatprep.subr.bf16.mxu0 %v4793_v57  ;;  %1525 = vmatprep.subr.bf16.mxu1 %v4796_v7  ;;  %6468 = vst [vmem:[#allocation27_spill] sm:$0xff] %v4805_v51  ;;  %6469 = vst [vmem:[#allocation28_spill] sm:$0xff] %v4808_v59  ;;  %v4811_v57 = vld [vmem:[#allocation9 + $0x40] ss:$16 sps:$4 sm:$0xff]   ;;  %v4814_v7 = vld [vmem:[#allocation9 + $0x48] ss:$16 sps:$4 sm:$0xff]  }
 0x3a5   :  { %6470 = vst [vmem:[#allocation29_spill] sm:$0xff] %v4811_v57  ;;  %6471 = vst [vmem:[#allocation30_spill] sm:$0xff] %v4814_v7 }
 0x3a7   :  { %1485 = vmatpush1.bf16.msra.mxu0 %v4799_v52  ;;  %1526 = vmatpush1.bf16.msra.mxu1 %v4802_v53  ;;  %v4817_v52 = vld [vmem:[#allocation9 + $0x24] ss:$16 sps:$4 sm:$0xff]   ;;  %v4820_v53 = vld [vmem:[#allocation9 + $0x2c] ss:$16 sps:$4 sm:$0xff]  }
 0x3a8   :  { %1486 = vmatprep.subr.bf16.mxu0 %v4805_v51  ;;  %1527 = vmatprep.subr.bf16.mxu1 %v4808_v59  ;;  %6472 = vst [vmem:[#allocation31_spill] sm:$0xff] %v4817_v52  ;;  %6473 = vst [vmem:[#allocation32_spill] sm:$0xff] %v4820_v53  ;;  %v4823_v51 = vld [vmem:[#allocation9 + $0x20] ss:$16 sps:$4 sm:$0xff]   ;;  %v4826_v59 = vld [vmem:[#allocation9 + $0x28] ss:$16 sps:$4 sm:$0xff]  }
 0x3a9   :  { %6474 = vst [vmem:[#allocation33_spill] sm:$0xff] %v4823_v51  ;;  %6475 = vst [vmem:[#allocation34_spill] sm:$0xff] %v4826_v59 }
 0x3ab   :  { %1487 = vmatpush1.bf16.msra.mxu0 %v4811_v57  ;;  %1528 = vmatpush1.bf16.msra.mxu1 %v4814_v7 }
 0x3ac   :  { %1488 = vmatprep.subr.bf16.mxu0 %v4817_v52  ;;  %1529 = vmatprep.subr.bf16.mxu1 %v4820_v53 }
 0x3af   :  { %1489 = vmatpush1.bf16.msra.mxu0 %v4823_v51  ;;  %1530 = vmatpush1.bf16.msra.mxu1 %v4826_v59 }
 0x3b0   :  { %1490 = vmatprep.subr.bf16.mxu0 %v4326_v39  ;;  %1531 = vmatprep.subr.bf16.mxu1 %v4330_v40 }
 0x3b3   :  { %1491 = vmatpush1.bf16.msra.mxu0 %v4332_v41  ;;  %1532 = vmatpush1.bf16.msra.mxu1 %v4336_v42 }
 0x3b4   :  { %1558 = vmatprep.subr.bf16.mxu0 %v4338_v43  ;;  %1599 = vmatprep.subr.bf16.mxu1 %v4342_v44 }
 0x456   :  { %v1399_v53 = vpop.f32.mrf.mxu0  ;;  %v1440_v52 = vpop.f32.mrf.mxu1 }
 0x457   :  { %v1400_v51 = vadd.f32 %v1399_v53, %v4729_v13  ;;  %v1441_v44 = vadd.f32 %v1440_v52, %v4731_v45 }
 0x458   :  { %v1401_v7 = vpop.f32.mrf.mxu0  ;;  %v1442_v57 = vpop.f32.mrf.mxu1 }
 0x459   :  { %v1447_v59 = vadd.f32 %v1400_v51, %v4627_v14  ;;  %v1402_v39 = vadd.f32 %v1401_v7, %v4733_v46  ;;  %v1449_v13 = vadd.f32 %v1441_v44, %v4639_v33  ;;  %v1443_v53 = vadd.f32 %v1442_v57, %v4735_v58  ;;  %v4850_v44 = vld [vmem:[#allocation6 + $0xe0] ss:$16 sps:$4 sm:$0xff]  }
 0x45a   :  { %v1403_v10 = vpop.f32.mrf.mxu0  ;;  %v1444_v40 = vpop.f32.mrf.mxu1 }
 0x45b   :  { %v3421_v50 = vmul.f32 -1.442695, %v1447_v59  ;;  %v1448_v41 = vadd.f32 %v1402_v39, %v4631_v19  ;;  %v3423_v11 = vmul.f32 -1.442695, %v1449_v13  ;;  %v1450_v46 = vadd.f32 %v1443_v53, %v4645_v37  ;;  %v4856_v13 = vld [vmem:[#allocation6 + $0xc4] ss:$16 sps:$4 sm:$0xff]  }
 0x45c   :  { %v1404_v42 = vpop.f32.mrf.mxu0  ;;  %v1445_v9 = vpop.f32.mrf.mxu1  ;;  %v4859_v53 = vld [vmem:[#allocation6 + $0xcc] ss:$16 sps:$4 sm:$0xff]  }
 0x45d   :  { %3663 = vpow2.f32 %v3421_v50  ;;  %v3422_v43 = vmul.f32 -1.442695, %v1448_v41 }
 0x45f   :  { %3665 = vpow2.f32 %v3422_v43 }
 0x460   :  { %3667 = vpow2.f32 %v3423_v11 }
 0x46a   :  { %v3664_v51 = vpop.eup %3663 }
 0x46b   :  { %v1460_v10 = vadd.f32 1.0, %v3664_v51  ;;  %v4864_v51 = vld [vmem:[#allocation6 + $0xc0] ss:$16 sps:$4 sm:$0xff]  }
 0x46c   :  { %v3666_v7 = vpop.eup %3665 }
 0x46d   :  { %3669 = vrcp.f32 %v1460_v10  ;;  %v1461_v59 = vadd.f32 1.0, %v3666_v7  ;;  %v3668_v9 = vpop.eup %3667  ;;  %v4870_v10 = vld [vmem:[#allocation6 + $0xa4] ss:$16 sps:$4 sm:$0xff]   ;;  %v4873_v7 = vld [vmem:[#allocation6 + $0xac] ss:$16 sps:$4 sm:$0xff]  }
 0x46e   :  { %3671 = vtanh.f32 %v1450_v46  ;;  %v1462_v45 = vadd.f32 1.0, %v3668_v9  ;;  %v4867_v46 = vld [vmem:[#allocation6 + $0xc8] ss:$16 sps:$4 sm:$0xff]  }
 0x46f   :  { %3673 = vrcp.f32 %v1461_v59  ;;  %v4876_v59 = vld [vmem:[#allocation6 + $0xa0] ss:$16 sps:$4 sm:$0xff]   ;;  %v4879_v9 = vld [vmem:[#allocation6 + $0xa8] ss:$16 sps:$4 sm:$0xff]  }
 0x470   :  { %3675 = vrcp.f32 %v1462_v45 }
 0x47a   :  { %v3670_v50 = vpop.eup %3669 }
 0x47b   :  { %v3672_v39 = vpop.eup %3671 }
 0x47c   :  { %v3674_v40 = vpop.eup %3673  ;;  %v1471_v41 = vmul.f32 %v3672_v39, %v3670_v50  ;;  %v4882_v50 = vld [vmem:[#allocation6 + $0x84] ss:$16 sps:$4 sm:$0xff]  }
 0x47d   :  { %v1470_v52 = vmul.f32 %v3674_v40, %v4649_v1  ;;  %v3676_v57 = vpop.eup %3675  ;;  %v4853_v1 = vld [vmem:[#allocation6 + $0xe8] ss:$16 sps:$4 sm:$0xff]  }
 0x47f   :  { %v4844_v58 = vadd.f32 %v1471_v41, %v1470_v52 }
 0x481   :  { %3677 = vtanh.f32 %v4844_v58 }
 0x48e   :  { %v3678_v42 = vpop.eup %3677 }
 0x48f   :  { %v1474_v11 = vmul.f32 %v3678_v42, %v3676_v57 }
 0x491   :  { %v1475_v43 = vpack.c.bf16 %v1474_v11, %v1474_v11  ;;  %3300 = vst [vmem:[%s5967_s7 + $0x2] sm:$0x3] %v1474_v11 }
 0x493   :  { %1509 = vmatmul.mubr.bf16.vlgmr.msra.gmra.mxu0 %v1475_v43  ;;  %1550 = vmatmul.mubr.bf16.vlgmr.msra.gmra.mxu1 %v1475_v43 }
 0x494   :  { %1559 = vmatpush1.bf16.msra.mxu0 %v4850_v44  ;;  %1600 = vmatpush1.bf16.msra.mxu1 %v4853_v1 }
 0x495   :  { %1560 = vmatprep.subr.bf16.mxu0 %v4856_v13  ;;  %1601 = vmatprep.subr.bf16.mxu1 %v4859_v53 }
 0x496   :  { %1590 = vmatprep.mubr.bf16.mxu0 %v6360_v4  ;;  %1631 = vmatprep.mubr.bf16.mxu1 %v6360_v4 }
 0x498   :  { %1561 = vmatpush1.bf16.msra.mxu0 %v4864_v51  ;;  %1602 = vmatpush1.bf16.msra.mxu1 %v4867_v46 }
 0x499   :  { %1562 = vmatprep.subr.bf16.mxu0 %v4870_v10  ;;  %1603 = vmatprep.subr.bf16.mxu1 %v4873_v7 }
 0x49c   :  { %1563 = vmatpush1.bf16.msra.mxu0 %v4876_v59  ;;  %1604 = vmatpush1.bf16.msra.mxu1 %v4879_v9 }
 0x49d   :  { %1564 = vmatprep.subr.bf16.mxu0 %v4882_v50  ;;  %1605 = vmatprep.subr.bf16.mxu1 %v6403_v47  ;;  %v6476_v47 = vld [vmem:[#allocation45_spill] sm:$0xff] }
 0x4a0   :  { %1565 = vmatpush1.bf16.msra.mxu0 %v6404_v48  ;;  %1606 = vmatpush1.bf16.msra.mxu1 %v6405_v15  ;;  %v6477_v48 = vld [vmem:[#allocation46_spill] sm:$0xff]  ;;  %v6478_v15 = vld [vmem:[#allocation47_spill] sm:$0xff] }
 0x4a1   :  { %1566 = vmatprep.subr.bf16.mxu0 %v6406_v16  ;;  %1607 = vmatprep.subr.bf16.mxu1 %v6407_v49  ;;  %v6479_v16 = vld [vmem:[#allocation48_spill] sm:$0xff]  ;;  %v6480_v49 = vld [vmem:[#allocation49_spill] sm:$0xff] }
 0x4a4   :  { %1567 = vmatpush1.bf16.msra.mxu0 %v6408_v17  ;;  %1608 = vmatpush1.bf16.msra.mxu1 %v6409_v20  ;;  %v6481_v17 = vld [vmem:[#allocation50_spill] sm:$0xff]  ;;  %v6482_v20 = vld [vmem:[#allocation51_spill] sm:$0xff] }
 0x4a5   :  { %1568 = vmatprep.subr.bf16.mxu0 %v6410_v21  ;;  %1609 = vmatprep.subr.bf16.mxu1 %v6411_v22  ;;  %v6483_v21 = vld [vmem:[#allocation52_spill] sm:$0xff]  ;;  %v6484_v22 = vld [vmem:[#allocation53_spill] sm:$0xff] }
 0x4a8   :  { %1569 = vmatpush1.bf16.msra.mxu0 %v6412_v23  ;;  %1610 = vmatpush1.bf16.msra.mxu1 %v6413_v24  ;;  %v6485_v23 = vld [vmem:[#allocation54_spill] sm:$0xff]  ;;  %v6486_v24 = vld [vmem:[#allocation55_spill] sm:$0xff] }
 0x4a9   :  { %1570 = vmatprep.subr.bf16.mxu0 %v6414_v25  ;;  %1611 = vmatprep.subr.bf16.mxu1 %v6415_v26  ;;  %v6487_v25 = vld [vmem:[#allocation56_spill] sm:$0xff]  ;;  %v6488_v26 = vld [vmem:[#allocation57_spill] sm:$0xff] }
 0x4ac   :  { %1571 = vmatpush1.bf16.msra.mxu0 %v6416_v27  ;;  %1612 = vmatpush1.bf16.msra.mxu1 %v6417_v28  ;;  %v6489_v27 = vld [vmem:[#allocation58_spill] sm:$0xff]  ;;  %v6490_v28 = vld [vmem:[#allocation59_spill] sm:$0xff] }
 0x4ad   :  { %1572 = vmatprep.subr.bf16.mxu0 %v6418_v29  ;;  %1613 = vmatprep.subr.bf16.mxu1 %v6419_v30  ;;  %v6491_v29 = vld [vmem:[#allocation60_spill] sm:$0xff]  ;;  %v6492_v30 = vld [vmem:[#allocation61_spill] sm:$0xff] }
 0x4b0   :  { %1573 = vmatpush1.bf16.msra.mxu0 %v6420_v31  ;;  %1614 = vmatpush1.bf16.msra.mxu1 %v6421_v32  ;;  %v6493_v31 = vld [vmem:[#allocation62_spill] sm:$0xff]  ;;  %v6494_v32 = vld [vmem:[#allocation63_spill] sm:$0xff] }
 0x4b1   :  { %1669 = vmatprep.subr.bf16.mxu0 %v6422_v34  ;;  %1710 = vmatprep.subr.bf16.mxu1 %v6423_v35  ;;  %v6495_v34 = vld [vmem:[#allocation64_spill] sm:$0xff]  ;;  %v6496_v35 = vld [vmem:[#allocation65_spill] sm:$0xff] }
 0x4b3   :  { %1591 = vmatmul.mubr.bf16.vlgmr.msra.gmra.mxu0 %v4745_v18  ;;  %1632 = vmatmul.mubr.bf16.vlgmr.msra.gmra.mxu1 %v4745_v18  ;;  %v6502_v18 = vld [vmem:[#allocation14_spill] sm:$0xff] }
 0x4b4   :  { %1670 = vmatpush1.bf16.msra.mxu0 %v6424_v36  ;;  %1711 = vmatpush1.bf16.msra.mxu1 %v6425_v38  ;;  %v6497_v36 = vld [vmem:[#allocation66_spill] sm:$0xff]  ;;  %v6498_v38 = vld [vmem:[#allocation67_spill] sm:$0xff] }
 0x4b5   :  { %1671 = vmatprep.subr.bf16.mxu0 %v6426_v56  ;;  %1712 = vmatprep.subr.bf16.mxu1 %v6427_v63  ;;  %v6499_v56 = vld [vmem:[#allocation68_spill] sm:$0xff]  ;;  %v6500_v63 = vld [vmem:[#allocation69_spill] sm:$0xff] }
 0x4b6   :  { %1701 = vmatprep.mubr.bf16.mxu0 %v6360_v4  ;;  %1742 = vmatprep.mubr.bf16.mxu1 %v6360_v4 }
 0x4b8   :  { %1672 = vmatpush1.bf16.msra.mxu0 %v6428_v2  ;;  %1713 = vmatpush1.bf16.msra.mxu1 %v6476_v47  ;;  %v6501_v2 = vld [vmem:[#allocation13_spill] sm:$0xff] }
 0x4b9   :  { %1673 = vmatprep.subr.bf16.mxu0 %v6477_v48  ;;  %1714 = vmatprep.subr.bf16.mxu1 %v6478_v15 }
 0x4bc   :  { %1674 = vmatpush1.bf16.msra.mxu0 %v6479_v16  ;;  %1715 = vmatpush1.bf16.msra.mxu1 %v6480_v49 }
 0x4bd   :  { %1675 = vmatprep.subr.bf16.mxu0 %v6481_v17  ;;  %1716 = vmatprep.subr.bf16.mxu1 %v6482_v20 }
 0x4c0   :  { %1676 = vmatpush1.bf16.msra.mxu0 %v6483_v21  ;;  %1717 = vmatpush1.bf16.msra.mxu1 %v6484_v22 }
 0x4c1   :  { %1677 = vmatprep.subr.bf16.mxu0 %v6485_v23  ;;  %1718 = vmatprep.subr.bf16.mxu1 %v6486_v24 }
 0x4c4   :  { %1678 = vmatpush1.bf16.msra.mxu0 %v6487_v25  ;;  %1719 = vmatpush1.bf16.msra.mxu1 %v6488_v26 }
 0x4c5   :  { %1679 = vmatprep.subr.bf16.mxu0 %v6489_v27  ;;  %1720 = vmatprep.subr.bf16.mxu1 %v6490_v28 }
 0x4c8   :  { %1680 = vmatpush1.bf16.msra.mxu0 %v6491_v29  ;;  %1721 = vmatpush1.bf16.msra.mxu1 %v6492_v30 }
 0x4c9   :  { %1681 = vmatprep.subr.bf16.mxu0 %v6493_v31  ;;  %1722 = vmatprep.subr.bf16.mxu1 %v6494_v32 }
 0x4cc   :  { %1682 = vmatpush1.bf16.msra.mxu0 %v6495_v34  ;;  %1723 = vmatpush1.bf16.msra.mxu1 %v6496_v35 }
 0x4cd   :  { %1683 = vmatprep.subr.bf16.mxu0 %v6497_v36  ;;  %1724 = vmatprep.subr.bf16.mxu1 %v6498_v38 }
 0x4d0   :  { %1684 = vmatpush1.bf16.msra.mxu0 %v6499_v56  ;;  %1725 = vmatpush1.bf16.msra.mxu1 %v6500_v63 }
 0x4d1   :  { %1780 = vmatprep.subr.bf16.mxu0 %v6501_v2  ;;  %1821 = vmatprep.subr.bf16.mxu1 %v6502_v18 }
 0x553   :  { %v4942_v39 = vpop.f32.mrf.mxu0  ;;  %v4944_v40 = vpop.f32.mrf.mxu1 }
 0x555   :  { %v4946_v45 = vpop.f32.mrf.mxu0  ;;  %v4948_v52 = vpop.f32.mrf.mxu1 }
 0x557   :  { %v1514_v41 = vpop.f32.mrf.mxu0  ;;  %v1555_v57 = vpop.f32.mrf.mxu1 }
 0x559   :  { %v1515_v42 = vpop.f32.mrf.mxu0  ;;  %v1556_v11 = vpop.f32.mrf.mxu1 }
 0x573   :  { %v1592_v43 = vpop.f32.mrf.mxu0  ;;  %v1633_v47 = vpop.f32.mrf.mxu1 }
 0x574   :  { %v1640_v48 = vadd.f32 %v1592_v43, %v4563_v0  ;;  %v1642_v25 = vadd.f32 %v1633_v47, %v4573_v3  ;;  %v6504_v47 = vld [vmem:[#allocation16_spill] sm:$0xff] }
 0x575   :  { %v1594_v15 = vpop.f32.mrf.mxu0  ;;  %v1635_v16 = vpop.f32.mrf.mxu1 }
 0x576   :  { %v3424_v49 = vmul.f32 -1.442695, %v1640_v48  ;;  %v1641_v17 = vadd.f32 %v1594_v15, %v4565_v61  ;;  %v3426_v26 = vmul.f32 -1.442695, %v1642_v25  ;;  %v1643_v28 = vadd.f32 %v1635_v16, %v4578_v55  ;;  %v6505_v48 = vld [vmem:[#allocation17_spill] sm:$0xff]  ;;  %v6506_v15 = vld [vmem:[#allocation18_spill] sm:$0xff] }
 0x577   :  { %v1596_v20 = vpop.f32.mrf.mxu0  ;;  %v1637_v21 = vpop.f32.mrf.mxu1  ;;  %v6507_v16 = vld [vmem:[#allocation19_spill] sm:$0xff] }
 0x578   :  { %3679 = vpow2.f32 %v3424_v49  ;;  %v3425_v22 = vmul.f32 -1.442695, %v1641_v17  ;;  %v6508_v49 = vld [vmem:[#allocation20_spill] sm:$0xff]  ;;  %v6509_v17 = vld [vmem:[#allocation21_spill] sm:$0xff]  ;;  %v6510_v20 = vld [vmem:[#allocation22_spill] sm:$0xff] }
 0x579   :  { %v1597_v23 = vpop.f32.mrf.mxu0  ;;  %v1638_v24 = vpop.f32.mrf.mxu1  ;;  %v6511_v21 = vld [vmem:[#allocation23_spill] sm:$0xff] }
 0x57a   :  { %3681 = vpow2.f32 %v3425_v22  ;;  %v6512_v22 = vld [vmem:[#allocation24_spill] sm:$0xff]  ;;  %v6513_v23 = vld [vmem:[#allocation25_spill] sm:$0xff]  ;;  %v6514_v24 = vld [vmem:[#allocation26_spill] sm:$0xff] }
 0x57b   :  { %3683 = vpow2.f32 %v3426_v26  ;;  %v6515_v25 = vld [vmem:[#allocation27_spill] sm:$0xff]  ;;  %v6516_v26 = vld [vmem:[#allocation28_spill] sm:$0xff] }
 0x585   :  { %v3680_v27 = vpop.eup %3679 }
 0x586   :  { %v1653_v29 = vadd.f32 1.0, %v3680_v27  ;;  %v6517_v27 = vld [vmem:[#allocation29_spill] sm:$0xff] }
 0x587   :  { %v3682_v30 = vpop.eup %3681 }
 0x588   :  { %3685 = vrcp.f32 %v1653_v29  ;;  %v1654_v31 = vadd.f32 1.0, %v3682_v30  ;;  %v3684_v32 = vpop.eup %3683  ;;  %v6519_v29 = vld [vmem:[#allocation31_spill] sm:$0xff]  ;;  %v6520_v30 = vld [vmem:[#allocation32_spill] sm:$0xff] }
 0x589   :  { %3687 = vtanh.f32 %v1643_v28  ;;  %v1655_v38 = vadd.f32 1.0, %v3684_v32  ;;  %v6518_v28 = vld [vmem:[#allocation30_spill] sm:$0xff] }
 0x58a   :  { %3689 = vrcp.f32 %v1654_v31  ;;  %v6521_v31 = vld [vmem:[#allocation33_spill] sm:$0xff]  ;;  %v6522_v32 = vld [vmem:[#allocation34_spill] sm:$0xff] }
 0x58b   :  { %3691 = vrcp.f32 %v1655_v38  ;;  %v4999_v38 = vld [vmem:[#allocation9 + $0x8] ss:$16 sps:$4 sm:$0xff]  }
 0x58c   :  { %6526 = vst [vmem:[#allocation38_spill] sm:$0xff] %v4999_v38 }
 0x595   :  { %v3686_v34 = vpop.eup %3685 }
 0x596   :  { %v3688_v35 = vpop.eup %3687 }
 0x597   :  { %v3690_v36 = vpop.eup %3689  ;;  %v1664_v63 = vmul.f32 %v3688_v35, %v3686_v34  ;;  %v4990_v34 = vld [vmem:[#allocation9 + $0x4] ss:$16 sps:$4 sm:$0xff]   ;;  %v4993_v35 = vld [vmem:[#allocation9 + $0xc] ss:$16 sps:$4 sm:$0xff]  }
 0x598   :  { %v1663_v56 = vmul.f32 %v3690_v36, %v4742_v5  ;;  %v3692_v57 = vpop.eup %3691  ;;  %v6503_v5 = vld [vmem:[#allocation15_spill] sm:$0xff]  ;;  %6523 = vst [vmem:[#allocation35_spill] sm:$0xff] %v4990_v34  ;;  %6524 = vst [vmem:[#allocation36_spill] sm:$0xff] %v4993_v35 }
 0x599   :  { %v4996_v36 = vld [vmem:[#allocation9] ss:$16 sps:$4 sm:$0xff]  }
 0x59a   :  { %v4955_v41 = vadd.f32 %v1664_v63, %v1663_v56  ;;  %6525 = vst [vmem:[#allocation37_spill] sm:$0xff] %v4996_v36  ;;  %v5002_v56 = vld [vmem:[#allocation6 + $0xe4] ss:$16 sps:$4 sm:$0xff]   ;;  %v5005_v63 = vld [vmem:[#allocation6 + $0xec] ss:$16 sps:$4 sm:$0xff]  }
 0x59b   :  { %6527 = vst [vmem:[#allocation39_spill] sm:$0xff] %v5002_v56  ;;  %6528 = vst [vmem:[#allocation40_spill] sm:$0xff] %v5005_v63 }
 0x59c   :  { %3693 = vtanh.f32 %v4955_v41 }
 0x5a9   :  { %v3694_v42 = vpop.eup %3693 }
 0x5aa   :  { %v1667_v11 = vmul.f32 %v3694_v42, %v3692_v57 }
 0x5ac   :  { %v4958_v43 = vpack.c.bf16 %v1667_v11, %v1667_v11 }
 0x5ae   :  { %1702 = vmatmul.mubr.bf16.vlgmr.msra.gmra.mxu0 %v4958_v43  ;;  %1743 = vmatmul.mubr.bf16.vlgmr.msra.gmra.mxu1 %v4958_v43 }
 0x5af   :  { %1781 = vmatpush1.bf16.msra.mxu0 %v4749_v60  ;;  %1822 = vmatpush1.bf16.msra.mxu1 %v4752_v6 }
 0x5b0   :  { %1782 = vmatprep.subr.bf16.mxu0 %v4755_v8  ;;  %1823 = vmatprep.subr.bf16.mxu1 %v4758_v12 }
 0x5b1   :  { %1812 = vmatprep.mubr.bf16.mxu0 %v6360_v4  ;;  %1853 = vmatprep.mubr.bf16.mxu1 %v6360_v4 }
 0x5b3   :  { %1783 = vmatpush1.bf16.msra.mxu0 %v4763_v62  ;;  %1824 = vmatpush1.bf16.msra.mxu1 %v4766_v54 }
 0x5b4   :  { %1784 = vmatprep.subr.bf16.mxu0 %v6503_v5  ;;  %1825 = vmatprep.subr.bf16.mxu1 %v6504_v47 }
 0x5b7   :  { %1785 = vmatpush1.bf16.msra.mxu0 %v6505_v48  ;;  %1826 = vmatpush1.bf16.msra.mxu1 %v6506_v15 }
 0x5b8   :  { %1786 = vmatprep.subr.bf16.mxu0 %v6507_v16  ;;  %1827 = vmatprep.subr.bf16.mxu1 %v6508_v49 }
 0x5bb   :  { %1787 = vmatpush1.bf16.msra.mxu0 %v6509_v17  ;;  %1828 = vmatpush1.bf16.msra.mxu1 %v6510_v20 }
 0x5bc   :  { %1788 = vmatprep.subr.bf16.mxu0 %v6511_v21  ;;  %1829 = vmatprep.subr.bf16.mxu1 %v6512_v22 }
 0x5bf   :  { %1789 = vmatpush1.bf16.msra.mxu0 %v6513_v23  ;;  %1830 = vmatpush1.bf16.msra.mxu1 %v6514_v24 }
 0x5c0   :  { %1790 = vmatprep.subr.bf16.mxu0 %v6515_v25  ;;  %1831 = vmatprep.subr.bf16.mxu1 %v6516_v26 }
 0x5c3   :  { %1791 = vmatpush1.bf16.msra.mxu0 %v6517_v27  ;;  %1832 = vmatpush1.bf16.msra.mxu1 %v6518_v28 }
 0x5c4   :  { %1792 = vmatprep.subr.bf16.mxu0 %v6519_v29  ;;  %1833 = vmatprep.subr.bf16.mxu1 %v6520_v30 }
 0x5c7   :  { %1793 = vmatpush1.bf16.msra.mxu0 %v6521_v31  ;;  %1834 = vmatpush1.bf16.msra.mxu1 %v6522_v32 }
 0x5c8   :  { %1794 = vmatprep.subr.bf16.mxu0 %v4990_v34  ;;  %1835 = vmatprep.subr.bf16.mxu1 %v4993_v35 }
 0x5cb   :  { %1795 = vmatpush1.bf16.msra.mxu0 %v4996_v36  ;;  %1836 = vmatpush1.bf16.msra.mxu1 %v4999_v38 }
 0x5cc   :  { %1862 = vmatprep.subr.bf16.mxu0 %v5002_v56  ;;  %1903 = vmatprep.subr.bf16.mxu1 %v5005_v63 }
 0x66e   :  { %v1703_v57 = vpop.f32.mrf.mxu0  ;;  %v1744_v42 = vpop.f32.mrf.mxu1 }
 0x66f   :  { %v1704_v11 = vadd.f32 %v1703_v57, %v4942_v39  ;;  %v1745_v63 = vadd.f32 %v1744_v42, %v4944_v40  ;;  %v5039_v42 = vld [vmem:[#allocation6 + $0x80] ss:$16 sps:$4 sm:$0xff]  }
 0x670   :  { %v1705_v35 = vpop.f32.mrf.mxu0  ;;  %v1746_v34 = vpop.f32.mrf.mxu1 }
 0x671   :  { %v1751_v36 = vadd.f32 %v1704_v11, %v4627_v14  ;;  %v1706_v32 = vadd.f32 %v1705_v35, %v4946_v45  ;;  %v1753_v39 = vadd.f32 %v1745_v63, %v4639_v33  ;;  %v1747_v57 = vadd.f32 %v1746_v34, %v4948_v52 }
 0x672   :  { %v1707_v31 = vpop.f32.mrf.mxu0  ;;  %v1748_v38 = vpop.f32.mrf.mxu1 }
 0x673   :  { %v3427_v30 = vmul.f32 -1.442695, %v1751_v36  ;;  %v1752_v29 = vadd.f32 %v1706_v32, %v4631_v19  ;;  %v3429_v26 = vmul.f32 -1.442695, %v1753_v39  ;;  %v1754_v45 = vadd.f32 %v1747_v57, %v4645_v37  ;;  %v5042_v39 = vld [vmem:[#allocation6 + $0x88] ss:$16 sps:$4 sm:$0xff]  }
 0x674   :  { %v1708_v56 = vpop.f32.mrf.mxu0  ;;  %v1749_v28 = vpop.f32.mrf.mxu1  ;;  %6529 = vst [vmem:[#allocation41_spill] sm:$0xff] %v5042_v39  ;;  %v5045_v57 = vld [vmem:[#allocation6 + $0x64] ss:$16 sps:$4 sm:$0xff]  }
 0x675   :  { %3695 = vpow2.f32 %v3427_v30  ;;  %v3428_v27 = vmul.f32 -1.442695, %v1752_v29  ;;  %6530 = vst [vmem:[#allocation42_spill] sm:$0xff] %v5045_v57 }
 0x677   :  { %3697 = vpow2.f32 %v3428_v27 }
 0x678   :  { %3699 = vpow2.f32 %v3429_v26 }
 0x682   :  { %v3696_v11 = vpop.eup %3695 }
 0x683   :  { %v1764_v31 = vadd.f32 1.0, %v3696_v11  ;;  %v5048_v11 = vld [vmem:[#allocation6 + $0x6c] ss:$16 sps:$4 sm:$0xff]  }
 0x684   :  { %v3698_v35 = vpop.eup %3697  ;;  %6531 = vst [vmem:[#allocation43_spill] sm:$0xff] %v5048_v11 }
 0x685   :  { %3701 = vrcp.f32 %v1764_v31  ;;  %v1765_v32 = vadd.f32 1.0, %v3698_v35  ;;  %v3700_v28 = vpop.eup %3699  ;;  %v5054_v31 = vld [vmem:[#allocation6 + $0x68] ss:$16 sps:$4 sm:$0xff]   ;;  %v5057_v35 = vld [vmem:[#allocation6 + $0x44] ss:$16 sps:$4 sm:$0xff]  }
 0x686   :  { %3703 = vtanh.f32 %v1754_v45  ;;  %v1766_v40 = vadd.f32 1.0, %v3700_v28  ;;  %v5051_v45 = vld [vmem:[#allocation6 + $0x60] ss:$16 sps:$4 sm:$0xff]   ;;  %6533 = vst [vmem:[#allocation45_spill] sm:$0xff] %v5054_v31  ;;  %6534 = vst [vmem:[#allocation46_spill] sm:$0xff] %v5057_v35 }
 0x687   :  { %3705 = vrcp.f32 %v1765_v32  ;;  %6532 = vst [vmem:[#allocation44_spill] sm:$0xff] %v5051_v45  ;;  %v5060_v32 = vld [vmem:[#allocation6 + $0x4c] ss:$16 sps:$4 sm:$0xff]   ;;  %v5063_v28 = vld [vmem:[#allocation6 + $0x40] ss:$16 sps:$4 sm:$0xff]  }
 0x688   :  { %3707 = vrcp.f32 %v1766_v40  ;;  %6535 = vst [vmem:[#allocation47_spill] sm:$0xff] %v5060_v32  ;;  %6536 = vst [vmem:[#allocation48_spill] sm:$0xff] %v5063_v28  ;;  %v5075_v40 = vld [vmem:[#allocation6 + $0x20] ss:$16 sps:$4 sm:$0xff]  }
 0x689   :  { %6540 = vst [vmem:[#allocation52_spill] sm:$0xff] %v5075_v40 }
 0x692   :  { %v3702_v29 = vpop.eup %3701 }
 0x693   :  { %v3704_v27 = vpop.eup %3703 }
 0x694   :  { %v3706_v30 = vpop.eup %3705  ;;  %v1775_v38 = vmul.f32 %v3704_v27, %v3702_v29  ;;  %v5066_v29 = vld [vmem:[#allocation6 + $0x48] ss:$16 sps:$4 sm:$0xff]   ;;  %v5069_v27 = vld [vmem:[#allocation6 + $0x24] ss:$16 sps:$4 sm:$0xff]  }
 0x695   :  { %v1774_v36 = vmul.f32 %v3706_v30, %v4844_v58  ;;  %v3708_v34 = vpop.eup %3707  ;;  %v5036_v58 = vld [vmem:[#allocation6 + $0x8c] ss:$16 sps:$4 sm:$0xff]   ;;  %6537 = vst [vmem:[#allocation49_spill] sm:$0xff] %v5066_v29  ;;  %6538 = vst [vmem:[#allocation50_spill] sm:$0xff] %v5069_v27 }
 0x696   :  { %v5072_v30 = vld [vmem:[#allocation6 + $0x2c] ss:$16 sps:$4 sm:$0xff]  }
 0x697   :  { %v5017_v52 = vadd.f32 %v1775_v38, %v1774_v36  ;;  %6539 = vst [vmem:[#allocation51_spill] sm:$0xff] %v5072_v30  ;;  %v5078_v36 = vld [vmem:[#allocation6 + $0x28] ss:$16 sps:$4 sm:$0xff]   ;;  %v5081_v38 = vld [vmem:[#allocation6 + $0x4] ss:$16 sps:$4 sm:$0xff]  }
 0x698   :  { %6541 = vst [vmem:[#allocation53_spill] sm:$0xff] %v5078_v36  ;;  %6542 = vst [vmem:[#allocation54_spill] sm:$0xff] %v5081_v38 }
 0x699   :  { %3709 = vtanh.f32 %v5017_v52 }
 0x6a6   :  { %v3710_v56 = vpop.eup %3709 }
 0x6a7   :  { %v1778_v26 = vmul.f32 %v3710_v56, %v3708_v34  ;;  %v5084_v34 = vld [vmem:[#allocation6 + $0xc] ss:$16 sps:$4 sm:$0xff]   ;;  %v5087_v56 = vld [vmem:[#allocation6] ss:$16 sps:$4 sm:$0xff]  }
 0x6a8   :  { %6543 = vst [vmem:[#allocation55_spill] sm:$0xff] %v5084_v34  ;;  %6544 = vst [vmem:[#allocation56_spill] sm:$0xff] %v5087_v56 }
 0x6a9   :  { %v1779_v63 = vpack.c.bf16 %v1778_v26, %v1778_v26  ;;  %3301 = vst [vmem:[%s5967_s7 + $0x4] sm:$0x3] %v1778_v26  ;;  %v5090_v26 = vld [vmem:[#allocation6 + $0x8] ss:$16 sps:$4 sm:$0xff]  }
 0x6aa   :  { %6545 = vst [vmem:[#allocation57_spill] sm:$0xff] %v5090_v26 }
 0x6ab   :  { %1813 = vmatmul.mubr.bf16.vlgmr.msra.gmra.mxu0 %v1779_v63  ;;  %1854 = vmatmul.mubr.bf16.vlgmr.msra.gmra.mxu1 %v1779_v63  ;;  %v5093_v63 = vld [vmem:[#allocation7 + $0xe4] ss:$16 sps:$4 sm:$0xff]  }
 0x6ac   :  { %1863 = vmatpush1.bf16.msra.mxu0 %v4850_v44  ;;  %1904 = vmatpush1.bf16.msra.mxu1 %v4853_v1  ;;  %6546 = vst [vmem:[#allocation58_spill] sm:$0xff] %v5093_v63 }
 0x6ad   :  { %1864 = vmatprep.subr.bf16.mxu0 %v4856_v13  ;;  %1905 = vmatprep.subr.bf16.mxu1 %v4859_v53 }
 0x6ae   :  { %1894 = vmatprep.mubr.bf16.mxu0 %v6360_v4  ;;  %1935 = vmatprep.mubr.bf16.mxu1 %v6360_v4 }
 0x6b0   :  { %1865 = vmatpush1.bf16.msra.mxu0 %v4864_v51  ;;  %1906 = vmatpush1.bf16.msra.mxu1 %v4867_v46 }
 0x6b1   :  { %1866 = vmatprep.subr.bf16.mxu0 %v4870_v10  ;;  %1907 = vmatprep.subr.bf16.mxu1 %v4873_v7 }
 0x6b4   :  { %1867 = vmatpush1.bf16.msra.mxu0 %v4876_v59  ;;  %1908 = vmatpush1.bf16.msra.mxu1 %v4879_v9 }
 0x6b5   :  { %1868 = vmatprep.subr.bf16.mxu0 %v4882_v50  ;;  %1909 = vmatprep.subr.bf16.mxu1 %v5036_v58 }
 0x6b8   :  { %1869 = vmatpush1.bf16.msra.mxu0 %v5039_v42  ;;  %1910 = vmatpush1.bf16.msra.mxu1 %v5042_v39 }
 0x6b9   :  { %1870 = vmatprep.subr.bf16.mxu0 %v5045_v57  ;;  %1911 = vmatprep.subr.bf16.mxu1 %v5048_v11 }
 0x6bc   :  { %1871 = vmatpush1.bf16.msra.mxu0 %v5051_v45  ;;  %1912 = vmatpush1.bf16.msra.mxu1 %v5054_v31 }
 0x6bd   :  { %1872 = vmatprep.subr.bf16.mxu0 %v5057_v35  ;;  %1913 = vmatprep.subr.bf16.mxu1 %v5060_v32 }
 0x6c0   :  { %1873 = vmatpush1.bf16.msra.mxu0 %v5063_v28  ;;  %1914 = vmatpush1.bf16.msra.mxu1 %v5066_v29 }
 0x6c1   :  { %1874 = vmatprep.subr.bf16.mxu0 %v5069_v27  ;;  %1915 = vmatprep.subr.bf16.mxu1 %v5072_v30 }
 0x6c4   :  { %1875 = vmatpush1.bf16.msra.mxu0 %v5075_v40  ;;  %1916 = vmatpush1.bf16.msra.mxu1 %v5078_v36  ;;  %v5096_v36 = vld [vmem:[#allocation7 + $0xec] ss:$16 sps:$4 sm:$0xff]  }
 0x6c5   :  { %1876 = vmatprep.subr.bf16.mxu0 %v5081_v38  ;;  %1917 = vmatprep.subr.bf16.mxu1 %v5084_v34  ;;  %6547 = vst [vmem:[#allocation59_spill] sm:$0xff] %v5096_v36  ;;  %v5101_v34 = vld [vmem:[#allocation7 + $0xe0] ss:$16 sps:$4 sm:$0xff]  }
 0x6c6   :  { %6548 = vst [vmem:[#allocation60_spill] sm:$0xff] %v5101_v34 }
 0x6c8   :  { %1877 = vmatpush1.bf16.msra.mxu0 %v5087_v56  ;;  %1918 = vmatpush1.bf16.msra.mxu1 %v5090_v26  ;;  %v5104_v56 = vld [vmem:[#allocation7 + $0xe8] ss:$16 sps:$4 sm:$0xff]   ;;  %v5107_v26 = vld [vmem:[#allocation7 + $0xc4] ss:$16 sps:$4 sm:$0xff]  }
 0x6c9   :  { %1973 = vmatprep.subr.bf16.mxu0 %v5093_v63  ;;  %2014 = vmatprep.subr.bf16.mxu1 %v5096_v36  ;;  %6549 = vst [vmem:[#allocation61_spill] sm:$0xff] %v5104_v56  ;;  %6550 = vst [vmem:[#allocation62_spill] sm:$0xff] %v5107_v26  ;;  %v5110_v63 = vld [vmem:[#allocation7 + $0xcc] ss:$16 sps:$4 sm:$0xff]   ;;  %v5130_v36 = vld [vmem:[#allocation7 + $0xa8] ss:$16 sps:$4 sm:$0xff]  }
 0x6ca   :  { %6551 = vst [vmem:[#allocation63_spill] sm:$0xff] %v5110_v63  ;;  %6557 = vst [vmem:[#allocation69_spill] sm:$0xff] %v5130_v36 }
 0x6cb   :  { %1895 = vmatmul.mubr.bf16.vlgmr.msra.gmra.mxu0 %v4958_v43  ;;  %1936 = vmatmul.mubr.bf16.vlgmr.msra.gmra.mxu1 %v4958_v43  ;;  %v5115_v43 = vld [vmem:[#allocation7 + $0xc0] ss:$16 sps:$4 sm:$0xff]  }
 0x6cc   :  { %1974 = vmatpush1.bf16.msra.mxu0 %v5101_v34  ;;  %2015 = vmatpush1.bf16.msra.mxu1 %v5104_v56  ;;  %6552 = vst [vmem:[#allocation64_spill] sm:$0xff] %v5115_v43  ;;  %v5118_v34 = vld [vmem:[#allocation7 + $0xc8] ss:$16 sps:$4 sm:$0xff]   ;;  %v5121_v56 = vld [vmem:[#allocation7 + $0xa4] ss:$16 sps:$4 sm:$0xff]  }
 0x6cd   :  { %1975 = vmatprep.subr.bf16.mxu0 %v5107_v26  ;;  %2016 = vmatprep.subr.bf16.mxu1 %v5110_v63  ;;  %6553 = vst [vmem:[#allocation65_spill] sm:$0xff] %v5118_v34  ;;  %6554 = vst [vmem:[#allocation66_spill] sm:$0xff] %v5121_v56  ;;  %v5124_v26 = vld [vmem:[#allocation7 + $0xac] ss:$16 sps:$4 sm:$0xff]   ;;  %v5127_v63 = vld [vmem:[#allocation7 + $0xa0] ss:$16 sps:$4 sm:$0xff]  }
 0x6ce   :  { %2005 = vmatprep.mubr.bf16.mxu0 %v6360_v4  ;;  %2046 = vmatprep.mubr.bf16.mxu1 %v6360_v4  ;;  %6555 = vst [vmem:[#allocation67_spill] sm:$0xff] %v5124_v26  ;;  %6556 = vst [vmem:[#allocation68_spill] sm:$0xff] %v5127_v63 }
 0x6d0   :  { %1976 = vmatpush1.bf16.msra.mxu0 %v5115_v43  ;;  %2017 = vmatpush1.bf16.msra.mxu1 %v5118_v34  ;;  %v5133_v43 = vld [vmem:[#allocation7 + $0x84] ss:$16 sps:$4 sm:$0xff]   ;;  %v5136_v34 = vld [vmem:[#allocation7 + $0x8c] ss:$16 sps:$4 sm:$0xff]  }
 0x6d1   :  { %1977 = vmatprep.subr.bf16.mxu0 %v5121_v56  ;;  %2018 = vmatprep.subr.bf16.mxu1 %v5124_v26  ;;  %6558 = vst [vmem:[#allocation13_spill] sm:$0xff] %v5133_v43  ;;  %6559 = vst [vmem:[#allocation14_spill] sm:$0xff] %v5136_v34  ;;  %v5139_v56 = vld [vmem:[#allocation7 + $0x80] ss:$16 sps:$4 sm:$0xff]   ;;  %v5142_v26 = vld [vmem:[#allocation7 + $0x88] ss:$16 sps:$4 sm:$0xff]  }
 0x6d2   :  { %6560 = vst [vmem:[#allocation15_spill] sm:$0xff] %v5139_v56  ;;  %6561 = vst [vmem:[#allocation16_spill] sm:$0xff] %v5142_v26 }
 0x6d4   :  { %1978 = vmatpush1.bf16.msra.mxu0 %v5127_v63  ;;  %2019 = vmatpush1.bf16.msra.mxu1 %v5130_v36  ;;  %v5145_v63 = vld [vmem:[#allocation7 + $0x64] ss:$16 sps:$4 sm:$0xff]   ;;  %v5148_v36 = vld [vmem:[#allocation7 + $0x6c] ss:$16 sps:$4 sm:$0xff]  }
 0x6d5   :  { %1979 = vmatprep.subr.bf16.mxu0 %v5133_v43  ;;  %2020 = vmatprep.subr.bf16.mxu1 %v5136_v34  ;;  %6562 = vst [vmem:[#allocation17_spill] sm:$0xff] %v5145_v63  ;;  %6563 = vst [vmem:[#allocation18_spill] sm:$0xff] %v5148_v36  ;;  %v5151_v43 = vld [vmem:[#allocation7 + $0x60] ss:$16 sps:$4 sm:$0xff]   ;;  %v5154_v34 = vld [vmem:[#allocation7 + $0x68] ss:$16 sps:$4 sm:$0xff]  }
 0x6d6   :  { %6564 = vst [vmem:[#allocation19_spill] sm:$0xff] %v5151_v43  ;;  %6565 = vst [vmem:[#allocation20_spill] sm:$0xff] %v5154_v34 }
 0x6d8   :  { %1980 = vmatpush1.bf16.msra.mxu0 %v5139_v56  ;;  %2021 = vmatpush1.bf16.msra.mxu1 %v5142_v26  ;;  %v5157_v56 = vld [vmem:[#allocation7 + $0x44] ss:$16 sps:$4 sm:$0xff]   ;;  %v5160_v26 = vld [vmem:[#allocation7 + $0x4c] ss:$16 sps:$4 sm:$0xff]  }
 0x6d9   :  { %1981 = vmatprep.subr.bf16.mxu0 %v5145_v63  ;;  %2022 = vmatprep.subr.bf16.mxu1 %v5148_v36  ;;  %6566 = vst [vmem:[#allocation21_spill] sm:$0xff] %v5157_v56  ;;  %6567 = vst [vmem:[#allocation22_spill] sm:$0xff] %v5160_v26  ;;  %v5163_v63 = vld [vmem:[#allocation7 + $0x40] ss:$16 sps:$4 sm:$0xff]   ;;  %v5166_v36 = vld [vmem:[#allocation7 + $0x48] ss:$16 sps:$4 sm:$0xff]  }
 0x6da   :  { %6568 = vst [vmem:[#allocation23_spill] sm:$0xff] %v5163_v63  ;;  %6569 = vst [vmem:[#allocation24_spill] sm:$0xff] %v5166_v36 }
 0x6dc   :  { %1982 = vmatpush1.bf16.msra.mxu0 %v5151_v43  ;;  %2023 = vmatpush1.bf16.msra.mxu1 %v5154_v34  ;;  %v5169_v43 = vld [vmem:[#allocation7 + $0x24] ss:$16 sps:$4 sm:$0xff]   ;;  %v5172_v34 = vld [vmem:[#allocation7 + $0x2c] ss:$16 sps:$4 sm:$0xff]  }
 0x6dd   :  { %1983 = vmatprep.subr.bf16.mxu0 %v5157_v56  ;;  %2024 = vmatprep.subr.bf16.mxu1 %v5160_v26  ;;  %6570 = vst [vmem:[#allocation25_spill] sm:$0xff] %v5169_v43  ;;  %6571 = vst [vmem:[#allocation26_spill] sm:$0xff] %v5172_v34  ;;  %v5175_v56 = vld [vmem:[#allocation7 + $0x20] ss:$16 sps:$4 sm:$0xff]   ;;  %v5178_v26 = vld [vmem:[#allocation7 + $0x28] ss:$16 sps:$4 sm:$0xff]  }
 0x6de   :  { %6572 = vst [vmem:[#allocation27_spill] sm:$0xff] %v5175_v56  ;;  %6573 = vst [vmem:[#allocation70_spill] sm:$0xff] %v5178_v26 }
 0x6e0   :  { %1984 = vmatpush1.bf16.msra.mxu0 %v5163_v63  ;;  %2025 = vmatpush1.bf16.msra.mxu1 %v5166_v36  ;;  %v5181_v63 = vld [vmem:[#allocation7 + $0x4] ss:$16 sps:$4 sm:$0xff]   ;;  %v5184_v36 = vld [vmem:[#allocation7 + $0xc] ss:$16 sps:$4 sm:$0xff]  }
 0x6e1   :  { %1985 = vmatprep.subr.bf16.mxu0 %v5169_v43  ;;  %2026 = vmatprep.subr.bf16.mxu1 %v5172_v34  ;;  %6574 = vst [vmem:[#allocation71_spill] sm:$0xff] %v5181_v63  ;;  %6575 = vst [vmem:[#allocation72_spill] sm:$0xff] %v5184_v36  ;;  %v5187_v43 = vld [vmem:[#allocation7] ss:$16 sps:$4 sm:$0xff]   ;;  %v5190_v34 = vld [vmem:[#allocation7 + $0x8] ss:$16 sps:$4 sm:$0xff]  }
 0x6e2   :  { %6576 = vst [vmem:[#allocation73_spill] sm:$0xff] %v5187_v43  ;;  %6577 = vst [vmem:[#allocation74_spill] sm:$0xff] %v5190_v34 }
 0x6e4   :  { %1986 = vmatpush1.bf16.msra.mxu0 %v5175_v56  ;;  %2027 = vmatpush1.bf16.msra.mxu1 %v5178_v26 }
 0x6e5   :  { %1987 = vmatprep.subr.bf16.mxu0 %v5181_v63  ;;  %2028 = vmatprep.subr.bf16.mxu1 %v5184_v36 }
 0x6e8   :  { %1988 = vmatpush1.bf16.msra.mxu0 %v5187_v43  ;;  %2029 = vmatpush1.bf16.msra.mxu1 %v5190_v34 }
 0x6e9   :  { %2084 = vmatprep.subr.bf16.mxu0 %v6501_v2  ;;  %2125 = vmatprep.subr.bf16.mxu1 %v6502_v18 }
 0x76b   :  { %v5195_v26 = vpop.f32.mrf.mxu0  ;;  %v5197_v56 = vpop.f32.mrf.mxu1 }
 0x76d   :  { %v5199_v63 = vpop.f32.mrf.mxu0  ;;  %v5201_v38 = vpop.f32.mrf.mxu1 }
 0x76f   :  { %v1818_v36 = vpop.f32.mrf.mxu0  ;;  %v1859_v40 = vpop.f32.mrf.mxu1 }
 0x771   :  { %v1819_v30 = vpop.f32.mrf.mxu0  ;;  %v1860_v43 = vpop.f32.mrf.mxu1 }
 0x78b   :  { %v1896_v27 = vpop.f32.mrf.mxu0  ;;  %v1937_v29 = vpop.f32.mrf.mxu1 }
 0x78c   :  { %v1944_v34 = vadd.f32 %v1896_v27, %v4563_v0  ;;  %v1946_v40 = vadd.f32 %v1937_v29, %v4573_v3 }
 0x78d   :  { %v1898_v28 = vpop.f32.mrf.mxu0  ;;  %v1939_v2 = vpop.f32.mrf.mxu1 }
 0x78e   :  { %v3430_v32 = vmul.f32 -1.442695, %v1944_v34  ;;  %v1945_v18 = vadd.f32 %v1898_v28, %v4565_v61  ;;  %v3432_v30 = vmul.f32 -1.442695, %v1946_v40  ;;  %v1947_v43 = vadd.f32 %v1939_v2, %v4578_v55 }
 0x78f   :  { %v1900_v35 = vpop.f32.mrf.mxu0  ;;  %v1941_v31 = vpop.f32.mrf.mxu1 }
 0x790   :  { %3711 = vpow2.f32 %v3430_v32  ;;  %v3431_v45 = vmul.f32 -1.442695, %v1945_v18 }
 0x791   :  { %v1901_v11 = vpop.f32.mrf.mxu0  ;;  %v1942_v57 = vpop.f32.mrf.mxu1 }
 0x792   :  { %3713 = vpow2.f32 %v3431_v45 }
 0x793   :  { %3715 = vpow2.f32 %v3432_v30 }
 0x79d   :  { %v3712_v36 = vpop.eup %3711 }
 0x79e   :  { %v1957_v39 = vadd.f32 1.0, %v3712_v36 }
 0x79f   :  { %v3714_v27 = vpop.eup %3713 }
 0x7a0   :  { %3717 = vrcp.f32 %v1957_v39  ;;  %v1958_v34 = vadd.f32 1.0, %v3714_v27  ;;  %v3716_v35 = vpop.eup %3715 }
 0x7a1   :  { %3719 = vtanh.f32 %v1947_v43  ;;  %v1959_v11 = vadd.f32 1.0, %v3716_v35 }
 0x7a2   :  { %3721 = vrcp.f32 %v1958_v34 }
 0x7a3   :  { %3723 = vrcp.f32 %v1959_v11 }
 0x7ad   :  { %v3718_v31 = vpop.eup %3717 }
 0x7ae   :  { %v3720_v32 = vpop.eup %3719 }
 0x7af   :  { %v3722_v28 = vpop.eup %3721  ;;  %v1968_v45 = vmul.f32 %v3720_v32, %v3718_v31 }
 0x7b0   :  { %v1967_v57 = vmul.f32 %v3722_v28, %v4955_v41  ;;  %v3724_v2 = vpop.eup %3723  ;;  %v6584_v41 = vld [vmem:[#allocation34_spill] sm:$0xff] }
 0x7b2   :  { %v5208_v29 = vadd.f32 %v1968_v45, %v1967_v57 }
 0x7b4   :  { %3725 = vtanh.f32 %v5208_v29 }
 0x7c1   :  { %v3726_v18 = vpop.eup %3725 }
 0x7c2   :  { %v1971_v40 = vmul.f32 %v3726_v18, %v3724_v2 }
 0x7c4   :  { %v5211_v39 = vpack.c.bf16 %v1971_v40, %v1971_v40 }
 0x7c6   :  { %2006 = vmatmul.mubr.bf16.vlgmr.msra.gmra.mxu0 %v5211_v39  ;;  %2047 = vmatmul.mubr.bf16.vlgmr.msra.gmra.mxu1 %v5211_v39 }
 0x7c7   :  { %2085 = vmatpush1.bf16.msra.mxu0 %v4749_v60  ;;  %2126 = vmatpush1.bf16.msra.mxu1 %v4752_v6  ;;  %v6578_v60 = vld [vmem:[#allocation28_spill] sm:$0xff]  ;;  %v6579_v6 = vld [vmem:[#allocation29_spill] sm:$0xff] }
 0x7c8   :  { %2086 = vmatprep.subr.bf16.mxu0 %v4755_v8  ;;  %2127 = vmatprep.subr.bf16.mxu1 %v4758_v12  ;;  %v6580_v8 = vld [vmem:[#allocation30_spill] sm:$0xff]  ;;  %v6581_v12 = vld [vmem:[#allocation31_spill] sm:$0xff] }
 0x7c9   :  { %2116 = vmatprep.mubr.bf16.mxu0 %v6360_v4  ;;  %2157 = vmatprep.mubr.bf16.mxu1 %v6360_v4 }
 0x7cb   :  { %2087 = vmatpush1.bf16.msra.mxu0 %v4763_v62  ;;  %2128 = vmatpush1.bf16.msra.mxu1 %v4766_v54  ;;  %v6582_v62 = vld [vmem:[#allocation32_spill] sm:$0xff]  ;;  %v6583_v54 = vld [vmem:[#allocation33_spill] sm:$0xff] }
 0x7cc   :  { %2088 = vmatprep.subr.bf16.mxu0 %v6503_v5  ;;  %2129 = vmatprep.subr.bf16.mxu1 %v6504_v47  ;;  %v6585_v5 = vld [vmem:[#allocation35_spill] sm:$0xff]  ;;  %v6586_v47 = vld [vmem:[#allocation36_spill] sm:$0xff] }
 0x7cf   :  { %2089 = vmatpush1.bf16.msra.mxu0 %v6505_v48  ;;  %2130 = vmatpush1.bf16.msra.mxu1 %v6506_v15  ;;  %v6587_v48 = vld [vmem:[#allocation37_spill] sm:$0xff]  ;;  %v6588_v15 = vld [vmem:[#allocation38_spill] sm:$0xff] }
 0x7d0   :  { %2090 = vmatprep.subr.bf16.mxu0 %v6507_v16  ;;  %2131 = vmatprep.subr.bf16.mxu1 %v6508_v49  ;;  %v6589_v16 = vld [vmem:[#allocation39_spill] sm:$0xff]  ;;  %v6590_v49 = vld [vmem:[#allocation40_spill] sm:$0xff] }
 0x7d3   :  { %2091 = vmatpush1.bf16.msra.mxu0 %v6509_v17  ;;  %2132 = vmatpush1.bf16.msra.mxu1 %v6510_v20 }
 0x7d4   :  { %2092 = vmatprep.subr.bf16.mxu0 %v6511_v21  ;;  %2133 = vmatprep.subr.bf16.mxu1 %v6512_v22 }
 0x7d7   :  { %2093 = vmatpush1.bf16.msra.mxu0 %v6513_v23  ;;  %2134 = vmatpush1.bf16.msra.mxu1 %v6514_v24 }
 0x7d8   :  { %2094 = vmatprep.subr.bf16.mxu0 %v6515_v25  ;;  %2135 = vmatprep.subr.bf16.mxu1 %v6578_v60 }
 0x7db   :  { %2095 = vmatpush1.bf16.msra.mxu0 %v6579_v6  ;;  %2136 = vmatpush1.bf16.msra.mxu1 %v6580_v8 }
 0x7dc   :  { %2096 = vmatprep.subr.bf16.mxu0 %v6581_v12  ;;  %2137 = vmatprep.subr.bf16.mxu1 %v6582_v62 }
 0x7df   :  { %2097 = vmatpush1.bf16.msra.mxu0 %v6583_v54  ;;  %2138 = vmatpush1.bf16.msra.mxu1 %v6584_v41 }
 0x7e0   :  { %2098 = vmatprep.subr.bf16.mxu0 %v6585_v5  ;;  %2139 = vmatprep.subr.bf16.mxu1 %v6586_v47 }
 0x7e3   :  { %2099 = vmatpush1.bf16.msra.mxu0 %v6587_v48  ;;  %2140 = vmatpush1.bf16.msra.mxu1 %v6588_v15 }
 0x7e4   :  { %2166 = vmatprep.subr.bf16.mxu0 %v6589_v16  ;;  %2207 = vmatprep.subr.bf16.mxu1 %v6590_v49 }
 0x886   :  { %v2007_v17 = vpop.f32.mrf.mxu0  ;;  %v2048_v20 = vpop.f32.mrf.mxu1 }
 0x887   :  { %v2008_v21 = vadd.f32 %v2007_v17, %v5195_v26  ;;  %v2049_v32 = vadd.f32 %v2048_v20, %v5197_v56 }
 0x888   :  { %v2009_v22 = vpop.f32.mrf.mxu0  ;;  %v2050_v23 = vpop.f32.mrf.mxu1 }
 0x889   :  { %v2055_v24 = vadd.f32 %v2008_v21, %v4627_v14  ;;  %v2010_v25 = vadd.f32 %v2009_v22, %v5199_v63  ;;  %v2057_v26 = vadd.f32 %v2049_v32, %v4639_v33  ;;  %v2051_v28 = vadd.f32 %v2050_v23, %v5201_v38  ;;  %v6603_v21 = vld [vmem:[#allocation53_spill] sm:$0xff]  ;;  %v6604_v22 = vld [vmem:[#allocation54_spill] sm:$0xff]  ;;  %v6605_v23 = vld [vmem:[#allocation55_spill] sm:$0xff] }
 0x88a   :  { %v2011_v30 = vpop.f32.mrf.mxu0  ;;  %v2052_v36 = vpop.f32.mrf.mxu1  ;;  %v6615_v32 = vld [vmem:[#allocation65_spill] sm:$0xff] }
 0x88b   :  { %v3433_v43 = vmul.f32 -1.442695, %v2055_v24  ;;  %v2056_v27 = vadd.f32 %v2010_v25, %v4631_v19  ;;  %v3435_v11 = vmul.f32 -1.442695, %v2057_v26  ;;  %v2058_v63 = vadd.f32 %v2051_v28, %v4645_v37  ;;  %v6606_v24 = vld [vmem:[#allocation56_spill] sm:$0xff]  ;;  %v6607_v25 = vld [vmem:[#allocation57_spill] sm:$0xff] }
 0x88c   :  { %v2012_v34 = vpop.f32.mrf.mxu0  ;;  %v2053_v35 = vpop.f32.mrf.mxu1  ;;  %v6608_v30 = vld [vmem:[#allocation58_spill] sm:$0xff]  ;;  %v6609_v36 = vld [vmem:[#allocation59_spill] sm:$0xff] }
 0x88d   :  { %3727 = vpow2.f32 %v3433_v43  ;;  %v3434_v31 = vmul.f32 -1.442695, %v2056_v27  ;;  %v6610_v43 = vld [vmem:[#allocation60_spill] sm:$0xff]  ;;  %v6611_v27 = vld [vmem:[#allocation61_spill] sm:$0xff]  ;;  %v6612_v34 = vld [vmem:[#allocation62_spill] sm:$0xff] }
 0x88e   :  { %v6613_v35 = vld [vmem:[#allocation63_spill] sm:$0xff]  ;;  %v6616_v26 = vld [vmem:[#allocation66_spill] sm:$0xff] }
 0x88f   :  { %3729 = vpow2.f32 %v3434_v31  ;;  %v6614_v31 = vld [vmem:[#allocation64_spill] sm:$0xff]  ;;  %v6617_v28 = vld [vmem:[#allocation67_spill] sm:$0xff] }
 0x890   :  { %3731 = vpow2.f32 %v3435_v11  ;;  %v6619_v11 = vld [vmem:[#allocation69_spill] sm:$0xff] }
 0x89a   :  { %v3728_v57 = vpop.eup %3727 }
 0x89b   :  { %v2068_v45 = vadd.f32 1.0, %v3728_v57  ;;  %v6620_v57 = vld [vmem:[#allocation13_spill] sm:$0xff] }
 0x89c   :  { %v3730_v2 = vpop.eup %3729 }
 0x89d   :  { %3733 = vrcp.f32 %v2068_v45  ;;  %v2069_v18 = vadd.f32 1.0, %v3730_v2  ;;  %v3732_v40 = vpop.eup %3731  ;;  %v6622_v45 = vld [vmem:[#allocation15_spill] sm:$0xff]  ;;  %v6623_v2 = vld [vmem:[#allocation16_spill] sm:$0xff] }
 0x89e   :  { %3735 = vtanh.f32 %v2058_v63  ;;  %v2070_v56 = vadd.f32 1.0, %v3732_v40  ;;  %v6621_v63 = vld [vmem:[#allocation14_spill] sm:$0xff] }
 0x89f   :  { %3737 = vrcp.f32 %v2069_v18  ;;  %v6624_v18 = vld [vmem:[#allocation17_spill] sm:$0xff]  ;;  %v6625_v40 = vld [vmem:[#allocation18_spill] sm:$0xff] }
 0x8a0   :  { %3739 = vrcp.f32 %v2070_v56  ;;  %v6629_v56 = vld [vmem:[#allocation22_spill] sm:$0xff] }
 0x8aa   :  { %v3734_v60 = vpop.eup %3733 }
 0x8ab   :  { %v3736_v6 = vpop.eup %3735 }
 0x8ac   :  { %v3738_v8 = vpop.eup %3737  ;;  %v2079_v62 = vmul.f32 %v3736_v6, %v3734_v60  ;;  %v6626_v60 = vld [vmem:[#allocation19_spill] sm:$0xff]  ;;  %v6627_v6 = vld [vmem:[#allocation20_spill] sm:$0xff] }
 0x8ad   :  { %v2078_v12 = vmul.f32 %v3738_v8, %v5017_v52  ;;  %v3740_v54 = vpop.eup %3739  ;;  %v6602_v52 = vld [vmem:[#allocation52_spill] sm:$0xff]  ;;  %v6628_v8 = vld [vmem:[#allocation21_spill] sm:$0xff] }
 0x8af   :  { %v5258_v38 = vadd.f32 %v2079_v62, %v2078_v12  ;;  %v6630_v12 = vld [vmem:[#allocation23_spill] sm:$0xff]  ;;  %v6631_v62 = vld [vmem:[#allocation24_spill] sm:$0xff] }
 0x8b1   :  { %3741 = vtanh.f32 %v5258_v38 }
 0x8be   :  { %v3742_v41 = vpop.eup %3741 }
 0x8bf   :  { %v2082_v17 = vmul.f32 %v3742_v41, %v3740_v54  ;;  %v6632_v54 = vld [vmem:[#allocation25_spill] sm:$0xff]  ;;  %v6633_v41 = vld [vmem:[#allocation26_spill] sm:$0xff] }
 0x8c1   :  { %v2083_v20 = vpack.c.bf16 %v2082_v17, %v2082_v17  ;;  %3302 = vst [vmem:[%s5967_s7 + $0x6] sm:$0x3] %v2082_v17  ;;  %v6634_v17 = vld [vmem:[#allocation27_spill] sm:$0xff] }
 0x8c3   :  { %2117 = vmatmul.mubr.bf16.vlgmr.msra.gmra.mxu0 %v2083_v20  ;;  %2158 = vmatmul.mubr.bf16.vlgmr.msra.gmra.mxu1 %v2083_v20  ;;  %v6635_v20 = vld [vmem:[#allocation70_spill] sm:$0xff] }
 0x8c4   :  { %2167 = vmatpush1.bf16.msra.mxu0 %v4850_v44  ;;  %2208 = vmatpush1.bf16.msra.mxu1 %v4853_v1  ;;  %v6591_v44 = vld [vmem:[#allocation41_spill] sm:$0xff]  ;;  %v6592_v1 = vld [vmem:[#allocation42_spill] sm:$0xff] }
 0x8c5   :  { %2168 = vmatprep.subr.bf16.mxu0 %v4856_v13  ;;  %2209 = vmatprep.subr.bf16.mxu1 %v4859_v53  ;;  %v6593_v13 = vld [vmem:[#allocation43_spill] sm:$0xff]  ;;  %v6594_v53 = vld [vmem:[#allocation44_spill] sm:$0xff] }
 0x8c6   :  { %2198 = vmatprep.mubr.bf16.mxu0 %v6360_v4  ;;  %2239 = vmatprep.mubr.bf16.mxu1 %v6360_v4 }
 0x8c8   :  { %2169 = vmatpush1.bf16.msra.mxu0 %v4864_v51  ;;  %2210 = vmatpush1.bf16.msra.mxu1 %v4867_v46  ;;  %v6595_v51 = vld [vmem:[#allocation45_spill] sm:$0xff]  ;;  %v6596_v46 = vld [vmem:[#allocation46_spill] sm:$0xff] }
 0x8c9   :  { %2170 = vmatprep.subr.bf16.mxu0 %v4870_v10  ;;  %2211 = vmatprep.subr.bf16.mxu1 %v4873_v7  ;;  %v6597_v10 = vld [vmem:[#allocation47_spill] sm:$0xff]  ;;  %v6598_v7 = vld [vmem:[#allocation48_spill] sm:$0xff] }
 0x8cc   :  { %2171 = vmatpush1.bf16.msra.mxu0 %v4876_v59  ;;  %2212 = vmatpush1.bf16.msra.mxu1 %v4879_v9  ;;  %v6599_v59 = vld [vmem:[#allocation49_spill] sm:$0xff]  ;;  %v6600_v9 = vld [vmem:[#allocation50_spill] sm:$0xff] }
 0x8cd   :  { %2172 = vmatprep.subr.bf16.mxu0 %v4882_v50  ;;  %2213 = vmatprep.subr.bf16.mxu1 %v5036_v58  ;;  %v6601_v50 = vld [vmem:[#allocation51_spill] sm:$0xff] }
 0x8d0   :  { %2173 = vmatpush1.bf16.msra.mxu0 %v5039_v42  ;;  %2214 = vmatpush1.bf16.msra.mxu1 %v6591_v44 }
 0x8d1   :  { %2174 = vmatprep.subr.bf16.mxu0 %v6592_v1  ;;  %2215 = vmatprep.subr.bf16.mxu1 %v6593_v13 }
 0x8d4   :  { %2175 = vmatpush1.bf16.msra.mxu0 %v6594_v53  ;;  %2216 = vmatpush1.bf16.msra.mxu1 %v6595_v51 }
 0x8d5   :  { %2176 = vmatprep.subr.bf16.mxu0 %v6596_v46  ;;  %2217 = vmatprep.subr.bf16.mxu1 %v6597_v10 }
 0x8d8   :  { %2177 = vmatpush1.bf16.msra.mxu0 %v6598_v7  ;;  %2218 = vmatpush1.bf16.msra.mxu1 %v6599_v59 }
 0x8d9   :  { %2178 = vmatprep.subr.bf16.mxu0 %v6600_v9  ;;  %2219 = vmatprep.subr.bf16.mxu1 %v6601_v50 }
 0x8dc   :  { %2179 = vmatpush1.bf16.msra.mxu0 %v6602_v52  ;;  %2220 = vmatpush1.bf16.msra.mxu1 %v6603_v21 }
 0x8dd   :  { %2180 = vmatprep.subr.bf16.mxu0 %v6604_v22  ;;  %2221 = vmatprep.subr.bf16.mxu1 %v6605_v23 }
 0x8e0   :  { %2181 = vmatpush1.bf16.msra.mxu0 %v6606_v24  ;;  %2222 = vmatpush1.bf16.msra.mxu1 %v6607_v25 }
 0x8e1   :  { %2277 = vmatprep.subr.bf16.mxu0 %v6608_v30  ;;  %2318 = vmatprep.subr.bf16.mxu1 %v6609_v36 }
 0x8e3   :  { %2199 = vmatmul.mubr.bf16.vlgmr.msra.gmra.mxu0 %v5211_v39  ;;  %2240 = vmatmul.mubr.bf16.vlgmr.msra.gmra.mxu1 %v5211_v39  ;;  %v6618_v39 = vld [vmem:[#allocation68_spill] sm:$0xff] }
 0x8e4   :  { %2278 = vmatpush1.bf16.msra.mxu0 %v6610_v43  ;;  %2319 = vmatpush1.bf16.msra.mxu1 %v6611_v27 }
 0x8e5   :  { %2279 = vmatprep.subr.bf16.mxu0 %v6612_v34  ;;  %2320 = vmatprep.subr.bf16.mxu1 %v6613_v35 }
 0x8e6   :  { %2309 = vmatprep.mubr.bf16.mxu0 %v6360_v4  ;;  %2350 = vmatprep.mubr.bf16.mxu1 %v6360_v4 }
 0x8e8   :  { %2280 = vmatpush1.bf16.msra.mxu0 %v6614_v31  ;;  %2321 = vmatpush1.bf16.msra.mxu1 %v6615_v32 }
 0x8e9   :  { %2281 = vmatprep.subr.bf16.mxu0 %v6616_v26  ;;  %2322 = vmatprep.subr.bf16.mxu1 %v6617_v28 }
 0x8ec   :  { %2282 = vmatpush1.bf16.msra.mxu0 %v6618_v39  ;;  %2323 = vmatpush1.bf16.msra.mxu1 %v6619_v11 }
 0x8ed   :  { %2283 = vmatprep.subr.bf16.mxu0 %v6620_v57  ;;  %2324 = vmatprep.subr.bf16.mxu1 %v6621_v63 }
 0x8f0   :  { %2284 = vmatpush1.bf16.msra.mxu0 %v6622_v45  ;;  %2325 = vmatpush1.bf16.msra.mxu1 %v6623_v2 }
 0x8f1   :  { %2285 = vmatprep.subr.bf16.mxu0 %v6624_v18  ;;  %2326 = vmatprep.subr.bf16.mxu1 %v6625_v40  ;;  %v6636_v40 = vld [vmem:[#allocation71_spill] sm:$0xff] }
 0x8f4   :  { %2286 = vmatpush1.bf16.msra.mxu0 %v6626_v60  ;;  %2327 = vmatpush1.bf16.msra.mxu1 %v6627_v6  ;;  %v6637_v60 = vld [vmem:[#allocation72_spill] sm:$0xff]  ;;  %v6638_v6 = vld [vmem:[#allocation73_spill] sm:$0xff] }
 0x8f5   :  { %2287 = vmatprep.subr.bf16.mxu0 %v6628_v8  ;;  %2328 = vmatprep.subr.bf16.mxu1 %v6629_v56  ;;  %v6639_v8 = vld [vmem:[#allocation74_spill] sm:$0xff]  ;;  %v5332_v56 = vld [vmem:[#allocation9 + $0xe4] ss:$16 sps:$4 sm:$0xff]  }
 0x8f6   :  { %6640 = vst [vmem:[#allocation28_spill] sm:$0xff] %v5332_v56 }
 0x8f8   :  { %2288 = vmatpush1.bf16.msra.mxu0 %v6630_v12  ;;  %2329 = vmatpush1.bf16.msra.mxu1 %v6631_v62  ;;  %v5335_v62 = vld [vmem:[#allocation9 + $0xec] ss:$16 sps:$4 sm:$0xff]  }
 0x8f9   :  { %2289 = vmatprep.subr.bf16.mxu0 %v6632_v54  ;;  %2330 = vmatprep.subr.bf16.mxu1 %v6633_v41  ;;  %6641 = vst [vmem:[#allocation29_spill] sm:$0xff] %v5335_v62 }
 0x8fc   :  { %2290 = vmatpush1.bf16.msra.mxu0 %v6634_v17  ;;  %2331 = vmatpush1.bf16.msra.mxu1 %v6635_v20 }
 0x8fd   :  { %2291 = vmatprep.subr.bf16.mxu0 %v6636_v40  ;;  %2332 = vmatprep.subr.bf16.mxu1 %v6637_v60 }
 0x900   :  { %2292 = vmatpush1.bf16.msra.mxu0 %v6638_v6  ;;  %2333 = vmatpush1.bf16.msra.mxu1 %v6639_v8 }
 0x901   :  { %2388 = vmatprep.subr.bf16.mxu0 %v5332_v56  ;;  %2429 = vmatprep.subr.bf16.mxu1 %v5335_v62 }
 0x983   :  { %v5338_v41 = vpop.f32.mrf.mxu0  ;;  %v5340_v17 = vpop.f32.mrf.mxu1 }
 0x985   :  { %v5342_v20 = vpop.f32.mrf.mxu0  ;;  %v5344_v40 = vpop.f32.mrf.mxu1 }
 0x987   :  { %v2122_v60 = vpop.f32.mrf.mxu0  ;;  %v2163_v6 = vpop.f32.mrf.mxu1 }
 0x989   :  { %v2123_v54 = vpop.f32.mrf.mxu0  ;;  %v2164_v8 = vpop.f32.mrf.mxu1 }
 0x9a3   :  { %v2200_v12 = vpop.f32.mrf.mxu0  ;;  %v2241_v18 = vpop.f32.mrf.mxu1 }
 0x9a4   :  { %v2248_v56 = vadd.f32 %v2200_v12, %v4563_v0  ;;  %v2250_v60 = vadd.f32 %v2241_v18, %v4573_v3 }
 0x9a5   :  { %v2202_v2 = vpop.f32.mrf.mxu0  ;;  %v2243_v45 = vpop.f32.mrf.mxu1 }
 0x9a6   :  { %v3436_v63 = vmul.f32 -1.442695, %v2248_v56  ;;  %v2249_v62 = vadd.f32 %v2202_v2, %v4565_v61  ;;  %v3438_v6 = vmul.f32 -1.442695, %v2250_v60  ;;  %v2251_v54 = vadd.f32 %v2243_v45, %v4578_v55 }
 0x9a7   :  { %v2204_v57 = vpop.f32.mrf.mxu0  ;;  %v2245_v11 = vpop.f32.mrf.mxu1 }
 0x9a8   :  { %3743 = vpow2.f32 %v3436_v63  ;;  %v3437_v39 = vmul.f32 -1.442695, %v2249_v62 }
 0x9a9   :  { %v2205_v28 = vpop.f32.mrf.mxu0  ;;  %v2246_v26 = vpop.f32.mrf.mxu1 }
 0x9aa   :  { %3745 = vpow2.f32 %v3437_v39 }
 0x9ab   :  { %3747 = vpow2.f32 %v3438_v6  ;;  %v5358_v6 = vld [vmem:[#allocation9 + $0xe0] ss:$16 sps:$4 sm:$0xff]  }
 0x9b5   :  { %v3744_v8 = vpop.eup %3743 }
 0x9b6   :  { %v2261_v32 = vadd.f32 1.0, %v3744_v8  ;;  %v5364_v8 = vld [vmem:[#allocation9 + $0xc4] ss:$16 sps:$4 sm:$0xff]  }
 0x9b7   :  { %v3746_v12 = vpop.eup %3745 }
 0x9b8   :  { %3749 = vrcp.f32 %v2261_v32  ;;  %v2262_v56 = vadd.f32 1.0, %v3746_v12  ;;  %v3748_v57 = vpop.eup %3747  ;;  %v5372_v12 = vld [vmem:[#allocation9 + $0xc0] ss:$16 sps:$4 sm:$0xff]  }
 0x9b9   :  { %3751 = vtanh.f32 %v2251_v54  ;;  %v2263_v28 = vadd.f32 1.0, %v3748_v57  ;;  %v5367_v54 = vld [vmem:[#allocation9 + $0xcc] ss:$16 sps:$4 sm:$0xff]   ;;  %v5378_v57 = vld [vmem:[#allocation9 + $0xa4] ss:$16 sps:$4 sm:$0xff]  }
 0x9ba   :  { %3753 = vrcp.f32 %v2262_v56  ;;  %v5375_v56 = vld [vmem:[#allocation9 + $0xc8] ss:$16 sps:$4 sm:$0xff]   ;;  %6642 = vst [vmem:[#allocation30_spill] sm:$0xff] %v5378_v57 }
 0x9bb   :  { %3755 = vrcp.f32 %v2263_v28  ;;  %v5390_v28 = vld [vmem:[#allocation9 + $0x84] ss:$16 sps:$4 sm:$0xff]  }
 0x9bc   :  { %6646 = vst [vmem:[#allocation34_spill] sm:$0xff] %v5390_v28 }
 0x9c5   :  { %v3750_v11 = vpop.eup %3749 }
 0x9c6   :  { %v3752_v63 = vpop.eup %3751 }
 0x9c7   :  { %v3754_v2 = vpop.eup %3753  ;;  %v2272_v39 = vmul.f32 %v3752_v63, %v3750_v11  ;;  %v5381_v11 = vld [vmem:[#allocation9 + $0xac] ss:$16 sps:$4 sm:$0xff]   ;;  %v5384_v63 = vld [vmem:[#allocation9 + $0xa0] ss:$16 sps:$4 sm:$0xff]  }
 0x9c8   :  { %v2271_v26 = vmul.f32 %v3754_v2, %v5208_v29  ;;  %v3756_v45 = vpop.eup %3755  ;;  %v5361_v29 = vld [vmem:[#allocation9 + $0xe8] ss:$16 sps:$4 sm:$0xff]   ;;  %6643 = vst [vmem:[#allocation31_spill] sm:$0xff] %v5381_v11  ;;  %6644 = vst [vmem:[#allocation32_spill] sm:$0xff] %v5384_v63 }
 0x9c9   :  { %v5387_v2 = vld [vmem:[#allocation9 + $0xa8] ss:$16 sps:$4 sm:$0xff]  }
 0x9ca   :  { %v5351_v18 = vadd.f32 %v2272_v39, %v2271_v26  ;;  %6645 = vst [vmem:[#allocation33_spill] sm:$0xff] %v5387_v2  ;;  %v5393_v26 = vld [vmem:[#allocation9 + $0x8c] ss:$16 sps:$4 sm:$0xff]   ;;  %v5396_v39 = vld [vmem:[#allocation9 + $0x80] ss:$16 sps:$4 sm:$0xff]  }
 0x9cb   :  { %6647 = vst [vmem:[#allocation35_spill] sm:$0xff] %v5393_v26  ;;  %6648 = vst [vmem:[#allocation36_spill] sm:$0xff] %v5396_v39 }
 0x9cc   :  { %3757 = vtanh.f32 %v5351_v18 }
 0x9d9   :  { %v3758_v62 = vpop.eup %3757 }
 0x9da   :  { %v2275_v60 = vmul.f32 %v3758_v62, %v3756_v45  ;;  %v5399_v45 = vld [vmem:[#allocation9 + $0x88] ss:$16 sps:$4 sm:$0xff]   ;;  %v5402_v62 = vld [vmem:[#allocation9 + $0x64] ss:$16 sps:$4 sm:$0xff]  }
 0x9db   :  { %6649 = vst [vmem:[#allocation37_spill] sm:$0xff] %v5399_v45  ;;  %6650 = vst [vmem:[#allocation38_spill] sm:$0xff] %v5402_v62 }
 0x9dc   :  { %v5354_v32 = vpack.c.bf16 %v2275_v60, %v2275_v60  ;;  %v5405_v60 = vld [vmem:[#allocation9 + $0x6c] ss:$16 sps:$4 sm:$0xff]  }
 0x9dd   :  { %6651 = vst [vmem:[#allocation39_spill] sm:$0xff] %v5405_v60 }
 0x9de   :  { %2310 = vmatmul.mubr.bf16.vlgmr.msra.gmra.mxu0 %v5354_v32  ;;  %2351 = vmatmul.mubr.bf16.vlgmr.msra.gmra.mxu1 %v5354_v32 }
 0x9df   :  { %2389 = vmatpush1.bf16.msra.mxu0 %v5358_v6  ;;  %2430 = vmatpush1.bf16.msra.mxu1 %v5361_v29 }
 0x9e0   :  { %2390 = vmatprep.subr.bf16.mxu0 %v5364_v8  ;;  %2431 = vmatprep.subr.bf16.mxu1 %v5367_v54 }
 0x9e1   :  { %2420 = vmatprep.mubr.bf16.mxu0 %v6360_v4  ;;  %2461 = vmatprep.mubr.bf16.mxu1 %v6360_v4 }
 0x9e3   :  { %2391 = vmatpush1.bf16.msra.mxu0 %v5372_v12  ;;  %2432 = vmatpush1.bf16.msra.mxu1 %v5375_v56 }
 0x9e4   :  { %2392 = vmatprep.subr.bf16.mxu0 %v5378_v57  ;;  %2433 = vmatprep.subr.bf16.mxu1 %v5381_v11 }
 0x9e7   :  { %2393 = vmatpush1.bf16.msra.mxu0 %v5384_v63  ;;  %2434 = vmatpush1.bf16.msra.mxu1 %v5387_v2 }
 0x9e8   :  { %2394 = vmatprep.subr.bf16.mxu0 %v5390_v28  ;;  %2435 = vmatprep.subr.bf16.mxu1 %v5393_v26  ;;  %v5408_v28 = vld [vmem:[#allocation9 + $0x60] ss:$16 sps:$4 sm:$0xff]   ;;  %v5411_v26 = vld [vmem:[#allocation9 + $0x68] ss:$16 sps:$4 sm:$0xff]  }
 0x9e9   :  { %6652 = vst [vmem:[#allocation40_spill] sm:$0xff] %v5408_v28  ;;  %6653 = vst [vmem:[#allocation41_spill] sm:$0xff] %v5411_v26 }
 0x9eb   :  { %2395 = vmatpush1.bf16.msra.mxu0 %v5396_v39  ;;  %2436 = vmatpush1.bf16.msra.mxu1 %v5399_v45  ;;  %v5414_v39 = vld [vmem:[#allocation9 + $0x44] ss:$16 sps:$4 sm:$0xff]   ;;  %v5417_v45 = vld [vmem:[#allocation9 + $0x4c] ss:$16 sps:$4 sm:$0xff]  }
 0x9ec   :  { %2396 = vmatprep.subr.bf16.mxu0 %v5402_v62  ;;  %2437 = vmatprep.subr.bf16.mxu1 %v5405_v60  ;;  %6654 = vst [vmem:[#allocation42_spill] sm:$0xff] %v5414_v39  ;;  %6655 = vst [vmem:[#allocation43_spill] sm:$0xff] %v5417_v45  ;;  %v5420_v62 = vld [vmem:[#allocation9 + $0x40] ss:$16 sps:$4 sm:$0xff]   ;;  %v5423_v60 = vld [vmem:[#allocation9 + $0x48] ss:$16 sps:$4 sm:$0xff]  }
 0x9ed   :  { %6656 = vst [vmem:[#allocation44_spill] sm:$0xff] %v5420_v62  ;;  %6657 = vst [vmem:[#allocation45_spill] sm:$0xff] %v5423_v60 }
 0x9ef   :  { %2397 = vmatpush1.bf16.msra.mxu0 %v5408_v28  ;;  %2438 = vmatpush1.bf16.msra.mxu1 %v5411_v26  ;;  %v5426_v28 = vld [vmem:[#allocation9 + $0x24] ss:$16 sps:$4 sm:$0xff]   ;;  %v5429_v26 = vld [vmem:[#allocation9 + $0x2c] ss:$16 sps:$4 sm:$0xff]  }
 0x9f0   :  { %2398 = vmatprep.subr.bf16.mxu0 %v5414_v39  ;;  %2439 = vmatprep.subr.bf16.mxu1 %v5417_v45  ;;  %6658 = vst [vmem:[#allocation46_spill] sm:$0xff] %v5426_v28  ;;  %6659 = vst [vmem:[#allocation47_spill] sm:$0xff] %v5429_v26  ;;  %v5432_v39 = vld [vmem:[#allocation9 + $0x20] ss:$16 sps:$4 sm:$0xff]   ;;  %v5435_v45 = vld [vmem:[#allocation9 + $0x28] ss:$16 sps:$4 sm:$0xff]  }
 0x9f1   :  { %6660 = vst [vmem:[#allocation48_spill] sm:$0xff] %v5432_v39  ;;  %6661 = vst [vmem:[#allocation49_spill] sm:$0xff] %v5435_v45 }
 0x9f3   :  { %2399 = vmatpush1.bf16.msra.mxu0 %v5420_v62  ;;  %2440 = vmatpush1.bf16.msra.mxu1 %v5423_v60 }
 0x9f4   :  { %2400 = vmatprep.subr.bf16.mxu0 %v5426_v28  ;;  %2441 = vmatprep.subr.bf16.mxu1 %v5429_v26 }
 0x9f7   :  { %2401 = vmatpush1.bf16.msra.mxu0 %v5432_v39  ;;  %2442 = vmatpush1.bf16.msra.mxu1 %v5435_v45 }
 0x9f8   :  { %2402 = vmatprep.subr.bf16.mxu0 %v6585_v5  ;;  %2443 = vmatprep.subr.bf16.mxu1 %v6586_v47 }
 0x9fb   :  { %2403 = vmatpush1.bf16.msra.mxu0 %v6587_v48  ;;  %2444 = vmatpush1.bf16.msra.mxu1 %v6588_v15 }
 0x9fc   :  { %2470 = vmatprep.subr.bf16.mxu0 %v6589_v16  ;;  %2511 = vmatprep.subr.bf16.mxu1 %v6590_v49 }
 0xa9e   :  { %v2311_v26 = vpop.f32.mrf.mxu0  ;;  %v2352_v28 = vpop.f32.mrf.mxu1 }
 0xa9f   :  { %v2312_v39 = vadd.f32 %v2311_v26, %v5338_v41  ;;  %v2353_v49 = vadd.f32 %v2352_v28, %v5340_v17 }
 0xaa0   :  { %v2313_v60 = vpop.f32.mrf.mxu0  ;;  %v2354_v62 = vpop.f32.mrf.mxu1 }
 0xaa1   :  { %v2359_v45 = vadd.f32 %v2312_v39, %v4627_v14  ;;  %v2314_v5 = vadd.f32 %v2313_v60, %v5342_v20  ;;  %v2361_v41 = vadd.f32 %v2353_v49, %v4639_v33  ;;  %v2355_v26 = vadd.f32 %v2354_v62, %v5344_v40  ;;  %v5459_v49 = vld [vmem:[#allocation6 + $0xe0] ss:$16 sps:$4 sm:$0xff]  }
 0xaa2   :  { %v2315_v2 = vpop.f32.mrf.mxu0  ;;  %v2356_v47 = vpop.f32.mrf.mxu1 }
 0xaa3   :  { %v3439_v63 = vmul.f32 -1.442695, %v2359_v45  ;;  %v2360_v48 = vadd.f32 %v2314_v5, %v4631_v19  ;;  %v3441_v57 = vmul.f32 -1.442695, %v2361_v41  ;;  %v2362_v20 = vadd.f32 %v2355_v26, %v4645_v37  ;;  %v5465_v41 = vld [vmem:[#allocation6 + $0xc4] ss:$16 sps:$4 sm:$0xff]  }
 0xaa4   :  { %v2316_v15 = vpop.f32.mrf.mxu0  ;;  %v2357_v11 = vpop.f32.mrf.mxu1  ;;  %v5468_v26 = vld [vmem:[#allocation6 + $0xcc] ss:$16 sps:$4 sm:$0xff]  }
 0xaa5   :  { %3759 = vpow2.f32 %v3439_v63  ;;  %v3440_v16 = vmul.f32 -1.442695, %v2360_v48 }
 0xaa7   :  { %3761 = vpow2.f32 %v3440_v16 }
 0xaa8   :  { %3763 = vpow2.f32 %v3441_v57 }
 0xab2   :  { %v3760_v39 = vpop.eup %3759 }
 0xab3   :  { %v2372_v2 = vadd.f32 1.0, %v3760_v39  ;;  %v5473_v39 = vld [vmem:[#allocation6 + $0xc0] ss:$16 sps:$4 sm:$0xff]  }
 0xab4   :  { %v3762_v60 = vpop.eup %3761 }
 0xab5   :  { %3765 = vrcp.f32 %v2372_v2  ;;  %v2373_v45 = vadd.f32 1.0, %v3762_v60  ;;  %v3764_v11 = vpop.eup %3763  ;;  %v5479_v2 = vld [vmem:[#allocation6 + $0xa4] ss:$16 sps:$4 sm:$0xff]   ;;  %v5482_v60 = vld [vmem:[#allocation6 + $0xac] ss:$16 sps:$4 sm:$0xff]  }
 0xab6   :  { %3767 = vtanh.f32 %v2362_v20  ;;  %v2374_v17 = vadd.f32 1.0, %v3764_v11  ;;  %v5476_v20 = vld [vmem:[#allocation6 + $0xc8] ss:$16 sps:$4 sm:$0xff]  }
 0xab7   :  { %3769 = vrcp.f32 %v2373_v45  ;;  %v5485_v45 = vld [vmem:[#allocation6 + $0xa0] ss:$16 sps:$4 sm:$0xff]   ;;  %v5488_v11 = vld [vmem:[#allocation6 + $0xa8] ss:$16 sps:$4 sm:$0xff]  }
 0xab8   :  { %3771 = vrcp.f32 %v2374_v17 }
 0xac2   :  { %v3766_v63 = vpop.eup %3765 }
 0xac3   :  { %v3768_v5 = vpop.eup %3767 }
 0xac4   :  { %v3770_v47 = vpop.eup %3769  ;;  %v2383_v48 = vmul.f32 %v3768_v5, %v3766_v63  ;;  %v5491_v63 = vld [vmem:[#allocation6 + $0x84] ss:$16 sps:$4 sm:$0xff]  }
 0xac5   :  { %v2382_v28 = vmul.f32 %v3770_v47, %v5258_v38  ;;  %v3772_v62 = vpop.eup %3771  ;;  %v5462_v38 = vld [vmem:[#allocation6 + $0xe8] ss:$16 sps:$4 sm:$0xff]  }
 0xac7   :  { %v5453_v40 = vadd.f32 %v2383_v48, %v2382_v28 }
 0xac9   :  { %3773 = vtanh.f32 %v5453_v40 }
 0xad6   :  { %v3774_v15 = vpop.eup %3773 }
 0xad7   :  { %v2386_v57 = vmul.f32 %v3774_v15, %v3772_v62 }
 0xad9   :  { %v2387_v16 = vpack.c.bf16 %v2386_v57, %v2386_v57  ;;  %3303 = vst [vmem:[%s5967_s7 + $0x8] sm:$0x3] %v2386_v57 }
 0xadb   :  { %2421 = vmatmul.mubr.bf16.vlgmr.msra.gmra.mxu0 %v2387_v16  ;;  %2462 = vmatmul.mubr.bf16.vlgmr.msra.gmra.mxu1 %v2387_v16 }
 0xadc   :  { %2471 = vmatpush1.bf16.msra.mxu0 %v5459_v49  ;;  %2512 = vmatpush1.bf16.msra.mxu1 %v5462_v38 }
 0xadd   :  { %2472 = vmatprep.subr.bf16.mxu0 %v5465_v41  ;;  %2513 = vmatprep.subr.bf16.mxu1 %v5468_v26 }
 0xade   :  { %2502 = vmatprep.mubr.bf16.mxu0 %v6360_v4  ;;  %2543 = vmatprep.mubr.bf16.mxu1 %v6360_v4 }
 0xae0   :  { %2473 = vmatpush1.bf16.msra.mxu0 %v5473_v39  ;;  %2514 = vmatpush1.bf16.msra.mxu1 %v5476_v20 }
 0xae1   :  { %2474 = vmatprep.subr.bf16.mxu0 %v5479_v2  ;;  %2515 = vmatprep.subr.bf16.mxu1 %v5482_v60 }
 0xae4   :  { %2475 = vmatpush1.bf16.msra.mxu0 %v5485_v45  ;;  %2516 = vmatpush1.bf16.msra.mxu1 %v5488_v11 }
 0xae5   :  { %2476 = vmatprep.subr.bf16.mxu0 %v5491_v63  ;;  %2517 = vmatprep.subr.bf16.mxu1 %v5036_v58  ;;  %v6662_v58 = vld [vmem:[#allocation65_spill] sm:$0xff] }
 0xae8   :  { %2477 = vmatpush1.bf16.msra.mxu0 %v5039_v42  ;;  %2518 = vmatpush1.bf16.msra.mxu1 %v6591_v44  ;;  %v6663_v42 = vld [vmem:[#allocation66_spill] sm:$0xff]  ;;  %v6664_v44 = vld [vmem:[#allocation67_spill] sm:$0xff] }
 0xae9   :  { %2478 = vmatprep.subr.bf16.mxu0 %v6592_v1  ;;  %2519 = vmatprep.subr.bf16.mxu1 %v6593_v13  ;;  %v6665_v1 = vld [vmem:[#allocation68_spill] sm:$0xff]  ;;  %v6666_v13 = vld [vmem:[#allocation69_spill] sm:$0xff] }
 0xaec   :  { %2479 = vmatpush1.bf16.msra.mxu0 %v6594_v53  ;;  %2520 = vmatpush1.bf16.msra.mxu1 %v6595_v51  ;;  %v6667_v53 = vld [vmem:[#allocation13_spill] sm:$0xff]  ;;  %v6668_v51 = vld [vmem:[#allocation14_spill] sm:$0xff] }
 0xaed   :  { %2480 = vmatprep.subr.bf16.mxu0 %v6596_v46  ;;  %2521 = vmatprep.subr.bf16.mxu1 %v6597_v10  ;;  %v6669_v46 = vld [vmem:[#allocation15_spill] sm:$0xff]  ;;  %v6670_v10 = vld [vmem:[#allocation16_spill] sm:$0xff] }
 0xaf0   :  { %2481 = vmatpush1.bf16.msra.mxu0 %v6598_v7  ;;  %2522 = vmatpush1.bf16.msra.mxu1 %v6599_v59  ;;  %v6671_v7 = vld [vmem:[#allocation17_spill] sm:$0xff]  ;;  %v6672_v59 = vld [vmem:[#allocation18_spill] sm:$0xff] }
 0xaf1   :  { %2482 = vmatprep.subr.bf16.mxu0 %v6600_v9  ;;  %2523 = vmatprep.subr.bf16.mxu1 %v6601_v50  ;;  %v6673_v9 = vld [vmem:[#allocation19_spill] sm:$0xff]  ;;  %v6674_v50 = vld [vmem:[#allocation20_spill] sm:$0xff] }
 0xaf4   :  { %2483 = vmatpush1.bf16.msra.mxu0 %v6602_v52  ;;  %2524 = vmatpush1.bf16.msra.mxu1 %v6603_v21  ;;  %v6675_v52 = vld [vmem:[#allocation21_spill] sm:$0xff]  ;;  %v6676_v21 = vld [vmem:[#allocation22_spill] sm:$0xff] }
 0xaf5   :  { %2484 = vmatprep.subr.bf16.mxu0 %v6604_v22  ;;  %2525 = vmatprep.subr.bf16.mxu1 %v6605_v23  ;;  %v6677_v22 = vld [vmem:[#allocation23_spill] sm:$0xff]  ;;  %v6678_v23 = vld [vmem:[#allocation24_spill] sm:$0xff] }
 0xaf8   :  { %2485 = vmatpush1.bf16.msra.mxu0 %v6606_v24  ;;  %2526 = vmatpush1.bf16.msra.mxu1 %v6607_v25  ;;  %v6679_v24 = vld [vmem:[#allocation25_spill] sm:$0xff]  ;;  %v6680_v25 = vld [vmem:[#allocation26_spill] sm:$0xff] }
 0xaf9   :  { %2581 = vmatprep.subr.bf16.mxu0 %v6608_v30  ;;  %2622 = vmatprep.subr.bf16.mxu1 %v6609_v36  ;;  %v6681_v30 = vld [vmem:[#allocation27_spill] sm:$0xff]  ;;  %v6682_v36 = vld [vmem:[#allocation70_spill] sm:$0xff] }
 0xafb   :  { %2503 = vmatmul.mubr.bf16.vlgmr.msra.gmra.mxu0 %v5354_v32  ;;  %2544 = vmatmul.mubr.bf16.vlgmr.msra.gmra.mxu1 %v5354_v32  ;;  %v6688_v32 = vld [vmem:[#allocation29_spill] sm:$0xff] }
 0xafc   :  { %2582 = vmatpush1.bf16.msra.mxu0 %v6610_v43  ;;  %2623 = vmatpush1.bf16.msra.mxu1 %v6611_v27  ;;  %v6683_v43 = vld [vmem:[#allocation71_spill] sm:$0xff]  ;;  %v6684_v27 = vld [vmem:[#allocation72_spill] sm:$0xff] }
 0xafd   :  { %2583 = vmatprep.subr.bf16.mxu0 %v6612_v34  ;;  %2624 = vmatprep.subr.bf16.mxu1 %v6613_v35  ;;  %v6685_v34 = vld [vmem:[#allocation73_spill] sm:$0xff]  ;;  %v6686_v35 = vld [vmem:[#allocation74_spill] sm:$0xff] }
 0xafe   :  { %2613 = vmatprep.mubr.bf16.mxu0 %v6360_v4  ;;  %2654 = vmatprep.mubr.bf16.mxu1 %v6360_v4 }
 0xb00   :  { %2584 = vmatpush1.bf16.msra.mxu0 %v6614_v31  ;;  %2625 = vmatpush1.bf16.msra.mxu1 %v6662_v58  ;;  %v6687_v31 = vld [vmem:[#allocation28_spill] sm:$0xff] }
 0xb01   :  { %2585 = vmatprep.subr.bf16.mxu0 %v6663_v42  ;;  %2626 = vmatprep.subr.bf16.mxu1 %v6664_v44 }
 0xb04   :  { %2586 = vmatpush1.bf16.msra.mxu0 %v6665_v1  ;;  %2627 = vmatpush1.bf16.msra.mxu1 %v6666_v13 }
 0xb05   :  { %2587 = vmatprep.subr.bf16.mxu0 %v6667_v53  ;;  %2628 = vmatprep.subr.bf16.mxu1 %v6668_v51 }
 0xb08   :  { %2588 = vmatpush1.bf16.msra.mxu0 %v6669_v46  ;;  %2629 = vmatpush1.bf16.msra.mxu1 %v6670_v10 }
 0xb09   :  { %2589 = vmatprep.subr.bf16.mxu0 %v6671_v7  ;;  %2630 = vmatprep.subr.bf16.mxu1 %v6672_v59 }
 0xb0c   :  { %2590 = vmatpush1.bf16.msra.mxu0 %v6673_v9  ;;  %2631 = vmatpush1.bf16.msra.mxu1 %v6674_v50 }
 0xb0d   :  { %2591 = vmatprep.subr.bf16.mxu0 %v6675_v52  ;;  %2632 = vmatprep.subr.bf16.mxu1 %v6676_v21 }
 0xb10   :  { %2592 = vmatpush1.bf16.msra.mxu0 %v6677_v22  ;;  %2633 = vmatpush1.bf16.msra.mxu1 %v6678_v23 }
 0xb11   :  { %2593 = vmatprep.subr.bf16.mxu0 %v6679_v24  ;;  %2634 = vmatprep.subr.bf16.mxu1 %v6680_v25 }
 0xb14   :  { %2594 = vmatpush1.bf16.msra.mxu0 %v6681_v30  ;;  %2635 = vmatpush1.bf16.msra.mxu1 %v6682_v36 }
 0xb15   :  { %2595 = vmatprep.subr.bf16.mxu0 %v6683_v43  ;;  %2636 = vmatprep.subr.bf16.mxu1 %v6684_v27 }
 0xb18   :  { %2596 = vmatpush1.bf16.msra.mxu0 %v6685_v34  ;;  %2637 = vmatpush1.bf16.msra.mxu1 %v6686_v35 }
 0xb19   :  { %2692 = vmatprep.subr.bf16.mxu0 %v6687_v31  ;;  %2733 = vmatprep.subr.bf16.mxu1 %v6688_v32 }
 0xb9b   :  { %v5551_v5 = vpop.f32.mrf.mxu0  ;;  %v5553_v47 = vpop.f32.mrf.mxu1 }
 0xb9d   :  { %v5555_v17 = vpop.f32.mrf.mxu0  ;;  %v5557_v28 = vpop.f32.mrf.mxu1 }
 0xb9f   :  { %v2426_v48 = vpop.f32.mrf.mxu0  ;;  %v2467_v62 = vpop.f32.mrf.mxu1 }
 0xba1   :  { %v2427_v15 = vpop.f32.mrf.mxu0  ;;  %v2468_v57 = vpop.f32.mrf.mxu1 }
 0xbbb   :  { %v2504_v16 = vpop.f32.mrf.mxu0  ;;  %v2545_v58 = vpop.f32.mrf.mxu1 }
 0xbbc   :  { %v2552_v42 = vadd.f32 %v2504_v16, %v4563_v0  ;;  %v2554_v9 = vadd.f32 %v2545_v58, %v4573_v3  ;;  %v6690_v58 = vld [vmem:[#allocation31_spill] sm:$0xff] }
 0xbbd   :  { %v2506_v44 = vpop.f32.mrf.mxu0  ;;  %v2547_v1 = vpop.f32.mrf.mxu1 }
 0xbbe   :  { %v3442_v13 = vmul.f32 -1.442695, %v2552_v42  ;;  %v2553_v53 = vadd.f32 %v2506_v44, %v4565_v61  ;;  %v3444_v50 = vmul.f32 -1.442695, %v2554_v9  ;;  %v2555_v21 = vadd.f32 %v2547_v1, %v4578_v55  ;;  %v6691_v42 = vld [vmem:[#allocation32_spill] sm:$0xff]  ;;  %v6692_v44 = vld [vmem:[#allocation33_spill] sm:$0xff] }
 0xbbf   :  { %v2508_v51 = vpop.f32.mrf.mxu0  ;;  %v2549_v46 = vpop.f32.mrf.mxu1  ;;  %v6693_v1 = vld [vmem:[#allocation34_spill] sm:$0xff] }
 0xbc0   :  { %3775 = vpow2.f32 %v3442_v13  ;;  %v3443_v10 = vmul.f32 -1.442695, %v2553_v53  ;;  %v6694_v13 = vld [vmem:[#allocation35_spill] sm:$0xff]  ;;  %v6695_v53 = vld [vmem:[#allocation36_spill] sm:$0xff]  ;;  %v6696_v51 = vld [vmem:[#allocation37_spill] sm:$0xff] }
 0xbc1   :  { %v2509_v7 = vpop.f32.mrf.mxu0  ;;  %v2550_v59 = vpop.f32.mrf.mxu1  ;;  %v6697_v46 = vld [vmem:[#allocation38_spill] sm:$0xff] }
 0xbc2   :  { %3777 = vpow2.f32 %v3443_v10  ;;  %v6698_v10 = vld [vmem:[#allocation39_spill] sm:$0xff]  ;;  %v6699_v7 = vld [vmem:[#allocation40_spill] sm:$0xff]  ;;  %v6700_v59 = vld [vmem:[#allocation41_spill] sm:$0xff] }
 0xbc3   :  { %3779 = vpow2.f32 %v3444_v50  ;;  %v6701_v9 = vld [vmem:[#allocation42_spill] sm:$0xff]  ;;  %v6702_v50 = vld [vmem:[#allocation43_spill] sm:$0xff] }
 0xbcd   :  { %v3776_v52 = vpop.eup %3775 }
 0xbce   :  { %v2565_v22 = vadd.f32 1.0, %v3776_v52  ;;  %v6703_v52 = vld [vmem:[#allocation44_spill] sm:$0xff] }
 0xbcf   :  { %v3778_v23 = vpop.eup %3777 }
 0xbd0   :  { %3781 = vrcp.f32 %v2565_v22  ;;  %v2566_v24 = vadd.f32 1.0, %v3778_v23  ;;  %v3780_v25 = vpop.eup %3779  ;;  %v6705_v22 = vld [vmem:[#allocation46_spill] sm:$0xff]  ;;  %v6706_v23 = vld [vmem:[#allocation47_spill] sm:$0xff] }
 0xbd1   :  { %3783 = vtanh.f32 %v2555_v21  ;;  %v2567_v27 = vadd.f32 1.0, %v3780_v25  ;;  %v6704_v21 = vld [vmem:[#allocation45_spill] sm:$0xff] }
 0xbd2   :  { %3785 = vrcp.f32 %v2566_v24  ;;  %v6707_v24 = vld [vmem:[#allocation48_spill] sm:$0xff]  ;;  %v6708_v25 = vld [vmem:[#allocation49_spill] sm:$0xff] }
 0xbd3   :  { %3787 = vrcp.f32 %v2567_v27  ;;  %v5608_v27 = vld [vmem:[#allocation9 + $0x8] ss:$16 sps:$4 sm:$0xff]  }
 0xbd4   :  { %6712 = vst [vmem:[#allocation53_spill] sm:$0xff] %v5608_v27 }
 0xbdd   :  { %v3782_v30 = vpop.eup %3781 }
 0xbde   :  { %v3784_v36 = vpop.eup %3783 }
 0xbdf   :  { %v3786_v43 = vpop.eup %3785  ;;  %v2576_v35 = vmul.f32 %v3784_v36, %v3782_v30  ;;  %v5599_v30 = vld [vmem:[#allocation9 + $0x4] ss:$16 sps:$4 sm:$0xff]   ;;  %v5602_v36 = vld [vmem:[#allocation9 + $0xc] ss:$16 sps:$4 sm:$0xff]  }
 0xbe0   :  { %v2575_v34 = vmul.f32 %v3786_v43, %v5351_v18  ;;  %v3788_v62 = vpop.eup %3787  ;;  %v6689_v18 = vld [vmem:[#allocation30_spill] sm:$0xff]  ;;  %6709 = vst [vmem:[#allocation50_spill] sm:$0xff] %v5599_v30  ;;  %6710 = vst [vmem:[#allocation51_spill] sm:$0xff] %v5602_v36  ;;  %v5605_v43 = vld [vmem:[#allocation9] ss:$16 sps:$4 sm:$0xff]  }
 0xbe1   :  { %6711 = vst [vmem:[#allocation52_spill] sm:$0xff] %v5605_v43 }
 0xbe2   :  { %v5564_v48 = vadd.f32 %v2576_v35, %v2575_v34  ;;  %v5611_v34 = vld [vmem:[#allocation6 + $0xe4] ss:$16 sps:$4 sm:$0xff]   ;;  %v5614_v35 = vld [vmem:[#allocation6 + $0xec] ss:$16 sps:$4 sm:$0xff]  }
 0xbe3   :  { %6713 = vst [vmem:[#allocation54_spill] sm:$0xff] %v5611_v34  ;;  %6714 = vst [vmem:[#allocation55_spill] sm:$0xff] %v5614_v35 }
 0xbe4   :  { %3789 = vtanh.f32 %v5564_v48 }
 0xbf1   :  { %v3790_v15 = vpop.eup %3789 }
 0xbf2   :  { %v2579_v57 = vmul.f32 %v3790_v15, %v3788_v62 }
 0xbf4   :  { %v5567_v16 = vpack.c.bf16 %v2579_v57, %v2579_v57 }
 0xbf6   :  { %2614 = vmatmul.mubr.bf16.vlgmr.msra.gmra.mxu0 %v5567_v16  ;;  %2655 = vmatmul.mubr.bf16.vlgmr.msra.gmra.mxu1 %v5567_v16 }
 0xbf7   :  { %2693 = vmatpush1.bf16.msra.mxu0 %v5358_v6  ;;  %2734 = vmatpush1.bf16.msra.mxu1 %v5361_v29 }
 0xbf8   :  { %2694 = vmatprep.subr.bf16.mxu0 %v5364_v8  ;;  %2735 = vmatprep.subr.bf16.mxu1 %v5367_v54 }
 0xbf9   :  { %2724 = vmatprep.mubr.bf16.mxu0 %v6360_v4  ;;  %2765 = vmatprep.mubr.bf16.mxu1 %v6360_v4 }
 0xbfb   :  { %2695 = vmatpush1.bf16.msra.mxu0 %v5372_v12  ;;  %2736 = vmatpush1.bf16.msra.mxu1 %v5375_v56 }
 0xbfc   :  { %2696 = vmatprep.subr.bf16.mxu0 %v6689_v18  ;;  %2737 = vmatprep.subr.bf16.mxu1 %v6690_v58 }
 0xbff   :  { %2697 = vmatpush1.bf16.msra.mxu0 %v6691_v42  ;;  %2738 = vmatpush1.bf16.msra.mxu1 %v6692_v44 }
 0xc00   :  { %2698 = vmatprep.subr.bf16.mxu0 %v6693_v1  ;;  %2739 = vmatprep.subr.bf16.mxu1 %v6694_v13 }
 0xc03   :  { %2699 = vmatpush1.bf16.msra.mxu0 %v6695_v53  ;;  %2740 = vmatpush1.bf16.msra.mxu1 %v6696_v51 }
 0xc04   :  { %2700 = vmatprep.subr.bf16.mxu0 %v6697_v46  ;;  %2741 = vmatprep.subr.bf16.mxu1 %v6698_v10 }
 0xc07   :  { %2701 = vmatpush1.bf16.msra.mxu0 %v6699_v7  ;;  %2742 = vmatpush1.bf16.msra.mxu1 %v6700_v59 }
 0xc08   :  { %2702 = vmatprep.subr.bf16.mxu0 %v6701_v9  ;;  %2743 = vmatprep.subr.bf16.mxu1 %v6702_v50 }
 0xc0b   :  { %2703 = vmatpush1.bf16.msra.mxu0 %v6703_v52  ;;  %2744 = vmatpush1.bf16.msra.mxu1 %v6704_v21 }
 0xc0c   :  { %2704 = vmatprep.subr.bf16.mxu0 %v6705_v22  ;;  %2745 = vmatprep.subr.bf16.mxu1 %v6706_v23 }
 0xc0f   :  { %2705 = vmatpush1.bf16.msra.mxu0 %v6707_v24  ;;  %2746 = vmatpush1.bf16.msra.mxu1 %v6708_v25 }
 0xc10   :  { %2706 = vmatprep.subr.bf16.mxu0 %v5599_v30  ;;  %2747 = vmatprep.subr.bf16.mxu1 %v5602_v36 }
 0xc13   :  { %2707 = vmatpush1.bf16.msra.mxu0 %v5605_v43  ;;  %2748 = vmatpush1.bf16.msra.mxu1 %v5608_v27 }
 0xc14   :  { %2774 = vmatprep.subr.bf16.mxu0 %v5611_v34  ;;  %2815 = vmatprep.subr.bf16.mxu1 %v5614_v35 }
 0xcb6   :  { %v2615_v62 = vpop.f32.mrf.mxu0  ;;  %v2656_v15 = vpop.f32.mrf.mxu1 }
 0xcb7   :  { %v2616_v57 = vadd.f32 %v2615_v62, %v5551_v5  ;;  %v2657_v35 = vadd.f32 %v2656_v15, %v5553_v47  ;;  %v5648_v15 = vld [vmem:[#allocation6 + $0x80] ss:$16 sps:$4 sm:$0xff]  }
 0xcb8   :  { %v2617_v36 = vpop.f32.mrf.mxu0  ;;  %v2658_v30 = vpop.f32.mrf.mxu1 }
 0xcb9   :  { %v2663_v43 = vadd.f32 %v2616_v57, %v4627_v14  ;;  %v2618_v25 = vadd.f32 %v2617_v36, %v5555_v17  ;;  %v2665_v5 = vadd.f32 %v2657_v35, %v4639_v33  ;;  %v2659_v62 = vadd.f32 %v2658_v30, %v5557_v28 }
 0xcba   :  { %v2619_v24 = vpop.f32.mrf.mxu0  ;;  %v2660_v27 = vpop.f32.mrf.mxu1 }
 0xcbb   :  { %v3445_v23 = vmul.f32 -1.442695, %v2663_v43  ;;  %v2664_v22 = vadd.f32 %v2618_v25, %v4631_v19  ;;  %v3447_v50 = vmul.f32 -1.442695, %v2665_v5  ;;  %v2666_v17 = vadd.f32 %v2659_v62, %v4645_v37  ;;  %v5651_v5 = vld [vmem:[#allocation6 + $0x88] ss:$16 sps:$4 sm:$0xff]  }
 0xcbc   :  { %v2620_v34 = vpop.f32.mrf.mxu0  ;;  %v2661_v21 = vpop.f32.mrf.mxu1  ;;  %6715 = vst [vmem:[#allocation56_spill] sm:$0xff] %v5651_v5  ;;  %v5654_v62 = vld [vmem:[#allocation6 + $0x64] ss:$16 sps:$4 sm:$0xff]  }
 0xcbd   :  { %3791 = vpow2.f32 %v3445_v23  ;;  %v3446_v52 = vmul.f32 -1.442695, %v2664_v22  ;;  %6716 = vst [vmem:[#allocation57_spill] sm:$0xff] %v5654_v62 }
 0xcbf   :  { %3793 = vpow2.f32 %v3446_v52 }
 0xcc0   :  { %3795 = vpow2.f32 %v3447_v50 }
 0xcca   :  { %v3792_v57 = vpop.eup %3791 }
 0xccb   :  { %v2676_v24 = vadd.f32 1.0, %v3792_v57  ;;  %v5657_v57 = vld [vmem:[#allocation6 + $0x6c] ss:$16 sps:$4 sm:$0xff]  }
 0xccc   :  { %v3794_v36 = vpop.eup %3793  ;;  %6717 = vst [vmem:[#allocation58_spill] sm:$0xff] %v5657_v57 }
 0xccd   :  { %3797 = vrcp.f32 %v2676_v24  ;;  %v2677_v25 = vadd.f32 1.0, %v3794_v36  ;;  %v3796_v21 = vpop.eup %3795  ;;  %v5663_v24 = vld [vmem:[#allocation6 + $0x68] ss:$16 sps:$4 sm:$0xff]   ;;  %v5666_v36 = vld [vmem:[#allocation6 + $0x44] ss:$16 sps:$4 sm:$0xff]  }
 0xcce   :  { %3799 = vtanh.f32 %v2666_v17  ;;  %v2678_v47 = vadd.f32 1.0, %v3796_v21  ;;  %v5660_v17 = vld [vmem:[#allocation6 + $0x60] ss:$16 sps:$4 sm:$0xff]   ;;  %6719 = vst [vmem:[#allocation60_spill] sm:$0xff] %v5663_v24  ;;  %6720 = vst [vmem:[#allocation61_spill] sm:$0xff] %v5666_v36 }
 0xccf   :  { %3801 = vrcp.f32 %v2677_v25  ;;  %6718 = vst [vmem:[#allocation59_spill] sm:$0xff] %v5660_v17  ;;  %v5669_v25 = vld [vmem:[#allocation6 + $0x4c] ss:$16 sps:$4 sm:$0xff]   ;;  %v5672_v21 = vld [vmem:[#allocation6 + $0x40] ss:$16 sps:$4 sm:$0xff]  }
 0xcd0   :  { %3803 = vrcp.f32 %v2678_v47  ;;  %6721 = vst [vmem:[#allocation62_spill] sm:$0xff] %v5669_v25  ;;  %6722 = vst [vmem:[#allocation63_spill] sm:$0xff] %v5672_v21  ;;  %v5684_v47 = vld [vmem:[#allocation6 + $0x20] ss:$16 sps:$4 sm:$0xff]  }
 0xcd1   :  { %6726 = vst [vmem:[#allocation67_spill] sm:$0xff] %v5684_v47 }
 0xcda   :  { %v3798_v22 = vpop.eup %3797 }
 0xcdb   :  { %v3800_v52 = vpop.eup %3799 }
 0xcdc   :  { %v3802_v23 = vpop.eup %3801  ;;  %v2687_v27 = vmul.f32 %v3800_v52, %v3798_v22  ;;  %v5675_v22 = vld [vmem:[#allocation6 + $0x48] ss:$16 sps:$4 sm:$0xff]   ;;  %v5678_v52 = vld [vmem:[#allocation6 + $0x24] ss:$16 sps:$4 sm:$0xff]  }
 0xcdd   :  { %v2686_v43 = vmul.f32 %v3802_v23, %v5453_v40  ;;  %v3804_v30 = vpop.eup %3803  ;;  %v5645_v40 = vld [vmem:[#allocation6 + $0x8c] ss:$16 sps:$4 sm:$0xff]   ;;  %6723 = vst [vmem:[#allocation64_spill] sm:$0xff] %v5675_v22  ;;  %6724 = vst [vmem:[#allocation65_spill] sm:$0xff] %v5678_v52 }
 0xcde   :  { %v5681_v23 = vld [vmem:[#allocation6 + $0x2c] ss:$16 sps:$4 sm:$0xff]  }
 0xcdf   :  { %v5626_v28 = vadd.f32 %v2687_v27, %v2686_v43  ;;  %6725 = vst [vmem:[#allocation66_spill] sm:$0xff] %v5681_v23  ;;  %v5687_v43 = vld [vmem:[#allocation6 + $0x28] ss:$16 sps:$4 sm:$0xff]   ;;  %v5690_v27 = vld [vmem:[#allocation6 + $0x4] ss:$16 sps:$4 sm:$0xff]  }
 0xce0   :  { %6727 = vst [vmem:[#allocation68_spill] sm:$0xff] %v5687_v43  ;;  %6728 = vst [vmem:[#allocation69_spill] sm:$0xff] %v5690_v27 }
 0xce1   :  { %3805 = vtanh.f32 %v5626_v28 }
 0xcee   :  { %v3806_v34 = vpop.eup %3805 }
 0xcef   :  { %v2690_v50 = vmul.f32 %v3806_v34, %v3804_v30  ;;  %v5693_v30 = vld [vmem:[#allocation6 + $0xc] ss:$16 sps:$4 sm:$0xff]   ;;  %v5696_v34 = vld [vmem:[#allocation6] ss:$16 sps:$4 sm:$0xff]  }
 0xcf0   :  { %6729 = vst [vmem:[#allocation13_spill] sm:$0xff] %v5693_v30  ;;  %6730 = vst [vmem:[#allocation14_spill] sm:$0xff] %v5696_v34 }
 0xcf1   :  { %v2691_v35 = vpack.c.bf16 %v2690_v50, %v2690_v50  ;;  %3304 = vst [vmem:[%s5967_s7 + $0xa] sm:$0x3] %v2690_v50  ;;  %v5699_v50 = vld [vmem:[#allocation6 + $0x8] ss:$16 sps:$4 sm:$0xff]  }
 0xcf2   :  { %6731 = vst [vmem:[#allocation15_spill] sm:$0xff] %v5699_v50 }
 0xcf3   :  { %2725 = vmatmul.mubr.bf16.vlgmr.msra.gmra.mxu0 %v2691_v35  ;;  %2766 = vmatmul.mubr.bf16.vlgmr.msra.gmra.mxu1 %v2691_v35  ;;  %v5702_v35 = vld [vmem:[#allocation7 + $0xe4] ss:$16 sps:$4 sm:$0xff]  }
 0xcf4   :  { %2775 = vmatpush1.bf16.msra.mxu0 %v5459_v49  ;;  %2816 = vmatpush1.bf16.msra.mxu1 %v5462_v38  ;;  %6732 = vst [vmem:[#allocation16_spill] sm:$0xff] %v5702_v35 }
 0xcf5   :  { %2776 = vmatprep.subr.bf16.mxu0 %v5465_v41  ;;  %2817 = vmatprep.subr.bf16.mxu1 %v5468_v26 }
 0xcf6   :  { %2806 = vmatprep.mubr.bf16.mxu0 %v6360_v4  ;;  %2847 = vmatprep.mubr.bf16.mxu1 %v6360_v4 }
 0xcf8   :  { %2777 = vmatpush1.bf16.msra.mxu0 %v5473_v39  ;;  %2818 = vmatpush1.bf16.msra.mxu1 %v5476_v20 }
 0xcf9   :  { %2778 = vmatprep.subr.bf16.mxu0 %v5479_v2  ;;  %2819 = vmatprep.subr.bf16.mxu1 %v5482_v60 }
 0xcfc   :  { %2779 = vmatpush1.bf16.msra.mxu0 %v5485_v45  ;;  %2820 = vmatpush1.bf16.msra.mxu1 %v5488_v11 }
 0xcfd   :  { %2780 = vmatprep.subr.bf16.mxu0 %v5491_v63  ;;  %2821 = vmatprep.subr.bf16.mxu1 %v5645_v40 }
 0xd00   :  { %2781 = vmatpush1.bf16.msra.mxu0 %v5648_v15  ;;  %2822 = vmatpush1.bf16.msra.mxu1 %v5651_v5 }
 0xd01   :  { %2782 = vmatprep.subr.bf16.mxu0 %v5654_v62  ;;  %2823 = vmatprep.subr.bf16.mxu1 %v5657_v57 }
 0xd04   :  { %2783 = vmatpush1.bf16.msra.mxu0 %v5660_v17  ;;  %2824 = vmatpush1.bf16.msra.mxu1 %v5663_v24 }
 0xd05   :  { %2784 = vmatprep.subr.bf16.mxu0 %v5666_v36  ;;  %2825 = vmatprep.subr.bf16.mxu1 %v5669_v25 }
 0xd08   :  { %2785 = vmatpush1.bf16.msra.mxu0 %v5672_v21  ;;  %2826 = vmatpush1.bf16.msra.mxu1 %v5675_v22 }
 0xd09   :  { %2786 = vmatprep.subr.bf16.mxu0 %v5678_v52  ;;  %2827 = vmatprep.subr.bf16.mxu1 %v5681_v23 }
 0xd0c   :  { %2787 = vmatpush1.bf16.msra.mxu0 %v5684_v47  ;;  %2828 = vmatpush1.bf16.msra.mxu1 %v5687_v43  ;;  %v5705_v43 = vld [vmem:[#allocation7 + $0xec] ss:$16 sps:$4 sm:$0xff]  }
 0xd0d   :  { %2788 = vmatprep.subr.bf16.mxu0 %v5690_v27  ;;  %2829 = vmatprep.subr.bf16.mxu1 %v5693_v30  ;;  %6733 = vst [vmem:[#allocation17_spill] sm:$0xff] %v5705_v43  ;;  %v5710_v30 = vld [vmem:[#allocation7 + $0xe0] ss:$16 sps:$4 sm:$0xff]  }
 0xd0e   :  { %6734 = vst [vmem:[#allocation18_spill] sm:$0xff] %v5710_v30 }
 0xd10   :  { %2789 = vmatpush1.bf16.msra.mxu0 %v5696_v34  ;;  %2830 = vmatpush1.bf16.msra.mxu1 %v5699_v50  ;;  %v5713_v34 = vld [vmem:[#allocation7 + $0xe8] ss:$16 sps:$4 sm:$0xff]   ;;  %v5716_v50 = vld [vmem:[#allocation7 + $0xc4] ss:$16 sps:$4 sm:$0xff]  }
 0xd11   :  { %2885 = vmatprep.subr.bf16.mxu0 %v5702_v35  ;;  %2926 = vmatprep.subr.bf16.mxu1 %v5705_v43  ;;  %6735 = vst [vmem:[#allocation19_spill] sm:$0xff] %v5713_v34  ;;  %6736 = vst [vmem:[#allocation20_spill] sm:$0xff] %v5716_v50  ;;  %v5719_v35 = vld [vmem:[#allocation7 + $0xcc] ss:$16 sps:$4 sm:$0xff]   ;;  %v5739_v43 = vld [vmem:[#allocation7 + $0xa8] ss:$16 sps:$4 sm:$0xff]  }
 0xd12   :  { %6737 = vst [vmem:[#allocation21_spill] sm:$0xff] %v5719_v35  ;;  %6743 = vst [vmem:[#allocation27_spill] sm:$0xff] %v5739_v43 }
 0xd13   :  { %2807 = vmatmul.mubr.bf16.vlgmr.msra.gmra.mxu0 %v5567_v16  ;;  %2848 = vmatmul.mubr.bf16.vlgmr.msra.gmra.mxu1 %v5567_v16  ;;  %v5724_v16 = vld [vmem:[#allocation7 + $0xc0] ss:$16 sps:$4 sm:$0xff]  }
 0xd14   :  { %2886 = vmatpush1.bf16.msra.mxu0 %v5710_v30  ;;  %2927 = vmatpush1.bf16.msra.mxu1 %v5713_v34  ;;  %6738 = vst [vmem:[#allocation22_spill] sm:$0xff] %v5724_v16  ;;  %v5727_v30 = vld [vmem:[#allocation7 + $0xc8] ss:$16 sps:$4 sm:$0xff]   ;;  %v5730_v34 = vld [vmem:[#allocation7 + $0xa4] ss:$16 sps:$4 sm:$0xff]  }
 0xd15   :  { %2887 = vmatprep.subr.bf16.mxu0 %v5716_v50  ;;  %2928 = vmatprep.subr.bf16.mxu1 %v5719_v35  ;;  %6739 = vst [vmem:[#allocation23_spill] sm:$0xff] %v5727_v30  ;;  %6740 = vst [vmem:[#allocation24_spill] sm:$0xff] %v5730_v34  ;;  %v5733_v50 = vld [vmem:[#allocation7 + $0xac] ss:$16 sps:$4 sm:$0xff]   ;;  %v5736_v35 = vld [vmem:[#allocation7 + $0xa0] ss:$16 sps:$4 sm:$0xff]  }
 0xd16   :  { %2917 = vmatprep.mubr.bf16.mxu0 %v6360_v4  ;;  %2958 = vmatprep.mubr.bf16.mxu1 %v6360_v4  ;;  %6741 = vst [vmem:[#allocation25_spill] sm:$0xff] %v5733_v50  ;;  %6742 = vst [vmem:[#allocation26_spill] sm:$0xff] %v5736_v35 }
 0xd18   :  { %2888 = vmatpush1.bf16.msra.mxu0 %v5724_v16  ;;  %2929 = vmatpush1.bf16.msra.mxu1 %v5727_v30  ;;  %v5742_v16 = vld [vmem:[#allocation7 + $0x84] ss:$16 sps:$4 sm:$0xff]   ;;  %v5745_v30 = vld [vmem:[#allocation7 + $0x8c] ss:$16 sps:$4 sm:$0xff]  }
 0xd19   :  { %2889 = vmatprep.subr.bf16.mxu0 %v5730_v34  ;;  %2930 = vmatprep.subr.bf16.mxu1 %v5733_v50  ;;  %6744 = vst [vmem:[#allocation70_spill] sm:$0xff] %v5742_v16  ;;  %6745 = vst [vmem:[#allocation71_spill] sm:$0xff] %v5745_v30  ;;  %v5748_v34 = vld [vmem:[#allocation7 + $0x80] ss:$16 sps:$4 sm:$0xff]   ;;  %v5751_v50 = vld [vmem:[#allocation7 + $0x88] ss:$16 sps:$4 sm:$0xff]  }
 0xd1a   :  { %6746 = vst [vmem:[#allocation72_spill] sm:$0xff] %v5748_v34  ;;  %6747 = vst [vmem:[#allocation73_spill] sm:$0xff] %v5751_v50 }
 0xd1c   :  { %2890 = vmatpush1.bf16.msra.mxu0 %v5736_v35  ;;  %2931 = vmatpush1.bf16.msra.mxu1 %v5739_v43  ;;  %v5754_v35 = vld [vmem:[#allocation7 + $0x64] ss:$16 sps:$4 sm:$0xff]   ;;  %v5757_v43 = vld [vmem:[#allocation7 + $0x6c] ss:$16 sps:$4 sm:$0xff]  }
 0xd1d   :  { %2891 = vmatprep.subr.bf16.mxu0 %v5742_v16  ;;  %2932 = vmatprep.subr.bf16.mxu1 %v5745_v30  ;;  %6748 = vst [vmem:[#allocation74_spill] sm:$0xff] %v5754_v35  ;;  %6749 = vst [vmem:[#allocation28_spill] sm:$0xff] %v5757_v43  ;;  %v5760_v16 = vld [vmem:[#allocation7 + $0x60] ss:$16 sps:$4 sm:$0xff]   ;;  %v5763_v30 = vld [vmem:[#allocation7 + $0x68] ss:$16 sps:$4 sm:$0xff]  }
 0xd1e   :  { %6750 = vst [vmem:[#allocation29_spill] sm:$0xff] %v5760_v16  ;;  %6751 = vst [vmem:[#allocation30_spill] sm:$0xff] %v5763_v30 }
 0xd20   :  { %2892 = vmatpush1.bf16.msra.mxu0 %v5748_v34  ;;  %2933 = vmatpush1.bf16.msra.mxu1 %v5751_v50  ;;  %v5766_v34 = vld [vmem:[#allocation7 + $0x44] ss:$16 sps:$4 sm:$0xff]   ;;  %v5769_v50 = vld [vmem:[#allocation7 + $0x4c] ss:$16 sps:$4 sm:$0xff]  }
 0xd21   :  { %2893 = vmatprep.subr.bf16.mxu0 %v5754_v35  ;;  %2934 = vmatprep.subr.bf16.mxu1 %v5757_v43  ;;  %6752 = vst [vmem:[#allocation31_spill] sm:$0xff] %v5766_v34  ;;  %6753 = vst [vmem:[#allocation32_spill] sm:$0xff] %v5769_v50  ;;  %v5772_v35 = vld [vmem:[#allocation7 + $0x40] ss:$16 sps:$4 sm:$0xff]   ;;  %v5775_v43 = vld [vmem:[#allocation7 + $0x48] ss:$16 sps:$4 sm:$0xff]  }
 0xd22   :  { %6754 = vst [vmem:[#allocation33_spill] sm:$0xff] %v5772_v35  ;;  %6755 = vst [vmem:[#allocation34_spill] sm:$0xff] %v5775_v43 }
 0xd24   :  { %2894 = vmatpush1.bf16.msra.mxu0 %v5760_v16  ;;  %2935 = vmatpush1.bf16.msra.mxu1 %v5763_v30  ;;  %v5778_v16 = vld [vmem:[#allocation7 + $0x24] ss:$16 sps:$4 sm:$0xff]   ;;  %v5781_v30 = vld [vmem:[#allocation7 + $0x2c] ss:$16 sps:$4 sm:$0xff]  }
 0xd25   :  { %2895 = vmatprep.subr.bf16.mxu0 %v5766_v34  ;;  %2936 = vmatprep.subr.bf16.mxu1 %v5769_v50  ;;  %6756 = vst [vmem:[#allocation35_spill] sm:$0xff] %v5778_v16  ;;  %6757 = vst [vmem:[#allocation36_spill] sm:$0xff] %v5781_v30  ;;  %v5784_v34 = vld [vmem:[#allocation7 + $0x20] ss:$16 sps:$4 sm:$0xff]   ;;  %v5787_v50 = vld [vmem:[#allocation7 + $0x28] ss:$16 sps:$4 sm:$0xff]  }
 0xd26   :  { %6758 = vst [vmem:[#allocation37_spill] sm:$0xff] %v5784_v34  ;;  %6759 = vst [vmem:[#allocation38_spill] sm:$0xff] %v5787_v50 }
 0xd28   :  { %2896 = vmatpush1.bf16.msra.mxu0 %v5772_v35  ;;  %2937 = vmatpush1.bf16.msra.mxu1 %v5775_v43  ;;  %v5790_v35 = vld [vmem:[#allocation7 + $0x4] ss:$16 sps:$4 sm:$0xff]   ;;  %v5793_v43 = vld [vmem:[#allocation7 + $0xc] ss:$16 sps:$4 sm:$0xff]  }
 0xd29   :  { %2897 = vmatprep.subr.bf16.mxu0 %v5778_v16  ;;  %2938 = vmatprep.subr.bf16.mxu1 %v5781_v30  ;;  %6760 = vst [vmem:[#allocation39_spill] sm:$0xff] %v5790_v35  ;;  %6761 = vst [vmem:[#allocation40_spill] sm:$0xff] %v5793_v43  ;;  %v5796_v16 = vld [vmem:[#allocation7] ss:$16 sps:$4 sm:$0xff]   ;;  %v5799_v30 = vld [vmem:[#allocation7 + $0x8] ss:$16 sps:$4 sm:$0xff]  }
 0xd2a   :  { %6762 = vst [vmem:[#allocation41_spill] sm:$0xff] %v5796_v16  ;;  %6763 = vst [vmem:[#allocation42_spill] sm:$0xff] %v5799_v30 }
 0xd2c   :  { %2898 = vmatpush1.bf16.msra.mxu0 %v5784_v34  ;;  %2939 = vmatpush1.bf16.msra.mxu1 %v5787_v50 }
 0xd2d   :  { %2899 = vmatprep.subr.bf16.mxu0 %v5790_v35  ;;  %2940 = vmatprep.subr.bf16.mxu1 %v5793_v43 }
 0xd30   :  { %2900 = vmatpush1.bf16.msra.mxu0 %v5796_v16  ;;  %2941 = vmatpush1.bf16.msra.mxu1 %v5799_v30 }
 0xd31   :  { %2996 = vmatprep.subr.bf16.mxu0 %v6687_v31  ;;  %3037 = vmatprep.subr.bf16.mxu1 %v6688_v32 }
 0xdb3   :  { %v5804_v50 = vpop.f32.mrf.mxu0  ;;  %v5806_v34 = vpop.f32.mrf.mxu1 }
 0xdb5   :  { %v5808_v35 = vpop.f32.mrf.mxu0  ;;  %v5810_v27 = vpop.f32.mrf.mxu1 }
 0xdb7   :  { %v2730_v43 = vpop.f32.mrf.mxu0  ;;  %v2771_v47 = vpop.f32.mrf.mxu1 }
 0xdb9   :  { %v2731_v23 = vpop.f32.mrf.mxu0  ;;  %v2772_v16 = vpop.f32.mrf.mxu1 }
 0xdd3   :  { %v2808_v52 = vpop.f32.mrf.mxu0  ;;  %v2849_v22 = vpop.f32.mrf.mxu1 }
 0xdd4   :  { %v2856_v30 = vadd.f32 %v2808_v52, %v4563_v0  ;;  %v2858_v47 = vadd.f32 %v2849_v22, %v4573_v3 }
 0xdd5   :  { %v2810_v21 = vpop.f32.mrf.mxu0  ;;  %v2851_v31 = vpop.f32.mrf.mxu1 }
 0xdd6   :  { %v3448_v25 = vmul.f32 -1.442695, %v2856_v30  ;;  %v2857_v32 = vadd.f32 %v2810_v21, %v4565_v61  ;;  %v3450_v23 = vmul.f32 -1.442695, %v2858_v47  ;;  %v2859_v16 = vadd.f32 %v2851_v31, %v4578_v55 }
 0xdd7   :  { %v2812_v36 = vpop.f32.mrf.mxu0  ;;  %v2853_v24 = vpop.f32.mrf.mxu1 }
 0xdd8   :  { %3807 = vpow2.f32 %v3448_v25  ;;  %v3449_v17 = vmul.f32 -1.442695, %v2857_v32 }
 0xdd9   :  { %v2813_v57 = vpop.f32.mrf.mxu0  ;;  %v2854_v62 = vpop.f32.mrf.mxu1 }
 0xdda   :  { %3809 = vpow2.f32 %v3449_v17 }
 0xddb   :  { %3811 = vpow2.f32 %v3450_v23 }
 0xde5   :  { %v3808_v43 = vpop.eup %3807 }
 0xde6   :  { %v2869_v5 = vadd.f32 1.0, %v3808_v43 }
 0xde7   :  { %v3810_v52 = vpop.eup %3809 }
 0xde8   :  { %3813 = vrcp.f32 %v2869_v5  ;;  %v2870_v30 = vadd.f32 1.0, %v3810_v52  ;;  %v3812_v36 = vpop.eup %3811 }
 0xde9   :  { %3815 = vtanh.f32 %v2859_v16  ;;  %v2871_v57 = vadd.f32 1.0, %v3812_v36 }
 0xdea   :  { %3817 = vrcp.f32 %v2870_v30 }
 0xdeb   :  { %3819 = vrcp.f32 %v2871_v57 }
 0xdf5   :  { %v3814_v24 = vpop.eup %3813 }
 0xdf6   :  { %v3816_v25 = vpop.eup %3815 }
 0xdf7   :  { %v3818_v21 = vpop.eup %3817  ;;  %v2880_v17 = vmul.f32 %v3816_v25, %v3814_v24 }
 0xdf8   :  { %v2879_v62 = vmul.f32 %v3818_v21, %v5564_v48  ;;  %v3820_v31 = vpop.eup %3819  ;;  %v6770_v48 = vld [vmem:[#allocation49_spill] sm:$0xff] }
 0xdfa   :  { %v5817_v22 = vadd.f32 %v2880_v17, %v2879_v62 }
 0xdfc   :  { %3821 = vtanh.f32 %v5817_v22 }
 0xe09   :  { %v3822_v32 = vpop.eup %3821 }
 0xe0a   :  { %v2883_v47 = vmul.f32 %v3822_v32, %v3820_v31 }
 0xe0c   :  { %v5820_v5 = vpack.c.bf16 %v2883_v47, %v2883_v47 }
 0xe0e   :  { %2918 = vmatmul.mubr.bf16.vlgmr.msra.gmra.mxu0 %v5820_v5  ;;  %2959 = vmatmul.mubr.bf16.vlgmr.msra.gmra.mxu1 %v5820_v5 }
 0xe0f   :  { %2997 = vmatpush1.bf16.msra.mxu0 %v5358_v6  ;;  %3038 = vmatpush1.bf16.msra.mxu1 %v5361_v29  ;;  %v6764_v6 = vld [vmem:[#allocation43_spill] sm:$0xff]  ;;  %v6765_v29 = vld [vmem:[#allocation44_spill] sm:$0xff] }
 0xe10   :  { %2998 = vmatprep.subr.bf16.mxu0 %v5364_v8  ;;  %3039 = vmatprep.subr.bf16.mxu1 %v5367_v54  ;;  %v6766_v8 = vld [vmem:[#allocation45_spill] sm:$0xff]  ;;  %v6767_v54 = vld [vmem:[#allocation46_spill] sm:$0xff] }
 0xe11   :  { %3028 = vmatprep.mubr.bf16.mxu0 %v6360_v4  ;;  %3069 = vmatprep.mubr.bf16.mxu1 %v6360_v4 }
 0xe13   :  { %2999 = vmatpush1.bf16.msra.mxu0 %v5372_v12  ;;  %3040 = vmatpush1.bf16.msra.mxu1 %v5375_v56  ;;  %v6768_v12 = vld [vmem:[#allocation47_spill] sm:$0xff]  ;;  %v6769_v56 = vld [vmem:[#allocation48_spill] sm:$0xff] }
 0xe14   :  { %3000 = vmatprep.subr.bf16.mxu0 %v6689_v18  ;;  %3041 = vmatprep.subr.bf16.mxu1 %v6690_v58  ;;  %v6771_v18 = vld [vmem:[#allocation50_spill] sm:$0xff]  ;;  %v6772_v58 = vld [vmem:[#allocation51_spill] sm:$0xff] }
 0xe17   :  { %3001 = vmatpush1.bf16.msra.mxu0 %v6691_v42  ;;  %3042 = vmatpush1.bf16.msra.mxu1 %v6692_v44  ;;  %v6773_v42 = vld [vmem:[#allocation52_spill] sm:$0xff]  ;;  %v6774_v44 = vld [vmem:[#allocation53_spill] sm:$0xff] }
 0xe18   :  { %3002 = vmatprep.subr.bf16.mxu0 %v6693_v1  ;;  %3043 = vmatprep.subr.bf16.mxu1 %v6694_v13  ;;  %v6775_v1 = vld [vmem:[#allocation54_spill] sm:$0xff]  ;;  %v6776_v13 = vld [vmem:[#allocation55_spill] sm:$0xff] }
 0xe1b   :  { %3003 = vmatpush1.bf16.msra.mxu0 %v6695_v53  ;;  %3044 = vmatpush1.bf16.msra.mxu1 %v6696_v51 }
 0xe1c   :  { %3004 = vmatprep.subr.bf16.mxu0 %v6697_v46  ;;  %3045 = vmatprep.subr.bf16.mxu1 %v6698_v10 }
 0xe1f   :  { %3005 = vmatpush1.bf16.msra.mxu0 %v6699_v7  ;;  %3046 = vmatpush1.bf16.msra.mxu1 %v6700_v59 }
 0xe20   :  { %3006 = vmatprep.subr.bf16.mxu0 %v6701_v9  ;;  %3047 = vmatprep.subr.bf16.mxu1 %v6764_v6 }
 0xe23   :  { %3007 = vmatpush1.bf16.msra.mxu0 %v6765_v29  ;;  %3048 = vmatpush1.bf16.msra.mxu1 %v6766_v8 }
 0xe24   :  { %3008 = vmatprep.subr.bf16.mxu0 %v6767_v54  ;;  %3049 = vmatprep.subr.bf16.mxu1 %v6768_v12 }
 0xe27   :  { %3009 = vmatpush1.bf16.msra.mxu0 %v6769_v56  ;;  %3050 = vmatpush1.bf16.msra.mxu1 %v6770_v48 }
 0xe28   :  { %3010 = vmatprep.subr.bf16.mxu0 %v6771_v18  ;;  %3051 = vmatprep.subr.bf16.mxu1 %v6772_v58 }
 0xe2b   :  { %3011 = vmatpush1.bf16.msra.mxu0 %v6773_v42  ;;  %3052 = vmatpush1.bf16.msra.mxu1 %v6774_v44  ;;  %v6791_v42 = vld [vmem:[#allocation13_spill] sm:$0xff]  ;;  %v6792_v44 = vld [vmem:[#allocation14_spill] sm:$0xff] }
 0xe2c   :  { %3078 = vmatprep.subr.bf16.mxu0 %v6775_v1  ;;  %3119 = vmatprep.subr.bf16.mxu1 %v6776_v13  ;;  %v6793_v1 = vld [vmem:[#allocation15_spill] sm:$0xff]  ;;  %v6794_v13 = vld [vmem:[#allocation16_spill] sm:$0xff] }
 0xece   :  { %v2919_v53 = vpop.f32.mrf.mxu0  ;;  %v2960_v51 = vpop.f32.mrf.mxu1 }
 0xecf   :  { %v2920_v46 = vadd.f32 %v2919_v53, %v5804_v50  ;;  %v2961_v25 = vadd.f32 %v2960_v51, %v5806_v34  ;;  %v6795_v53 = vld [vmem:[#allocation17_spill] sm:$0xff]  ;;  %v6796_v51 = vld [vmem:[#allocation18_spill] sm:$0xff] }
 0xed0   :  { %v2921_v10 = vpop.f32.mrf.mxu0  ;;  %v2962_v7 = vpop.f32.mrf.mxu1 }
 0xed1   :  { %v2967_v59 = vadd.f32 %v2920_v46, %v4627_v14  ;;  %v2922_v9 = vadd.f32 %v2921_v10, %v5808_v35  ;;  %v2969_v50 = vadd.f32 %v2961_v25, %v4639_v33  ;;  %v2963_v21 = vadd.f32 %v2962_v7, %v5810_v27  ;;  %v6797_v46 = vld [vmem:[#allocation19_spill] sm:$0xff]  ;;  %v6798_v10 = vld [vmem:[#allocation20_spill] sm:$0xff]  ;;  %v6799_v7 = vld [vmem:[#allocation21_spill] sm:$0xff] }
 0xed2   :  { %v2923_v23 = vpop.f32.mrf.mxu0  ;;  %v2964_v43 = vpop.f32.mrf.mxu1  ;;  %v6811_v25 = vld [vmem:[#allocation28_spill] sm:$0xff] }
 0xed3   :  { %v3451_v16 = vmul.f32 -1.442695, %v2967_v59  ;;  %v2968_v52 = vadd.f32 %v2922_v9, %v4631_v19  ;;  %v3453_v57 = vmul.f32 -1.442695, %v2969_v50  ;;  %v2970_v35 = vadd.f32 %v2963_v21, %v4645_v37  ;;  %v6800_v59 = vld [vmem:[#allocation22_spill] sm:$0xff]  ;;  %v6801_v9 = vld [vmem:[#allocation23_spill] sm:$0xff] }
 0xed4   :  { %v2924_v30 = vpop.f32.mrf.mxu0  ;;  %v2965_v36 = vpop.f32.mrf.mxu1  ;;  %v6802_v23 = vld [vmem:[#allocation24_spill] sm:$0xff]  ;;  %v6803_v43 = vld [vmem:[#allocation25_spill] sm:$0xff]  ;;  %v6813_v21 = vld [vmem:[#allocation30_spill] sm:$0xff] }
 0xed5   :  { %3823 = vpow2.f32 %v3451_v16  ;;  %v3452_v24 = vmul.f32 -1.442695, %v2968_v52  ;;  %v6805_v16 = vld [vmem:[#allocation27_spill] sm:$0xff]  ;;  %v6806_v52 = vld [vmem:[#allocation70_spill] sm:$0xff]  ;;  %v6808_v36 = vld [vmem:[#allocation72_spill] sm:$0xff] }
 0xed6   :  { %v6807_v30 = vld [vmem:[#allocation71_spill] sm:$0xff]  ;;  %v6812_v50 = vld [vmem:[#allocation29_spill] sm:$0xff] }
 0xed7   :  { %3825 = vpow2.f32 %v3452_v24  ;;  %v6809_v24 = vld [vmem:[#allocation73_spill] sm:$0xff] }
 0xed8   :  { %3827 = vpow2.f32 %v3453_v57  ;;  %v6814_v57 = vld [vmem:[#allocation31_spill] sm:$0xff] }
 0xee2   :  { %v3824_v62 = vpop.eup %3823 }
 0xee3   :  { %v2980_v17 = vadd.f32 1.0, %v3824_v62  ;;  %v6815_v62 = vld [vmem:[#allocation32_spill] sm:$0xff] }
 0xee4   :  { %v3826_v31 = vpop.eup %3825 }
 0xee5   :  { %3829 = vrcp.f32 %v2980_v17  ;;  %v2981_v32 = vadd.f32 1.0, %v3826_v31  ;;  %v3828_v47 = vpop.eup %3827  ;;  %v6817_v17 = vld [vmem:[#allocation34_spill] sm:$0xff]  ;;  %v6818_v31 = vld [vmem:[#allocation35_spill] sm:$0xff] }
 0xee6   :  { %3831 = vtanh.f32 %v2970_v35  ;;  %v2982_v34 = vadd.f32 1.0, %v3828_v47  ;;  %v6816_v35 = vld [vmem:[#allocation33_spill] sm:$0xff] }
 0xee7   :  { %3833 = vrcp.f32 %v2981_v32  ;;  %v6819_v32 = vld [vmem:[#allocation36_spill] sm:$0xff]  ;;  %v6820_v47 = vld [vmem:[#allocation37_spill] sm:$0xff] }
 0xee8   :  { %3835 = vrcp.f32 %v2982_v34  ;;  %v6824_v34 = vld [vmem:[#allocation41_spill] sm:$0xff] }
 0xef2   :  { %v3830_v6 = vpop.eup %3829 }
 0xef3   :  { %v3832_v29 = vpop.eup %3831 }
 0xef4   :  { %v3834_v8 = vpop.eup %3833  ;;  %v2991_v12 = vmul.f32 %v3832_v29, %v3830_v6  ;;  %v6821_v6 = vld [vmem:[#allocation38_spill] sm:$0xff]  ;;  %v6822_v29 = vld [vmem:[#allocation39_spill] sm:$0xff] }
 0xef5   :  { %v2990_v54 = vmul.f32 %v3834_v8, %v5626_v28  ;;  %v3836_v56 = vpop.eup %3835  ;;  %v6788_v28 = vld [vmem:[#allocation67_spill] sm:$0xff]  ;;  %v6823_v8 = vld [vmem:[#allocation40_spill] sm:$0xff] }
 0xef7   :  { %v5867_v27 = vadd.f32 %v2991_v12, %v2990_v54  ;;  %v6825_v54 = vld [vmem:[#allocation42_spill] sm:$0xff] }
 0xef9   :  { %3837 = vtanh.f32 %v5867_v27 }
 0xf06   :  { %v3838_v48 = vpop.eup %3837 }
 0xf07   :  { %v2994_v18 = vmul.f32 %v3838_v48, %v3836_v56 }
 0xf09   :  { %v2995_v58 = vpack.c.bf16 %v2994_v18, %v2994_v18  ;;  %3305 = vst [vmem:[%s5967_s7 + $0xc] sm:$0x3] %v2994_v18 }
 0xf0b   :  { %3029 = vmatmul.mubr.bf16.vlgmr.msra.gmra.mxu0 %v2995_v58  ;;  %3070 = vmatmul.mubr.bf16.vlgmr.msra.gmra.mxu1 %v2995_v58 }
 0xf0c   :  { %3079 = vmatpush1.bf16.msra.mxu0 %v5459_v49  ;;  %3120 = vmatpush1.bf16.msra.mxu1 %v5462_v38  ;;  %v6777_v49 = vld [vmem:[#allocation56_spill] sm:$0xff]  ;;  %v6778_v38 = vld [vmem:[#allocation57_spill] sm:$0xff] }
 0xf0d   :  { %3080 = vmatprep.subr.bf16.mxu0 %v5465_v41  ;;  %3121 = vmatprep.subr.bf16.mxu1 %v5468_v26  ;;  %v6779_v41 = vld [vmem:[#allocation58_spill] sm:$0xff]  ;;  %v6780_v26 = vld [vmem:[#allocation59_spill] sm:$0xff] }
 0xf0e   :  { %3110 = vmatprep.mubr.bf16.mxu0 %v6360_v4  ;;  %3151 = vmatprep.mubr.bf16.mxu1 %v6360_v4 }
 0xf10   :  { %3081 = vmatpush1.bf16.msra.mxu0 %v5473_v39  ;;  %3122 = vmatpush1.bf16.msra.mxu1 %v5476_v20  ;;  %v6781_v39 = vld [vmem:[#allocation60_spill] sm:$0xff]  ;;  %v6782_v20 = vld [vmem:[#allocation61_spill] sm:$0xff] }
 0xf11   :  { %3082 = vmatprep.subr.bf16.mxu0 %v5479_v2  ;;  %3123 = vmatprep.subr.bf16.mxu1 %v5482_v60  ;;  %v6783_v2 = vld [vmem:[#allocation62_spill] sm:$0xff]  ;;  %v6784_v60 = vld [vmem:[#allocation63_spill] sm:$0xff] }
 0xf14   :  { %3083 = vmatpush1.bf16.msra.mxu0 %v5485_v45  ;;  %3124 = vmatpush1.bf16.msra.mxu1 %v5488_v11  ;;  %v6785_v45 = vld [vmem:[#allocation64_spill] sm:$0xff]  ;;  %v6786_v11 = vld [vmem:[#allocation65_spill] sm:$0xff] }
 0xf15   :  { %3084 = vmatprep.subr.bf16.mxu0 %v5491_v63  ;;  %3125 = vmatprep.subr.bf16.mxu1 %v5645_v40  ;;  %v6787_v63 = vld [vmem:[#allocation66_spill] sm:$0xff]  ;;  %v6789_v40 = vld [vmem:[#allocation68_spill] sm:$0xff] }
 0xf18   :  { %3085 = vmatpush1.bf16.msra.mxu0 %v5648_v15  ;;  %3126 = vmatpush1.bf16.msra.mxu1 %v6777_v49  ;;  %v6790_v15 = vld [vmem:[#allocation69_spill] sm:$0xff] }
 0xf19   :  { %3086 = vmatprep.subr.bf16.mxu0 %v6778_v38  ;;  %3127 = vmatprep.subr.bf16.mxu1 %v6779_v41 }
 0xf1c   :  { %3087 = vmatpush1.bf16.msra.mxu0 %v6780_v26  ;;  %3128 = vmatpush1.bf16.msra.mxu1 %v6781_v39 }
 0xf1d   :  { %3088 = vmatprep.subr.bf16.mxu0 %v6782_v20  ;;  %3129 = vmatprep.subr.bf16.mxu1 %v6783_v2 }
 0xf20   :  { %3089 = vmatpush1.bf16.msra.mxu0 %v6784_v60  ;;  %3130 = vmatpush1.bf16.msra.mxu1 %v6785_v45 }
 0xf21   :  { %3090 = vmatprep.subr.bf16.mxu0 %v6786_v11  ;;  %3131 = vmatprep.subr.bf16.mxu1 %v6787_v63 }
 0xf24   :  { %3091 = vmatpush1.bf16.msra.mxu0 %v6788_v28  ;;  %3132 = vmatpush1.bf16.msra.mxu1 %v6789_v40 }
 0xf25   :  { %3092 = vmatprep.subr.bf16.mxu0 %v6790_v15  ;;  %3133 = vmatprep.subr.bf16.mxu1 %v6791_v42 }
 0xf28   :  { %3093 = vmatpush1.bf16.msra.mxu0 %v6792_v44  ;;  %3134 = vmatpush1.bf16.msra.mxu1 %v6793_v1 }
 0xf29   :  { %3189 = vmatprep.subr.bf16.mxu0 %v6794_v13  ;;  %3230 = vmatprep.subr.bf16.mxu1 %v6795_v53 }
 0xf2b   :  { %3111 = vmatmul.mubr.bf16.vlgmr.msra.gmra.mxu0 %v5820_v5  ;;  %3152 = vmatmul.mubr.bf16.vlgmr.msra.gmra.mxu1 %v5820_v5  ;;  %v6804_v5 = vld [vmem:[#allocation26_spill] sm:$0xff] }
 0xf2c   :  { %3190 = vmatpush1.bf16.msra.mxu0 %v6796_v51  ;;  %3231 = vmatpush1.bf16.msra.mxu1 %v6797_v46 }
 0xf2d   :  { %3191 = vmatprep.subr.bf16.mxu0 %v6798_v10  ;;  %3232 = vmatprep.subr.bf16.mxu1 %v6799_v7 }
 0xf2e   :  { %3221 = vmatprep.mubr.bf16.mxu0 %v6360_v4  ;;  %3262 = vmatprep.mubr.bf16.mxu1 %v6360_v4  ;;  %v6810_v4 = vld [vmem:[#allocation74_spill] sm:$0xff] }
 0xf30   :  { %3192 = vmatpush1.bf16.msra.mxu0 %v6800_v59  ;;  %3233 = vmatpush1.bf16.msra.mxu1 %v6801_v9 }
 0xf31   :  { %3193 = vmatprep.subr.bf16.mxu0 %v6802_v23  ;;  %3234 = vmatprep.subr.bf16.mxu1 %v6803_v43 }
 0xf34   :  { %3194 = vmatpush1.bf16.msra.mxu0 %v6804_v5  ;;  %3235 = vmatpush1.bf16.msra.mxu1 %v6805_v16 }
 0xf35   :  { %3195 = vmatprep.subr.bf16.mxu0 %v6806_v52  ;;  %3236 = vmatprep.subr.bf16.mxu1 %v6807_v30 }
 0xf38   :  { %3196 = vmatpush1.bf16.msra.mxu0 %v6808_v36  ;;  %3237 = vmatpush1.bf16.msra.mxu1 %v6809_v24 }
 0xf39   :  { %3197 = vmatprep.subr.bf16.mxu0 %v6810_v4  ;;  %3238 = vmatprep.subr.bf16.mxu1 %v6811_v25 }
 0xf3c   :  { %3198 = vmatpush1.bf16.msra.mxu0 %v6812_v50  ;;  %3239 = vmatpush1.bf16.msra.mxu1 %v6813_v21 }
 0xf3d   :  { %3199 = vmatprep.subr.bf16.mxu0 %v6814_v57  ;;  %3240 = vmatprep.subr.bf16.mxu1 %v6815_v62 }
 0xf40   :  { %3200 = vmatpush1.bf16.msra.mxu0 %v6816_v35  ;;  %3241 = vmatpush1.bf16.msra.mxu1 %v6817_v17 }
 0xf41   :  { %3201 = vmatprep.subr.bf16.mxu0 %v6818_v31  ;;  %3242 = vmatprep.subr.bf16.mxu1 %v6819_v32 }
 0xf44   :  { %3202 = vmatpush1.bf16.msra.mxu0 %v6820_v47  ;;  %3243 = vmatpush1.bf16.msra.mxu1 %v6821_v6 }
 0xf45   :  { %3203 = vmatprep.subr.bf16.mxu0 %v6822_v29  ;;  %3244 = vmatprep.subr.bf16.mxu1 %v6823_v8 }
 0xf48   :  { %3204 = vmatpush1.bf16.msra.mxu0 %v6824_v34  ;;  %3245 = vmatpush1.bf16.msra.mxu1 %v6825_v54 }
 0xfcb   :  { %v3030_v12 = vpop.f32.mrf.mxu0  ;;  %v5941_v56 = vpop.f32.mrf.mxu1 }
 0xfcd   :  { %v3032_v48 = vpop.f32.mrf.mxu0  ;;  %v5943_v18 = vpop.f32.mrf.mxu1 }
 0xfcf   :  { %v3034_v58 = vpop.f32.mrf.mxu0  ;;  %v3075_v49 = vpop.f32.mrf.mxu1 }
 0xfd1   :  { %v3035_v38 = vpop.f32.mrf.mxu0  ;;  %v3076_v41 = vpop.f32.mrf.mxu1 }
 0xfeb   :  { %v3112_v26 = vpop.f32.mrf.mxu0  ;;  %v3153_v39 = vpop.f32.mrf.mxu1 }
 0xfec   :  { %v3160_v20 = vadd.f32 %v3112_v26, %v4563_v0  ;;  %v3162_v44 = vadd.f32 %v3153_v39, %v4573_v3 }
 0xfed   :  { %v3114_v2 = vpop.f32.mrf.mxu0  ;;  %v3155_v60 = vpop.f32.mrf.mxu1 }
 0xfee   :  { %v3454_v45 = vmul.f32 -1.442695, %v3160_v20  ;;  %v3161_v11 = vadd.f32 %v3114_v2, %v4565_v61  ;;  %v3456_v1 = vmul.f32 -1.442695, %v3162_v44  ;;  %v3163_v53 = vadd.f32 %v3155_v60, %v4578_v55 }
 0xfef   :  { %v3116_v63 = vpop.f32.mrf.mxu0  ;;  %v3157_v28 = vpop.f32.mrf.mxu1 }
 0xff0   :  { %3839 = vpow2.f32 %v3454_v45  ;;  %v3455_v40 = vmul.f32 -1.442695, %v3161_v11 }
 0xff1   :  { %v3117_v15 = vpop.f32.mrf.mxu0  ;;  %v3158_v42 = vpop.f32.mrf.mxu1 }
 0xff2   :  { %3841 = vpow2.f32 %v3455_v40 }
 0xff3   :  { %3843 = vpow2.f32 %v3456_v1 }
 0xffd   :  { %v3840_v13 = vpop.eup %3839 }
 0xffe   :  { %v3173_v51 = vadd.f32 1.0, %v3840_v13 }
 0xfff   :  { %v3842_v0 = vpop.eup %3841 }
0x1000   :  { %3845 = vrcp.f32 %v3173_v51  ;;  %v3174_v46 = vadd.f32 1.0, %v3842_v0  ;;  %v3844_v61 = vpop.eup %3843 }
0x1001   :  { %3847 = vtanh.f32 %v3163_v53  ;;  %v3175_v9 = vadd.f32 1.0, %v3844_v61 }
0x1002   :  { %3849 = vrcp.f32 %v3174_v46 }
0x1003   :  { %3851 = vrcp.f32 %v3175_v9 }
0x100d   :  { %v3846_v10 = vpop.eup %3845 }
0x100e   :  { %v3848_v7 = vpop.eup %3847 }
0x100f   :  { %v3850_v59 = vpop.eup %3849  ;;  %v3184_v43 = vmul.f32 %v3848_v7, %v3846_v10 }
0x1010   :  { %v3183_v23 = vmul.f32 %v3850_v59, %v5817_v22  ;;  %v3852_v5 = vpop.eup %3851 }
0x1012   :  { %v3185_v3 = vadd.f32 %v3184_v43, %v3183_v23 }
0x1014   :  { %3853 = vtanh.f32 %v3185_v3 }
0x1021   :  { %v3854_v55 = vpop.eup %3853 }
0x1022   :  { %v3187_v16 = vmul.f32 %v3854_v55, %v3852_v5 }
0x1024   :  { %v3188_v52 = vpack.c.bf16 %v3187_v16, %v3187_v16 }
0x1026   :  { %3222 = vmatmul.mubr.bf16.vlgmr.msra.gmra.mxu0 %v3188_v52  ;;  %3263 = vmatmul.mubr.bf16.vlgmr.msra.gmra.mxu1 %v3188_v52 }
0x10e6   :  { %v3223_v30 = vpop.f32.mrf.mxu0  ;;  %v3264_v36 = vpop.f32.mrf.mxu1 }
0x10e7   :  { %v3224_v24 = vadd.f32 %v3223_v30, %v3030_v12  ;;  %v3265_v47 = vadd.f32 %v3264_v36, %v5941_v56 }
0x10e8   :  { %v3225_v4 = vpop.f32.mrf.mxu0  ;;  %v3266_v25 = vpop.f32.mrf.mxu1 }
0x10e9   :  { %v3271_v50 = vadd.f32 %v3224_v24, %v4627_v14  ;;  %v3226_v21 = vadd.f32 %v3225_v4, %v3032_v48  ;;  %v3273_v6 = vadd.f32 %v3265_v47, %v4639_v33  ;;  %v3267_v29 = vadd.f32 %v3266_v25, %v5943_v18 }
0x10ea   :  { %v3227_v57 = vpop.f32.mrf.mxu0  ;;  %v3268_v22 = vpop.f32.mrf.mxu1 }
0x10eb   :  { %v3457_v62 = vmul.f32 -1.442695, %v3271_v50  ;;  %v3272_v35 = vadd.f32 %v3226_v21, %v4631_v19  ;;  %v3459_v8 = vmul.f32 -1.442695, %v3273_v6  ;;  %v3274_v14 = vadd.f32 %v3267_v29, %v4645_v37 }
0x10ec   :  { %v3228_v17 = vpop.f32.mrf.mxu0  ;;  %v3269_v31 = vpop.f32.mrf.mxu1 }
0x10ed   :  { %3855 = vpow2.f32 %v3457_v62  ;;  %v3458_v32 = vmul.f32 -1.442695, %v3272_v35 }
0x10ef   :  { %3857 = vpow2.f32 %v3458_v32 }
0x10f0   :  { %3859 = vpow2.f32 %v3459_v8 }
0x10fa   :  { %v3856_v34 = vpop.eup %3855 }
0x10fb   :  { %v3284_v54 = vadd.f32 1.0, %v3856_v34 }
0x10fc   :  { %v3858_v12 = vpop.eup %3857 }
0x10fd   :  { %3861 = vrcp.f32 %v3284_v54  ;;  %v3285_v19 = vadd.f32 1.0, %v3858_v12  ;;  %v3860_v48 = vpop.eup %3859 }
0x10fe   :  { %3863 = vtanh.f32 %v3274_v14  ;;  %v3286_v56 = vadd.f32 1.0, %v3860_v48 }
0x10ff   :  { %3865 = vrcp.f32 %v3285_v19 }
0x1100   :  { %3867 = vrcp.f32 %v3286_v56 }
0x110a   :  { %v3862_v58 = vpop.eup %3861 }
0x110b   :  { %v3864_v49 = vpop.eup %3863 }
0x110c   :  { %v3866_v38 = vpop.eup %3865  ;;  %v3295_v41 = vmul.f32 %v3864_v49, %v3862_v58 }
0x110d   :  { %v3294_v33 = vmul.f32 %v3866_v38, %v5867_v27  ;;  %v3868_v26 = vpop.eup %3867 }
0x110f   :  { %v3296_v18 = vadd.f32 %v3295_v41, %v3294_v33 }
0x1111   :  { %3869 = vtanh.f32 %v3296_v18 }
0x111e   :  { %v3870_v37 = vpop.eup %3869 }
0x111f   :  { %v3298_v39 = vmul.f32 %v3870_v37, %v3868_v26 }
0x1121   :  { %3306 = vst [vmem:[%s5967_s7 + $0xe] sm:$0x3] %v3298_v39 }
0x1122   :  { %3311 = vsyncpa [#allocation3], 1 }
0x1123   :  { %3312 = vsyncpa [#allocation5], 1 }
0x1124   :  { %3313 = vsyncpa [#allocation8], 1 }

</bundles_post_ra>
